<compile_context>
chip_gen: v6e
topology: v6e:2x2x1
jax: 0.10.0
libtpu: 0.0.40
codegen_flags: <defaults>
</compile_context>

<pallas_src>
import functools

import jax
import jax.numpy as jnp
from jax.experimental import pallas as pl
from jax.experimental.pallas import tpu as pltpu

IN_DIMS = 2            # Embedder input_dims
EMB_DIMS = 6           # include_input (2) + sin (2) + cos (2); multires=1 -> freqs [1.0]
HIDDEN = (32, 32)      # hidden_neurons
OUT_SIZE = 3           # out_size
USE_TANH = True

_CHUNK = 256           # lanes per register-resident sub-chunk


def _round_up(n, m):
    return ((n + m - 1) // m) * m


def _default_compute_dtype():
    """bf16 MXU operands on v6e/v7x (bf16-native MXU), f32 on v5e and older."""
    try:
        kind = jax.devices()[0].device_kind.lower()
    except Exception:
        return jnp.float32
    if any(v in kind for v in ("v2", "v3", "v4", "v5")):
        return jnp.float32
    return jnp.bfloat16


def mlp_kernel(x_ref, w1_ref, b1_ref, w2_ref, b2_ref, w3_ref, b3_ref, o_ref,
               *, precision):
    # x_ref: (IN_DIMS, TN), o_ref: (OUT_SIZE, TN) -- batch on lanes, so both
    # loads and stores are lane-dense (no vst.msk partial stores).
    # Hoist the tiny resident parameters into vregs once per grid step.
    w1 = w1_ref[...]
    w2 = w2_ref[...]
    w3 = w3_ref[...]
    b1 = b1_ref[...]
    b2 = b2_ref[...]
    b3 = b3_ref[...]
    cdt = w1.dtype                      # MXU operand dtype (f32 or bf16)

    tn = x_ref.shape[1]
    num_chunks = tn // _CHUNK           # static

    def chunk_body(c, carry):
        start = pl.multiple_of(c * _CHUNK, _CHUNK)
        x = x_ref[:, pl.ds(start, _CHUNK)]                        # (2, CHUNK) f32
        # NeRF positional embedding (multires=1): [x; sin(1*x); cos(1*x)].
        # TODO(synk): if the bundle shows a sublane-merge chain here, build emb
        # by writing the three slices into an 8-sublane block instead.
        emb = jnp.concatenate([x, jnp.sin(x), jnp.cos(x)], axis=0)  # (6, CHUNK)

        h = jnp.dot(w1, emb.astype(cdt), precision=precision,
                    preferred_element_type=jnp.float32) + b1
        h = jnp.maximum(h, 0.0)                                    # ReLU (f32)
        h = jnp.dot(w2, h.astype(cdt), precision=precision,
                    preferred_element_type=jnp.float32) + b2
        h = jnp.maximum(h, 0.0)                                    # ReLU (f32)
        h = jnp.dot(w3, h.astype(cdt), precision=precision,
                    preferred_element_type=jnp.float32) + b3
        if USE_TANH:
            h = jnp.tanh(h)
        o_ref[:, pl.ds(start, _CHUNK)] = h.astype(o_ref.dtype)     # (3, CHUNK)
        return carry

    # Register-resident chunking: intermediates stay in vregs; only the small
    # output chunk hits VMEM.  Unrolled for LLO scheduler visibility.
    jax.lax.fori_loop(0, num_chunks, chunk_body, 0,
                      unroll=min(num_chunks, 8))


def mlp_forward_cn(x_cn, params, *, tile_n=8192, compute_dtype=None):
    """Fast path: x_cn is (IN_DIMS, N), feature-major (batch on the minor axis).

    Returns out_cn of shape (OUT_SIZE, N).  No wrapper-side layout passes: the
    kernel's ~20 B/point HBM traffic is the only traffic.
    """
    assert x_cn.shape[0] == IN_DIMS
    assert tile_n >= _CHUNK and tile_n % _CHUNK == 0
    N = x_cn.shape[1]
    if compute_dtype is None:
        compute_dtype = _default_compute_dtype()

    w1, b1, w2, b2, w3, b3 = params
    # Cast weights once (wrapper) to the MXU operand dtype; biases stay f32 and
    # are added to the f32 accumulator inside the kernel.
    w1c, w2c, w3c = (w.astype(compute_dtype) for w in (w1, w2, w3))
    precision = (jax.lax.Precision.HIGHEST if compute_dtype == jnp.float32
                 else jax.lax.Precision.DEFAULT)

    # Largest lane tile <= tile_n, but keep the grid at >= 2 blocks when the
    # batch is big enough so the "parallel" axis shards across both v7x
    # TensorCores.  Ragged last block is masked by Pallas (no explicit pad).
    tile = min(tile_n, _round_up(N, _CHUNK))
    if tile >= N and N > 2 * _CHUNK:
        tile = _round_up(pl.cdiv(N, 2), _CHUNK)
    grid = pl.cdiv(N, tile)

    def resident(arr):
        # Small parameter tensor: one full-extent block, VMEM-resident.
        return pl.BlockSpec(arr.shape, lambda i: (0, 0))

    return pl.pallas_call(
        functools.partial(mlp_kernel, precision=precision),
        out_shape=jax.ShapeDtypeStruct((OUT_SIZE, N), jnp.float32),
        grid=(grid,),
        in_specs=[
            pl.BlockSpec((IN_DIMS, tile), lambda i: (0, i)),   # batch tiled on lanes
            resident(w1c), resident(b1),
            resident(w2c), resident(b2),
            resident(w3c), resident(b3),
        ],
        out_specs=pl.BlockSpec((OUT_SIZE, tile), lambda i: (0, i)),
        compiler_params=pltpu.CompilerParams(dimension_semantics=("parallel",)),
    )(x_cn, w1c, b1, w2c, b2, w3c, b3)


def mlp_forward(x, params, *, tile_n=8192, compute_dtype=None):
    """Torch-module-compatible API: x (N, IN_DIMS) -> (out (N, OUT_SIZE), None).

    The two transposes are layout adapters for the row-major torch interface
    only; callers that can keep data feature-major should call mlp_forward_cn
    directly (zero extra HBM passes).
    """
    out_cn = mlp_forward_cn(x.T, params, tile_n=tile_n, compute_dtype=compute_dtype)
    return out_cn.T, None


def mlp_reference(x, params):
    """Pure-JAX reference matching the PyTorch forward exactly (f32, HIGHEST)."""
    w1, b1, w2, b2, w3, b3 = params                # torch layout: W (out, in)
    hi = jax.lax.Precision.HIGHEST
    emb = jnp.concatenate([x, jnp.sin(x), jnp.cos(x)], axis=-1)    # Embedder.embed
    h = jnp.maximum(jnp.dot(emb, w1.T, precision=hi) + b1[:, 0], 0.0)
    h = jnp.maximum(jnp.dot(h, w2.T, precision=hi) + b2[:, 0], 0.0)
    h = jnp.dot(h, w3.T, precision=hi) + b3[:, 0]
    if USE_TANH:
        h = jnp.tanh(h)
    return h, None


def init_params(key):
    """Deterministic synthetic parameters (shapes implied by MLP.__init__)."""
    dims = (EMB_DIMS,) + HIDDEN + (OUT_SIZE,)      # 6 -> 32 -> 32 -> 3
    params = []
    for i in range(len(dims) - 1):
        key, kw, kb = jax.random.split(key, 3)
        fan_in = dims[i]
        # torch nn.Linear layout: weight (out_features, in_features); bias kept
        # as (out, 1) so it broadcasts over lanes inside the kernel.
        w = jax.random.normal(kw, (dims[i + 1], dims[i]), jnp.float32) / jnp.sqrt(fan_in)
        b = jax.random.normal(kb, (dims[i + 1], 1), jnp.float32) * 0.01
        params += [w, b]
    return tuple(params)


if __name__ == "__main__":
    key = jax.random.PRNGKey(0)
    key, kx = jax.random.split(key)
    N = 2000                             # deliberately NOT a tile multiple (ragged block)
    x = jax.random.normal(kx, (N, IN_DIMS), jnp.float32)
    params = init_params(key)
    ref, _ = mlp_reference(x, params)

    # f32 MXU path (Precision.HIGHEST in both kernel and reference): tight check.
    # tile_n=1024 -> grid of 2 lane tiles (second one ragged: 976 valid lanes).
    out, aux = mlp_forward(x, params, tile_n=1024, compute_dtype=jnp.float32)
    out = jax.block_until_ready(out)
    assert aux is None
    assert out.shape == (N, OUT_SIZE)
    assert jnp.allclose(out, ref, rtol=1e-5, atol=1e-5), "f32 mismatch vs reference"

    # bf16 MXU-operand path (default on v6e/v7x); f32 accumulation so only
    # operand-rounding error -- checked at a correspondingly looser tolerance.
    out_bf, _ = mlp_forward(x, params, tile_n=1024, compute_dtype=jnp.bfloat16)
    out_bf = jax.block_until_ready(out_bf)
    assert jnp.allclose(out_bf, ref, rtol=5e-2, atol=5e-2), "bf16 mismatch vs reference"

    # Feature-major fast path (no wrapper layout passes at all).
    out_cn = jax.block_until_ready(
        mlp_forward_cn(x.T, params, tile_n=1024, compute_dtype=jnp.float32))
    assert out_cn.shape == (OUT_SIZE, N)
    assert jnp.allclose(out_cn, ref.T, rtol=1e-5, atol=1e-5), "fast-path mismatch"

    print("KERNEL_OK")
</pallas_src>

<mosaic_0001>
module attributes {stable_mosaic.version = 11 : i64} {
  func.func @mlp_kernel(%arg0: i32, %arg1: memref<2x1024xf32, #tpu.memory_space<vmem>>, %arg2: memref<32x6xf32, #tpu.memory_space<vmem>>, %arg3: memref<32x1xf32, #tpu.memory_space<vmem>>, %arg4: memref<32x32xf32, #tpu.memory_space<vmem>>, %arg5: memref<32x1xf32, #tpu.memory_space<vmem>>, %arg6: memref<3x32xf32, #tpu.memory_space<vmem>>, %arg7: memref<3x1xf32, #tpu.memory_space<vmem>>, %arg8: memref<3x1024xf32, #tpu.memory_space<vmem>>) attributes {dimension_semantics = [#tpu.dimension_semantics<parallel>], iteration_bounds = array<i64: 2>, scalar_prefetch = 0 : i64, scratch_operands = 0 : i64, tpu.core_type = #tpu.core_type<tc>, window_params = [{transform_indices = @transform_0, window_bounds = array<i64: 2, 1024>}, {pipeline_mode = #tpu.pipeline_mode<synchronous>, transform_indices = @transform_1, window_bounds = array<i64: 32, 6>}, {pipeline_mode = #tpu.pipeline_mode<synchronous>, transform_indices = @transform_2, window_bounds = array<i64: 32, 1>}, {pipeline_mode = #tpu.pipeline_mode<synchronous>, transform_indices = @transform_3, window_bounds = array<i64: 32, 32>}, {pipeline_mode = #tpu.pipeline_mode<synchronous>, transform_indices = @transform_4, window_bounds = array<i64: 32, 1>}, {pipeline_mode = #tpu.pipeline_mode<synchronous>, transform_indices = @transform_5, window_bounds = array<i64: 3, 32>}, {pipeline_mode = #tpu.pipeline_mode<synchronous>, transform_indices = @transform_6, window_bounds = array<i64: 3, 1>}, {transform_indices = @transform_7, window_bounds = array<i64: 3, 1024>}]} {
    %c0 = arith.constant 0 : index
    %c0_0 = arith.constant 0 : index
    %0 = vector.load %arg2[%c0, %c0_0] : memref<32x6xf32, #tpu.memory_space<vmem>>, vector<32x6xf32>
    %c0_1 = arith.constant 0 : index
    %c0_2 = arith.constant 0 : index
    %1 = vector.load %arg4[%c0_1, %c0_2] : memref<32x32xf32, #tpu.memory_space<vmem>>, vector<32x32xf32>
    %c0_3 = arith.constant 0 : index
    %c0_4 = arith.constant 0 : index
    %2 = vector.load %arg6[%c0_3, %c0_4] : memref<3x32xf32, #tpu.memory_space<vmem>>, vector<3x32xf32>
    %c0_5 = arith.constant 0 : index
    %c0_6 = arith.constant 0 : index
    %3 = vector.load %arg3[%c0_5, %c0_6] : memref<32x1xf32, #tpu.memory_space<vmem>>, vector<32x1xf32>
    %c0_7 = arith.constant 0 : index
    %c0_8 = arith.constant 0 : index
    %4 = vector.load %arg5[%c0_7, %c0_8] : memref<32x1xf32, #tpu.memory_space<vmem>>, vector<32x1xf32>
    %c0_9 = arith.constant 0 : index
    %c0_10 = arith.constant 0 : index
    %5 = vector.load %arg7[%c0_9, %c0_10] : memref<3x1xf32, #tpu.memory_space<vmem>>, vector<3x1xf32>
    %c0_i32 = arith.constant 0 : i32
    %c256_i32 = arith.constant 256 : i32
    %6 = arith.muli %c0_i32, %c256_i32 : i32
    %7 = tpu.assume_multiple %6, 256 : i32
    %c0_11 = arith.constant 0 : index
    %8 = arith.index_cast %7 : i32 to index
    %9 = vector.load %arg1[%c0_11, %8] : memref<2x1024xf32, #tpu.memory_space<vmem>>, vector<2x256xf32>
    %10 = math.sin %9 : vector<2x256xf32>
    %11 = math.cos %9 : vector<2x256xf32>
    %12 = tpu.concatenate %9, %10, %11 in 0 : vector<2x256xf32>, vector<2x256xf32>, vector<2x256xf32> -> vector<6x256xf32>
    %cst = arith.constant dense<0.000000e+00> : vector<32x256xf32>
    %13 = tpu.matmul %0, %12, %cst {dimension_numbers = #tpu.dot_dimension_numbers<[1], [0], [0], [1], [0, 0, 1, 1], [], []>, precision = #tpu.contract_precision<fp32>} : vector<32x6xf32>, vector<6x256xf32>, vector<32x256xf32> -> vector<32x256xf32>
    %14 = vector.broadcast %3 : vector<32x1xf32> to vector<32x256xf32>
    %15 = arith.addf %13, %14 : vector<32x256xf32>
    %cst_12 = arith.constant 0.000000e+00 : f32
    %16 = vector.broadcast %cst_12 : f32 to vector<32x256xf32>
    %17 = arith.maximumf %15, %16 : vector<32x256xf32>
    %cst_13 = arith.constant dense<0.000000e+00> : vector<32x256xf32>
    %18 = tpu.matmul %1, %17, %cst_13 {dimension_numbers = #tpu.dot_dimension_numbers<[1], [0], [0], [1], [0, 0, 1, 1], [], []>, precision = #tpu.contract_precision<fp32>} : vector<32x32xf32>, vector<32x256xf32>, vector<32x256xf32> -> vector<32x256xf32>
    %19 = vector.broadcast %4 : vector<32x1xf32> to vector<32x256xf32>
    %20 = arith.addf %18, %19 : vector<32x256xf32>
    %cst_14 = arith.constant 0.000000e+00 : f32
    %21 = vector.broadcast %cst_14 : f32 to vector<32x256xf32>
    %22 = arith.maximumf %20, %21 : vector<32x256xf32>
    %cst_15 = arith.constant dense<0.000000e+00> : vector<3x256xf32>
    %23 = tpu.matmul %2, %22, %cst_15 {dimension_numbers = #tpu.dot_dimension_numbers<[1], [0], [0], [1], [0, 0, 1, 1], [], []>, precision = #tpu.contract_precision<fp32>} : vector<3x32xf32>, vector<32x256xf32>, vector<3x256xf32> -> vector<3x256xf32>
    %24 = vector.broadcast %5 : vector<3x1xf32> to vector<3x256xf32>
    %25 = arith.addf %23, %24 : vector<3x256xf32>
    %26 = math.tanh %25 : vector<3x256xf32>
    %c0_16 = arith.constant 0 : index
    %27 = arith.index_cast %7 : i32 to index
    %28 = vector.load %arg8[%c0_16, %27] : memref<3x1024xf32, #tpu.memory_space<vmem>>, vector<3x256xf32>
    tpu.vector_store %arg8[%c0_16, %27], %26 {strides = array<i32>} : memref<3x1024xf32, #tpu.memory_space<vmem>>, vector<3x256xf32>,
    %c1_i32 = arith.constant 1 : i32
    %c256_i32_17 = arith.constant 256 : i32
    %29 = arith.muli %c1_i32, %c256_i32_17 : i32
    %30 = tpu.assume_multiple %29, 256 : i32
    %c0_18 = arith.constant 0 : index
    %31 = arith.index_cast %30 : i32 to index
    %32 = vector.load %arg1[%c0_18, %31] : memref<2x1024xf32, #tpu.memory_space<vmem>>, vector<2x256xf32>
    %33 = math.sin %32 : vector<2x256xf32>
    %34 = math.cos %32 : vector<2x256xf32>
    %35 = tpu.concatenate %32, %33, %34 in 0 : vector<2x256xf32>, vector<2x256xf32>, vector<2x256xf32> -> vector<6x256xf32>
    %cst_19 = arith.constant dense<0.000000e+00> : vector<32x256xf32>
    %36 = tpu.matmul %0, %35, %cst_19 {dimension_numbers = #tpu.dot_dimension_numbers<[1], [0], [0], [1], [0, 0, 1, 1], [], []>, precision = #tpu.contract_precision<fp32>} : vector<32x6xf32>, vector<6x256xf32>, vector<32x256xf32> -> vector<32x256xf32>
    %37 = vector.broadcast %3 : vector<32x1xf32> to vector<32x256xf32>
    %38 = arith.addf %36, %37 : vector<32x256xf32>
    %cst_20 = arith.constant 0.000000e+00 : f32
    %39 = vector.broadcast %cst_20 : f32 to vector<32x256xf32>
    %40 = arith.maximumf %38, %39 : vector<32x256xf32>
    %cst_21 = arith.constant dense<0.000000e+00> : vector<32x256xf32>
    %41 = tpu.matmul %1, %40, %cst_21 {dimension_numbers = #tpu.dot_dimension_numbers<[1], [0], [0], [1], [0, 0, 1, 1], [], []>, precision = #tpu.contract_precision<fp32>} : vector<32x32xf32>, vector<32x256xf32>, vector<32x256xf32> -> vector<32x256xf32>
    %42 = vector.broadcast %4 : vector<32x1xf32> to vector<32x256xf32>
    %43 = arith.addf %41, %42 : vector<32x256xf32>
    %cst_22 = arith.constant 0.000000e+00 : f32
    %44 = vector.broadcast %cst_22 : f32 to vector<32x256xf32>
    %45 = arith.maximumf %43, %44 : vector<32x256xf32>
    %cst_23 = arith.constant dense<0.000000e+00> : vector<3x256xf32>
    %46 = tpu.matmul %2, %45, %cst_23 {dimension_numbers = #tpu.dot_dimension_numbers<[1], [0], [0], [1], [0, 0, 1, 1], [], []>, precision = #tpu.contract_precision<fp32>} : vector<3x32xf32>, vector<32x256xf32>, vector<3x256xf32> -> vector<3x256xf32>
    %47 = vector.broadcast %5 : vector<3x1xf32> to vector<3x256xf32>
    %48 = arith.addf %46, %47 : vector<3x256xf32>
    %49 = math.tanh %48 : vector<3x256xf32>
    %c0_24 = arith.constant 0 : index
    %50 = arith.index_cast %30 : i32 to index
    %51 = vector.load %arg8[%c0_24, %50] : memref<3x1024xf32, #tpu.memory_space<vmem>>, vector<3x256xf32>
    tpu.vector_store %arg8[%c0_24, %50], %49 {strides = array<i32>} : memref<3x1024xf32, #tpu.memory_space<vmem>>, vector<3x256xf32>,
    %c2_i32 = arith.constant 2 : i32
    %c256_i32_25 = arith.constant 256 : i32
    %52 = arith.muli %c2_i32, %c256_i32_25 : i32
    %53 = tpu.assume_multiple %52, 256 : i32
    %c0_26 = arith.constant 0 : index
    %54 = arith.index_cast %53 : i32 to index
    %55 = vector.load %arg1[%c0_26, %54] : memref<2x1024xf32, #tpu.memory_space<vmem>>, vector<2x256xf32>
    %56 = math.sin %55 : vector<2x256xf32>
    %57 = math.cos %55 : vector<2x256xf32>
    %58 = tpu.concatenate %55, %56, %57 in 0 : vector<2x256xf32>, vector<2x256xf32>, vector<2x256xf32> -> vector<6x256xf32>
    %cst_27 = arith.constant dense<0.000000e+00> : vector<32x256xf32>
    %59 = tpu.matmul %0, %58, %cst_27 {dimension_numbers = #tpu.dot_dimension_numbers<[1], [0], [0], [1], [0, 0, 1, 1], [], []>, precision = #tpu.contract_precision<fp32>} : vector<32x6xf32>, vector<6x256xf32>, vector<32x256xf32> -> vector<32x256xf32>
    %60 = vector.broadcast %3 : vector<32x1xf32> to vector<32x256xf32>
    %61 = arith.addf %59, %60 : vector<32x256xf32>
    %cst_28 = arith.constant 0.000000e+00 : f32
    %62 = vector.broadcast %cst_28 : f32 to vector<32x256xf32>
    %63 = arith.maximumf %61, %62 : vector<32x256xf32>
    %cst_29 = arith.constant dense<0.000000e+00> : vector<32x256xf32>
    %64 = tpu.matmul %1, %63, %cst_29 {dimension_numbers = #tpu.dot_dimension_numbers<[1], [0], [0], [1], [0, 0, 1, 1], [], []>, precision = #tpu.contract_precision<fp32>} : vector<32x32xf32>, vector<32x256xf32>, vector<32x256xf32> -> vector<32x256xf32>
    %65 = vector.broadcast %4 : vector<32x1xf32> to vector<32x256xf32>
    %66 = arith.addf %64, %65 : vector<32x256xf32>
    %cst_30 = arith.constant 0.000000e+00 : f32
    %67 = vector.broadcast %cst_30 : f32 to vector<32x256xf32>
    %68 = arith.maximumf %66, %67 : vector<32x256xf32>
    %cst_31 = arith.constant dense<0.000000e+00> : vector<3x256xf32>
    %69 = tpu.matmul %2, %68, %cst_31 {dimension_numbers = #tpu.dot_dimension_numbers<[1], [0], [0], [1], [0, 0, 1, 1], [], []>, precision = #tpu.contract_precision<fp32>} : vector<3x32xf32>, vector<32x256xf32>, vector<3x256xf32> -> vector<3x256xf32>
    %70 = vector.broadcast %5 : vector<3x1xf32> to vector<3x256xf32>
    %71 = arith.addf %69, %70 : vector<3x256xf32>
    %72 = math.tanh %71 : vector<3x256xf32>
    %c0_32 = arith.constant 0 : index
    %73 = arith.index_cast %53 : i32 to index
    %74 = vector.load %arg8[%c0_32, %73] : memref<3x1024xf32, #tpu.memory_space<vmem>>, vector<3x256xf32>
    tpu.vector_store %arg8[%c0_32, %73], %72 {strides = array<i32>} : memref<3x1024xf32, #tpu.memory_space<vmem>>, vector<3x256xf32>,
    %c3_i32 = arith.constant 3 : i32
    %c256_i32_33 = arith.constant 256 : i32
    %75 = arith.muli %c3_i32, %c256_i32_33 : i32
    %76 = tpu.assume_multiple %75, 256 : i32
    %c0_34 = arith.constant 0 : index
    %77 = arith.index_cast %76 : i32 to index
    %78 = vector.load %arg1[%c0_34, %77] : memref<2x1024xf32, #tpu.memory_space<vmem>>, vector<2x256xf32>
    %79 = math.sin %78 : vector<2x256xf32>
    %80 = math.cos %78 : vector<2x256xf32>
    %81 = tpu.concatenate %78, %79, %80 in 0 : vector<2x256xf32>, vector<2x256xf32>, vector<2x256xf32> -> vector<6x256xf32>
    %cst_35 = arith.constant dense<0.000000e+00> : vector<32x256xf32>
    %82 = tpu.matmul %0, %81, %cst_35 {dimension_numbers = #tpu.dot_dimension_numbers<[1], [0], [0], [1], [0, 0, 1, 1], [], []>, precision = #tpu.contract_precision<fp32>} : vector<32x6xf32>, vector<6x256xf32>, vector<32x256xf32> -> vector<32x256xf32>
    %83 = vector.broadcast %3 : vector<32x1xf32> to vector<32x256xf32>
    %84 = arith.addf %82, %83 : vector<32x256xf32>
    %cst_36 = arith.constant 0.000000e+00 : f32
    %85 = vector.broadcast %cst_36 : f32 to vector<32x256xf32>
    %86 = arith.maximumf %84, %85 : vector<32x256xf32>
    %cst_37 = arith.constant dense<0.000000e+00> : vector<32x256xf32>
    %87 = tpu.matmul %1, %86, %cst_37 {dimension_numbers = #tpu.dot_dimension_numbers<[1], [0], [0], [1], [0, 0, 1, 1], [], []>, precision = #tpu.contract_precision<fp32>} : vector<32x32xf32>, vector<32x256xf32>, vector<32x256xf32> -> vector<32x256xf32>
    %88 = vector.broadcast %4 : vector<32x1xf32> to vector<32x256xf32>
    %89 = arith.addf %87, %88 : vector<32x256xf32>
    %cst_38 = arith.constant 0.000000e+00 : f32
    %90 = vector.broadcast %cst_38 : f32 to vector<32x256xf32>
    %91 = arith.maximumf %89, %90 : vector<32x256xf32>
    %cst_39 = arith.constant dense<0.000000e+00> : vector<3x256xf32>
    %92 = tpu.matmul %2, %91, %cst_39 {dimension_numbers = #tpu.dot_dimension_numbers<[1], [0], [0], [1], [0, 0, 1, 1], [], []>, precision = #tpu.contract_precision<fp32>} : vector<3x32xf32>, vector<32x256xf32>, vector<3x256xf32> -> vector<3x256xf32>
    %93 = vector.broadcast %5 : vector<3x1xf32> to vector<3x256xf32>
    %94 = arith.addf %92, %93 : vector<3x256xf32>
    %95 = math.tanh %94 : vector<3x256xf32>
    %c0_40 = arith.constant 0 : index
    %96 = arith.index_cast %76 : i32 to index
    %97 = vector.load %arg8[%c0_40, %96] : memref<3x1024xf32, #tpu.memory_space<vmem>>, vector<3x256xf32>
    tpu.vector_store %arg8[%c0_40, %96], %95 {strides = array<i32>} : memref<3x1024xf32, #tpu.memory_space<vmem>>, vector<3x256xf32>,
    %c4_i32 = arith.constant 4 : i32
    return
  }
  func.func @transform_0(%arg0: i32) -> (i32, i32) {
    %c0_i32 = arith.constant 0 : i32
    %c0_i32_0 = arith.constant 0 : i32
    return %c0_i32, %arg0 : i32, i32
  }
  func.func @transform_1(%arg0: i32) -> (i32, i32) {
    %c0_i32 = arith.constant 0 : i32
    %c0_i32_0 = arith.constant 0 : i32
    %c0_i32_1 = arith.constant 0 : i32
    return %c0_i32, %c0_i32_0 : i32, i32
  }
  func.func @transform_2(%arg0: i32) -> (i32, i32) {
    %c0_i32 = arith.constant 0 : i32
    %c0_i32_0 = arith.constant 0 : i32
    %c0_i32_1 = arith.constant 0 : i32
    return %c0_i32, %c0_i32_0 : i32, i32
  }
  func.func @transform_3(%arg0: i32) -> (i32, i32) {
    %c0_i32 = arith.constant 0 : i32
    %c0_i32_0 = arith.constant 0 : i32
    %c0_i32_1 = arith.constant 0 : i32
    return %c0_i32, %c0_i32_0 : i32, i32
  }
  func.func @transform_4(%arg0: i32) -> (i32, i32) {
    %c0_i32 = arith.constant 0 : i32
    %c0_i32_0 = arith.constant 0 : i32
    %c0_i32_1 = arith.constant 0 : i32
    return %c0_i32, %c0_i32_0 : i32, i32
  }
  func.func @transform_5(%arg0: i32) -> (i32, i32) {
    %c0_i32 = arith.constant 0 : i32
    %c0_i32_0 = arith.constant 0 : i32
    %c0_i32_1 = arith.constant 0 : i32
    return %c0_i32, %c0_i32_0 : i32, i32
  }
  func.func @transform_6(%arg0: i32) -> (i32, i32) {
    %c0_i32 = arith.constant 0 : i32
    %c0_i32_0 = arith.constant 0 : i32
    %c0_i32_1 = arith.constant 0 : i32
    return %c0_i32, %c0_i32_0 : i32, i32
  }
  func.func @transform_7(%arg0: i32) -> (i32, i32) {
    %c0_i32 = arith.constant 0 : i32
    %c0_i32_0 = arith.constant 0 : i32
    return %c0_i32, %arg0 : i32, i32
  }
}

</mosaic_0001>

<bundles_post_ra>
// kernel: tpu_custom_call.1
= control target key start
LH: loop header
LB: loop body
LE: loop exit
PB: predicated region body
PF: predicated region fallthrough
CT: control target
= control target key end

     0   :  { %12 = vsyncpa [#allocation3], 0  ;;  %s11355_s0 = inlined_call_operand.vmem [shape: f32[2,2000], index: 0, kind: input, shape index: {}]   ;;  %s11356_s1 = inlined_call_operand.vmem [shape: f32[32,6], index: 1, kind: input, shape index: {}]   ;;  %s11357_s2 = inlined_call_operand.vmem [shape: f32[32,1], index: 2, kind: input, shape index: {}]   ;;  %s11358_s3 = inlined_call_operand.vmem [shape: f32[32,32], index: 3, kind: input, shape index: {}]   ;;  %s11359_s4 = inlined_call_operand.vmem [shape: f32[32,1], index: 4, kind: input, shape index: {}]   ;;  %s11360_s5 = inlined_call_operand.vmem [shape: f32[3,32], index: 5, kind: input, shape index: {}]   ;;  %s11361_s6 = inlined_call_operand.vmem [shape: f32[3,1], index: 6, kind: input, shape index: {}]   ;;  %s11362_s7 = inlined_call_operand.hbm [shape: f32[3,2000], index: 7, kind: output, shape index: {}]  }
   0x1   :  { %14 = vsyncpa [#allocation3 + $0x1], 0  ;;  %s9196_s24 = smov 0   ;;  %s9198_s25 = smov 0  }
   0x2   :  { %s9200_s26 = smov 0   ;;  %s9202_s27 = smov 0  }
   0x3 LB: > { %s9217_s28 = sadd.s32 4294967295, %s9144_s27   ;;  %s8935_s29 = sadd.s32 4294967294, %s9144_s27   ;;  %s9144_s27 = sphi %s9202_s27, %s11681_s27   ;;  %s9140_s26 = sphi %s9200_s26, %s11680_s26   ;;  %s9136_s25 = sphi %s9198_s25, %s11679_s25   ;;  %s9132_s24 = sphi %s9196_s24, %s11678_s24  }
   0x4   : > { %s9221_s30 = sadd.s32 1, %s9144_s27   ;;  %s179_s8 = sadd.s32 1, %s9140_s26 }
   0x5   : > { %s176_s9 = ssub.s32 %s9144_s27, %s9221_s30  ;;  %p189_p0 = scmp.ne.s32.totalorder %s9140_s26, %s9136_s25 }
   0x6   : > { %p177_p1 = scmp.eq.s32.totalorder %s176_s9, 0  ;;  %p190_p2 = scmp.eq.s32.totalorder %s9217_s28, 1 }
   0x7   : > { %p195_p3 = scmp.ne.s32.totalorder %s9136_s25, %s9132_s24  ;;  %p196_p4 = scmp.eq.s32.totalorder %s8935_s29, 1 }
   0x8   : > { %s9232_s10 = scalar_select %p177_p1, %s9140_s26, %s179_s8  }
   0x9   : > { %p9234_p5 = por %p190_p2, %p189_p0  ;;  %p9238_p6 = por %p196_p4, %p195_p3 }
   0xa   : > { %p8938_p7 = scmp.ge.s32.totalorder %s9144_s27, 1  ;;  %p241_p8 = scmp.lt.s32.totalorder %s9144_s27, 3 }
   0xc   : > { %p242_p9 = pnand %p8938_p7, %p241_p8 }
   0xe   : > { %245 = sbr.rel (%p242_p9) target bundleno = 2551 (0x9f7), region = 48 }
  0x13   : > { %s8940_s13 = sshll.u32 %s9217_s28, 3  ;;  %v11375_v0 = vmov 0.0   ;;  %v11367_v13 = vmov 683565275   ;;  %v11365_v15 = vmov 2475754826  }
  0x14   : > { %p274_p10 = scmp.lt.s32.totalorder %s8940_s13, 15  ;;  %652 = vmatprep.mubr.f32.mxu0 %v11375_v0  ;;  %771 = vmatprep.mubr.f32.mxu1 %v11375_v0  ;;  %v11363_v17 = vmov 2131351028   ;;  %v11373_v19 = vmov 2102212464   ;;  %v290_v52 = vld [vmem:[%s11357_s2 + $0x8] sm:$0xff] }
  0x15   : > { %v11371_v21 = vmov 920167782   ;;  %v11369_v28 = vmov 1326507024   ;;  %v292_v53 = vld [vmem:[%s11357_s2 + $0x18] sm:$0xff]  ;;  %v9153_v54 = vmov 0  }
  0x16   : > { %s11683_s13 = smov (!%p274_p10, %s8940_s13), 15  ;;  %9051 = vset.pattern.permute.xlu1 %v9153_v54  ;;  %9050 = vset.pattern.permute.xlu0 %v9153_v54  ;;  %v289_v57 = vld [vmem:[%s11357_s2] sm:$0xff]  ;;  %v291_v58 = vld [vmem:[%s11357_s2 + $0x10] sm:$0xff]  ;;  %v296_v61 = vld [vmem:[%s11359_s4 + $0x18] sm:$0xff]  ;;  %vm566_vm9 = vcmask 48128   ;;  %s9155_s29 = smov [#allocation2]  }
  0x17   : > { %s8941_s14 = sshll.u32 %s11683_s13, 1  ;;  %553 = vperm.xlu1 %9051, %v290_v52   ;;  %563 = vperm.xlu0 %9050, %v292_v53   ;;  %v295_v62 = vld [vmem:[%s11359_s4 + $0x10] sm:$0xff]  ;;  %s9088_s8 = sshll.u32 %s9155_s29, 4  ;;  %s9089_s8 = int_to_ptr.vmem [resolvable:$false] %s9088_s8 }
  0x18   : > { %s9250_s17 = scalar_lea.vmem %s11355_s0, %s8941_s14  ;;  %s270_s14 = sand.u32 1, %s9136_s25  }
  0x19   : > { %v9253_v1 = vld [vmem:[%s9250_s17] sm:$0xf]  ;;  %s8939_s15 = sshll.u32 %s270_s14, 5  ;;  %s8862_s22 = scalar_lea.sflag [#allocation3], %s270_s14 }
  0x1a   : > { %v302_v2 = vand.u32 2139095040, %v9253_v1  ;;  %v299_v4 = vand.u32 2147483647, %v9253_v1  ;;  %vm301_vm7 = vcmp.lt.s32.totalorder %v9253_v1, 0  ;;  %s10068_s16 = scalar_lea.vmem [#allocation2], %s8939_s15 }
  0x1b   : > { %548 = vperm.xlu1 %9051, %v289_v57   ;;  %558 = vperm.xlu0 %9050, %v291_v58   ;;  %s8876_s18 = sshll.u32 %s10068_s16, 4  ;;  %s8877_s18 = int_to_ptr.vmem [resolvable:$true] %s8876_s18 }
  0x1c   : > { %v303_v3 = vshrl.u32 %v302_v2, 23  ;;  %v306_v7 = vand.u32 8388607, %v299_v4  ;;  %vm300_vm8 = vcmp.le.f32.partialorder %v299_v4, 0.7853982  ;;  %s9084_s23 = scalar_lea.vmem %s8877_s18, 512  ;;  %p9091_p0 = scmp.lt.s32.totalorder %s8877_s18, %s9089_s8 }
  0x1d   : > { %p9085_p11 = scmp.ne.s32.totalorder %s8877_s18, %s9084_s23 }
  0x1e   : > { %v8942_v5 = vadd.s32 4294967169, %v303_v3  ;;  %v307_v10 = vor.u32 8388608, %v306_v7  ;;  %v294_v3 = vld [vmem:[%s11359_s4 + $0x8] sm:$0xff] }
  0x1f   : > { %1223 = vperm.xlu0 %9050, %v296_v61   ;;  %1218 = vperm.xlu1 %9051, %v295_v62   ;;  %p9086_p12 = pnand %p9085_p11, %p9234_p5 }
  0x20   : > { %v309_v6 = vadd.s32 1, %v8942_v5  ;;  %v347_v30 = vshll.u32 %v307_v10, 8  ;;  %v293_v5 = vld [vmem:[%s11359_s4] sm:$0xff] }
  0x21   : > { %p9087_p13 = pneg %p9086_p12 }
  0x22   : > { %vm310_vm0 = vcmp.gt.s32.totalorder %v309_v6, 0 }
  0x23   : > { %v311_v8 = vsel %vm310_vm0, %v309_v6, 0  ;;  %1213 = vperm.xlu0 %9050, %v294_v3   ;;  %1208 = vperm.xlu1 %9051, %v293_v5   ;;  %vm391_vm0 = vweird.f32 %v9253_v1  ;;  %v283_v5 = vld [vmem:[%s11356_s1 + $0x18] sm:$0xff] }
  0x24   : > { %v313_v9 = vand.u32 31, %v311_v8  ;;  %v312_v11 = vshrl.u32 %v311_v8, 5  ;;  %v297_v8 = vld [vmem:[%s11361_s6] sm:$0x7] }
  0x26   : > { %v314_v12 = vsub.s32 32, %v313_v9  ;;  %v316_v14 = vshll.u32 %v11367_v13, %v313_v9  ;;  %v319_v16 = vshll.u32 %v11365_v15, %v313_v9  ;;  %v322_v18 = vshll.u32 %v11363_v17, %v313_v9 }
  0x27   : > { %v325_v20 = vshll.u32 %v11373_v19, %v313_v9  ;;  %v328_v22 = vshll.u32 %v11371_v21, %v313_v9  ;;  %vm331_vm1 = vcmp.lt.s32.totalorder %v312_v11, 1  ;;  %vm334_vm2 = vcmp.lt.s32.totalorder %v312_v11, 4  ;;  %1939 = vperm.xlu0 %9050, %v297_v8  }
  0x28   : > { %v315_v23 = vshrl.u32 %v11367_v13, %v314_v12  ;;  %v317_v24 = vshrl.u32 %v11365_v15, %v314_v12  ;;  %v320_v25 = vshrl.u32 %v11363_v17, %v314_v12  ;;  %v323_v26 = vshrl.u32 %v11373_v19, %v314_v12 }
  0x29   : > { %v326_v27 = vshrl.u32 %v11371_v21, %v314_v12  ;;  %v329_v29 = vshrl.u32 %v11369_v28, %v314_v12  ;;  %vm332_vm3 = vcmp.lt.s32.totalorder %v312_v11, 2  ;;  %vm333_vm4 = vcmp.lt.s32.totalorder %v312_v11, 3 }
  0x2a   : > { %v318_v31 = vor.u32 %v317_v24, %v316_v14  ;;  %v321_v32 = vor.u32 %v320_v25, %v319_v16  ;;  %v324_v33 = vor.u32 %v323_v26, %v322_v18 }
  0x2b   : > { %v327_v34 = vor.u32 %v326_v27, %v325_v20  ;;  %v330_v35 = vor.u32 %v329_v29, %v328_v22 }
  0x2c   : > { %v335_v36 = vsel %vm331_vm1, %v315_v23, %v318_v31  ;;  %v336_v37 = vsel %vm334_vm2, %v324_v33, 2102212464  ;;  %v339_v38 = vsel %vm331_vm1, %v318_v31, %v321_v32  ;;  %v343_v39 = vsel %vm331_vm1, %v321_v32, %v324_v33 }
  0x2d   : > { %v337_v40 = vsel %vm333_vm4, %v321_v32, %v336_v37  ;;  %v340_v41 = vsel %vm334_vm2, %v327_v34, 920167782  ;;  %v344_v42 = vsel %vm334_vm2, %v330_v35, 1326507024  ;;  %vm540_vm1 = vcmask 1041408  }
  0x2e   : > { %v341_v43 = vsel %vm333_vm4, %v324_v33, %v340_v41  ;;  %v345_v44 = vsel %vm333_vm4, %v327_v34, %v344_v42  ;;  %v338_v45 = vsel %vm332_vm3, %v335_v36, %v337_v40  ;;  %v510_v41 = vlaneseq  ;;  %v280_v42 = vld [vmem:[%s11356_s1] sm:$0xff] }
  0x2f   : > { %v342_v46 = vsel %vm332_vm3, %v339_v38, %v341_v43  ;;  %v346_v47 = vsel %vm332_vm3, %v343_v39, %v345_v44  ;;  %v354_v55 = vmul.u32 %v347_v30, %v338_v45  ;;  %v9154_v39 = vmov 1983009808  }
  0x30   : > { %v9270_v48 = vmul.u32.u64.low %v347_v30, %v346_v47  ;;  %v9271_v49 = vmul.u32.u64.high %v347_v30, %v346_v47, %v9270_v48  ;;  %v9273_v50 = vmul.u32.u64.low %v347_v30, %v342_v46  ;;  %v9274_v51 = vmul.u32.u64.high %v347_v30, %v342_v46, %v9273_v50  ;;  %v281_v47 = vld [vmem:[%s11356_s1 + $0x8] sm:$0xff] }
  0x31   : > { %v508_v40 = vunpack.c.l.s4 %v9154_v39  ;;  %v511_v45 = vshrl.u32 %v510_v41, 7  ;;  %v568_v46 = vsel %vm566_vm9, %v280_v42, 0  ;;  %vm543_vm2 = vcmask 1043456  }
  0x32   : > { %vm356_vm5 = vc.u32 %v9271_v49, %v9273_v50  ;;  %v357_v56 = vadd.s32 1, %v9274_v51  ;;  %v355_v14 = vadd.s32 %v9273_v50, %v9271_v49  ;;  %v9318_v49 = vand.u32 4294901760, %v568_v46 }
  0x33   : > { %v509_v4 = vunpack.c.0.s8 %v508_v40  ;;  %v571_v50 = vsel %vm566_vm9, %v281_v47, 0  ;;  %vm579_vm3 = vcmask 1045504   ;;  %vm1226_vm4 = vcmask 261120  }
  0x34   : > { %v358_v59 = vsel %vm356_vm5, %v357_v56, %v9274_v51  ;;  %11496 = vst [vmem:[#allocation5_spill] sm:$0xff] %v9318_v49  ;;  %v282_v51 = vld [vmem:[%s11356_s1 + $0x10] sm:$0xff]  ;;  %v9329_v61 = vsub.f32 %v568_v46, %v9318_v49  ;;  %v9331_v62 = vand.u32 4294901760, %v571_v50 }
  0x35   : > { %v359_v60 = vadd.s32 %v358_v59, %v354_v55  ;;  %v9324_v54 = vsub.s32 %v509_v4, %v511_v45  ;;  %v574_v58 = vsel %vm566_vm9, %v282_v51, 0 }
  0x36   : > { %11497 = vst [vmem:[#allocation6_spill] sm:$0xff] %v9329_v61  ;;  %11498 = vst [vmem:[#allocation7_spill] sm:$0xff] %v9331_v62 }
  0x37   : > { %v360_v63 = vadd.s32 536870912, %v359_v60  ;;  %v513_v3 = vrot.slane %v9253_v1, %v9324_v54 }
  0x39   : > { %v361_v2 = vshrl.u32 %v360_v63, 30 }
  0x3b   : > { %v362_v6 = vshll.u32 %v361_v2, 30  ;;  %v385_v32 = vsub.s32 4, %v361_v2 }
  0x3d   : > { %v363_v7 = vsub.s32 %v359_v60, %v362_v6  ;;  %v386_v35 = vsel %vm301_vm7, %v385_v32, %v361_v2 }
  0x3e   : > { %v388_v37 = vsel %vm300_vm8, 0, %v386_v35 }
  0x3f   : > { %v365_v9 = vsub.s32 0, %v363_v7  ;;  %v392_v38 = vadd.s32 3, %v388_v37  ;;  %v496_v44 = vand.u32 3, %v388_v37 }
  0x41   : > { %v8943_v10 = vmin.u32 %v365_v9, %v363_v7  ;;  %v393_v43 = vand.u32 3, %v392_v38  ;;  %vm501_vm11 = vcmp.eq.s32.totalorder %v496_v44, 2  ;;  %vm498_vm13 = vcmp.eq.s32.totalorder %v496_v44, 0 }
  0x42   : > { %vm497_vm15 = vcmp.lt.s32.totalorder %v496_v44, 2 }
  0x43   : > { %v367_v11 = vclz %v8943_v10  ;;  %vm398_vm10 = vcmp.eq.s32.totalorder %v393_v43, 2  ;;  %vm395_vm12 = vcmp.eq.s32.totalorder %v393_v43, 0  ;;  %vm394_vm14 = vcmp.lt.s32.totalorder %v393_v43, 2 }
  0x44   : > { %v9339_v10 = vand.u32 4294901760, %v574_v58 }
  0x45   : > { %v8944_v12 = vadd.s32 4294967294, %v367_v11  ;;  %v9342_v11 = vand.u32 4294901760, %v9329_v61 }
  0x46   : > { %11499 = vst [vmem:[#allocation8_spill] sm:$0xff] %v9339_v10 }
  0x47   : > { %vm8945_vm6 = vcmp.lt.s32.totalorder %v8944_v12, 0  ;;  %11500 = vst [vmem:[#allocation9_spill] sm:$0xff] %v9342_v11 }
  0x48   : > { %v370_v16 = vsel %vm8945_vm6, 0, %v8944_v12  ;;  %v9345_v12 = vsub.f32 %v571_v50, %v9331_v62 }
  0x49   : > { %v371_v18 = vsub.s32 32, %v370_v16  ;;  %v372_v20 = vshll.u32 %v363_v7, %v370_v16  ;;  %v375_v22 = vsub.s32 4294967266, %v370_v16 }
  0x4a   : > { %11501 = vst [vmem:[#allocation10_spill] sm:$0xff] %v9345_v12 }
  0x4b   : > { %v373_v23 = vshrl.u32 %v355_v14, %v371_v18  ;;  %v376_v24 = vadd.s32 127, %v375_v22  ;;  %v514_v14 = vcombine.high %v513_v3, %v513_v3 }
  0x4d   : > { %v374_v25 = vor.u32 %v373_v23, %v372_v20  ;;  %v377_v26 = vshll.u32 %v376_v24, 23  ;;  %v9351_v23 = vsub.f32 %v574_v58, %v9339_v10 }
  0x4f   : > { %v378_v27 = vor.u32 4788187, %v377_v26  ;;  %v381_v29 = vcvt.s32.f32 %v374_v25  ;;  %11502 = vst [vmem:[#allocation11_spill] sm:$0xff] %v9351_v23  ;;  %v656_v26 = vsub.f32 %v9329_v61, %v9342_v11 }
  0x51   : > { %v379_v30 = vand.u32 2147483647, %v378_v27  ;;  %v9359_v27 = vand.u32 4294901760, %v9345_v12  ;;  %v9371_v37 = vand.u32 4294901760, %v656_v26 }
  0x53   : > { %v382_v31 = vmul.f32 %v381_v29, %v379_v30  ;;  %11504 = vst [vmem:[#allocation13_spill] sm:$0xff] %v9359_v27  ;;  %11507 = vst [vmem:[#allocation16_spill] sm:$0xff] %v9371_v37  ;;  %v667_v38 = vsub.f32 %v9345_v12, %v9359_v27 }
  0x55   : > { %v383_v33 = vxor.u32 2147483648, %v382_v31  ;;  %v9379_v43 = vand.u32 4294901760, %v667_v38 }
  0x57   : > { %v384_v34 = vsel %vm301_vm7, %v383_v33, %v382_v31  ;;  %11509 = vst [vmem:[#allocation18_spill] sm:$0xff] %v9379_v43 }
  0x58   : > { %v387_v36 = vsel %vm300_vm8, %v9253_v1, %v384_v34  ;;  %v577_v1 = vsel %vm566_vm9, %v283_v5, 0  ;;  %v9366_v34 = vand.u32 4294901760, %v9351_v23 }
  0x59   : > { %9052 = vcosq.f32 %v387_v36  ;;  %v9353_v24 = vand.u32 4294901760, %v577_v1 }
  0x5a   : > { %9054 = vsinq.f32 %v387_v36  ;;  %11505 = vst [vmem:[#allocation14_spill] sm:$0xff] %v9366_v34  ;;  %v678_v45 = vsub.f32 %v9351_v23, %v9366_v34 }
  0x5b   : > { %11503 = vst [vmem:[#allocation12_spill] sm:$0xff] %v9353_v24  ;;  %v9369_v35 = vsub.f32 %v577_v1, %v9353_v24 }
  0x5c   : > { %v9385_v50 = vand.u32 4294901760, %v678_v45 }
  0x5d   : > { %11506 = vst [vmem:[#allocation15_spill] sm:$0xff] %v9369_v35  ;;  %v9376_v42 = vand.u32 4294901760, %v9369_v35 }
  0x5e   : > { %11510 = vst [vmem:[#allocation19_spill] sm:$0xff] %v9385_v50 }
  0x5f   : > { %11508 = vst [vmem:[#allocation17_spill] sm:$0xff] %v9376_v42  ;;  %v689_v51 = vsub.f32 %v9369_v35, %v9376_v42 }
  0x66   : > { %v9053_v48 = vpop.eup %9052 }
  0x67   : > { %v9055_v52 = vpop.eup %9054  ;;  %v399_v53 = vxor.u32 2147483648, %v9053_v48 }
  0x68   : > { %v396_v55 = vxor.u32 2147483648, %v9055_v52 }
  0x69   : > { %v400_v56 = vsel %vm398_vm10, %v399_v53, %v9055_v52  ;;  %v503_v57 = vsel %vm501_vm11, %v399_v53, %v9055_v52  ;;  %v9392_v52 = vand.u32 4294901760, %v689_v51 }
  0x6a   : > { %v397_v59 = vsel %vm395_vm12, %v9053_v48, %v396_v55  ;;  %v500_v60 = vsel %vm498_vm13, %v9053_v48, %v396_v55 }
  0x6b   : > { %v401_v63 = vsel %vm394_vm14, %v397_v59, %v400_v56  ;;  %v504_v2 = vsel %vm497_vm15, %v500_v60, %v503_v57  ;;  %11511 = vst [vmem:[#allocation20_spill] sm:$0xff] %v9392_v52 }
  0x6c   : > { %v402_v6 = vsel %vm391_vm0, nan, %v401_v63  ;;  %v505_v7 = vsel %vm391_vm0, nan, %v504_v2 }
  0x6d   : > { %v518_v8 = vcombine.low %v402_v6, %v402_v6  ;;  %v536_v9 = vrot.slane %v505_v7, %v9324_v54 }
  0x6f   : > { %v525_v16 = vrot.slane %v518_v8, %v9324_v54  ;;  %v537_v18 = vcombine.low %v536_v9, %v536_v9 }
  0x71   : > { %v526_v20 = vcombine.high %v525_v16, %v525_v16  ;;  %v541_v22 = vsel %vm540_vm1, %v513_v3, %v525_v16 }
  0x72   : > { %v544_v25 = vsel %vm543_vm2, %v541_v22, %v537_v18 }
  0x73   : > { %v542_v29 = vsel %vm540_vm1, %v514_v14, %v526_v20  ;;  %v581_v30 = vsel %vm579_vm3, %v544_v25, 0 }
  0x74   : > { %v545_v31 = vsel %vm543_vm2, %v542_v29, %v536_v9  ;;  %v618_v32 = vand.u32 4294901760, %v581_v30 }
  0x75   : > { %v584_v33 = vsel %vm579_vm3, %v545_v31, 0 }
  0x76   : > { %v616_v36 = vand.u32 4294901760, %v584_v33  ;;  %v734_v39 = vsub.f32 %v581_v30, %v618_v32 }
  0x78   : > { %617 = vmatprep.subr.mxu0 %v616_v36  ;;  %v728_v40 = vsub.f32 %v584_v33, %v616_v36  ;;  %v735_v41 = vand.u32 4294901760, %v734_v39 }
  0x79   : > { %619 = vmatpush1.msra.mxu0 %v618_v32 }
  0x7a   : > { %658 = vmatmul.mubr.f32.vlgmr.msra.gmra.mxu0 %v9371_v37  ;;  %v729_v44 = vand.u32 4294901760, %v728_v40  ;;  %v736_v4 = vsub.f32 %v734_v39, %v735_v41  ;;  %832 = vmatprep.subr.mxu0 %v728_v40 }
  0x7b   : > { %663 = vmatprep.mubr.f32.mxu0 %v11375_v0  ;;  %835 = vmatpush1.msra.mxu0 %v734_v39 }
  0x7c   : > { %v730_v46 = vsub.f32 %v728_v40, %v729_v44  ;;  %1037 = vmatprep.subr.mxu0 %v729_v44  ;;  %v737_v47 = vand.u32 4294901760, %v736_v4 }
  0x7e   : > { %669 = vmatmul.mubr.f32.gmra.mxu0 %v9379_v43  ;;  %v731_v48 = vand.u32 4294901760, %v730_v46 }
  0x7f   : > { %674 = vmatprep.mubr.f32.mxu0 %v11375_v0 }
  0x80   : > { %732 = vmatprep.subr.mxu1 %v731_v48 }
  0x81   : > { %738 = vmatpush1.msra.mxu1 %v737_v47 }
  0x82   : > { %680 = vmatmul.mubr.f32.gmra.mxu0 %v9385_v50  ;;  %773 = vmatmul.mubr.f32.vlgmr.msra.gmra.mxu1 %v9318_v49 }
  0x83   : > { %685 = vmatprep.mubr.f32.mxu0 %v11375_v0  ;;  %778 = vmatprep.mubr.f32.mxu1 %v11375_v0 }
  0x84   : > { %932 = vmatprep.subr.mxu1 %v616_v36 }
  0x85   : > { %934 = vmatpush1.msra.mxu1 %v618_v32 }
  0x86   : > { %691 = vmatmul.mubr.f32.gmra.mxu0 %v9392_v52  ;;  %780 = vmatmul.mubr.f32.gmra.mxu1 %v9331_v62 }
  0x87   : > { %785 = vmatprep.mubr.f32.mxu1 %v11375_v0  ;;  %868 = vmatprep.mubr.f32.mxu0 %v11375_v0 }
  0x88   : > { %1134 = vmatprep.subr.mxu1 %v616_v36 }
  0x8a   : > { %787 = vmatmul.mubr.f32.gmra.mxu1 %v9339_v10  ;;  %871 = vmatmul.mubr.f32.vlgmr.msra.gmra.mxu0 %v9329_v61 }
  0x8b   : > { %792 = vmatprep.mubr.f32.mxu1 %v11375_v0  ;;  %876 = vmatprep.mubr.f32.mxu0 %v11375_v0 }
  0x8c   : > { %1041 = vmatpush1.msra.mxu0 %v735_v41 }
  0x8e   : > { %794 = vmatmul.mubr.f32.gmra.mxu1 %v9353_v24  ;;  %879 = vmatmul.mubr.f32.gmra.mxu0 %v9345_v12 }
  0x8f   : > { %884 = vmatprep.mubr.f32.mxu0 %v11375_v0  ;;  %967 = vmatprep.mubr.f32.mxu1 %v11375_v0 }
  0x92   : > { %887 = vmatmul.mubr.f32.gmra.mxu0 %v9351_v23  ;;  %971 = vmatmul.mubr.f32.vlgmr.msra.gmra.mxu1 %v9342_v11  ;;  %v9436_v30 = vpop.permute.xlu0 %563  ;;  %v9438_v38 = vpop.permute.xlu1 %553 }
  0x93   : > { %892 = vmatprep.mubr.f32.mxu0 %v11375_v0  ;;  %976 = vmatprep.mubr.f32.mxu1 %v11375_v0  ;;  %11512 = vst [vmem:[#allocation21_spill] sm:$0xff] %v9436_v30  ;;  %11513 = vst [vmem:[#allocation22_spill] sm:$0xff] %v9438_v38 }
  0x94   : > { %1136 = vmatpush1.msra.mxu1 %v618_v32 }
  0x96   : > { %895 = vmatmul.mubr.f32.gmra.mxu0 %v9369_v35  ;;  %980 = vmatmul.mubr.f32.gmra.mxu1 %v9359_v27  ;;  %v9440_v41 = vpop.permute.xlu0 %558  ;;  %v9442_v47 = vpop.permute.xlu1 %548 }
  0x97   : > { %985 = vmatprep.mubr.f32.mxu1 %v11375_v0  ;;  %1074 = vmatprep.mubr.f32.mxu0 %v11375_v0  ;;  %11514 = vst [vmem:[#allocation23_spill] sm:$0xff] %v9440_v41  ;;  %11515 = vst [vmem:[#allocation24_spill] sm:$0xff] %v9442_v47 }
  0x9a   : > { %989 = vmatmul.mubr.f32.gmra.mxu1 %v9366_v34  ;;  %1076 = vmatmul.mubr.f32.vlgmr.msra.gmra.mxu0 %v9318_v49 }
  0x9b   : > { %994 = vmatprep.mubr.f32.mxu1 %v11375_v0  ;;  %1081 = vmatprep.mubr.f32.mxu0 %v11375_v0 }
  0x9e   : > { %998 = vmatmul.mubr.f32.gmra.mxu1 %v9376_v42  ;;  %1083 = vmatmul.mubr.f32.gmra.mxu0 %v9331_v62 }
  0x9f   : > { %1088 = vmatprep.mubr.f32.mxu0 %v11375_v0  ;;  %1169 = vmatprep.mubr.f32.mxu1 %v11375_v0 }
  0xa2   : > { %1090 = vmatmul.mubr.f32.gmra.mxu0 %v9339_v10  ;;  %1171 = vmatmul.mubr.f32.vlgmr.msra.gmra.mxu1 %v9318_v49 }
  0xa3   : > { %1095 = vmatprep.mubr.f32.mxu0 %v11375_v0  ;;  %1176 = vmatprep.mubr.f32.mxu1 %v11375_v0 }
  0xa6   : > { %1097 = vmatmul.mubr.f32.gmra.mxu0 %v9353_v24  ;;  %1178 = vmatmul.mubr.f32.gmra.mxu1 %v9331_v62 }
  0xa7   : > { %1183 = vmatprep.mubr.f32.mxu1 %v11375_v0  ;;  %1311 = vmatprep.mubr.f32.mxu0 %v11375_v0 }
  0xaa   : > { %1185 = vmatmul.mubr.f32.gmra.mxu1 %v9339_v10 }
  0xab   : > { %1190 = vmatprep.mubr.f32.mxu1 %v11375_v0 }
  0xae   : > { %1192 = vmatmul.mubr.f32.gmra.mxu1 %v9353_v24 }
  0xaf   : > { %1460 = vmatprep.mubr.f32.mxu1 %v11375_v0 }
 0x13a   : > { %v659_v53 = vpop.f32.mrf.mxu0 }
 0x13b   : > { %v660_v28 = vadd.f32 %v659_v53, %v9442_v47 }
 0x13c   : > { %v661_v55 = vpop.f32.mrf.mxu0 }
 0x13d   : > { %v662_v21 = vadd.f32 %v661_v55, %v9442_v47 }
 0x13e   : > { %v670_v56 = vpop.f32.mrf.mxu0 }
 0x13f   : > { %v671_v51 = vadd.f32 %v670_v56, %v9438_v38  ;;  %v284_v56 = vld [vmem:[%s11358_s3] sm:$0xff] }
 0x140   : > { %v672_v57 = vpop.f32.mrf.mxu0 }
 0x141   : > { %v673_v13 = vadd.f32 %v672_v57, %v9438_v38 }
 0x142   : > { %v681_v58 = vpop.f32.mrf.mxu0  ;;  %v774_v59 = vpop.f32.mrf.mxu1 }
 0x143   : > { %v682_v48 = vadd.f32 %v681_v58, %v9440_v41  ;;  %v775_v47 = vadd.f32 %v774_v59, %v660_v28 }
 0x144   : > { %v683_v60 = vpop.f32.mrf.mxu0  ;;  %v776_v63 = vpop.f32.mrf.mxu1 }
 0x145   : > { %v684_v35 = vadd.f32 %v683_v60, %v9440_v41  ;;  %v777_v58 = vadd.f32 %v776_v63, %v662_v21 }
 0x146   : > { %v692_v2 = vpop.f32.mrf.mxu0  ;;  %v781_v3 = vpop.f32.mrf.mxu1 }
 0x147   : > { %v693_v42 = vadd.f32 %v692_v2, %v9436_v30  ;;  %v782_v11 = vadd.f32 %v781_v3, %v671_v51 }
 0x148   : > { %v694_v5 = vpop.f32.mrf.mxu0  ;;  %v783_v6 = vpop.f32.mrf.mxu1 }
 0x149   : > { %v784_v34 = vadd.f32 %v783_v6, %v673_v13  ;;  %v1228_v13 = vsel %vm1226_vm4, %v284_v56, 0 }
 0x14a   : > { %v788_v7 = vpop.f32.mrf.mxu1  ;;  %v872_v8 = vpop.f32.mrf.mxu0 }
 0x14b   : > { %v789_v27 = vadd.f32 %v788_v7, %v682_v48  ;;  %v695_v48 = vadd.f32 %v694_v5, %v9436_v30  ;;  %v873_v41 = vadd.f32 %v872_v8, %v775_v47 }
 0x14c   : > { %v790_v9 = vpop.f32.mrf.mxu1  ;;  %v874_v1 = vpop.f32.mrf.mxu0 }
 0x14d   : > { %v791_v38 = vadd.f32 %v790_v9, %v684_v35  ;;  %v875_v24 = vadd.f32 %v874_v1, %v777_v58 }
 0x14e   : > { %v795_v14 = vpop.f32.mrf.mxu1  ;;  %v880_v16 = vpop.f32.mrf.mxu0 }
 0x14f   : > { %v881_v12 = vadd.f32 %v880_v16, %v782_v11  ;;  %v796_v2 = vadd.f32 %v795_v14, %v693_v42 }
 0x150   : > { %v797_v18 = vpop.f32.mrf.mxu1  ;;  %v882_v20 = vpop.f32.mrf.mxu0 }
 0x151   : > { %v883_v53 = vadd.f32 %v882_v20, %v784_v34  ;;  %v798_v59 = vadd.f32 %v797_v18, %v695_v48  ;;  %v287_v48 = vld [vmem:[%s11358_s3 + $0x18] sm:$0xff] }
 0x152   : > { %v888_v22 = vpop.f32.mrf.mxu0  ;;  %v972_v25 = vpop.f32.mrf.mxu1 }
 0x153   : > { %v889_v23 = vadd.f32 %v888_v22, %v789_v27  ;;  %v973_v11 = vadd.f32 %v972_v25, %v873_v41 }
 0x154   : > { %v890_v26 = vpop.f32.mrf.mxu0  ;;  %v974_v29 = vpop.f32.mrf.mxu1 }
 0x155   : > { %v891_v6 = vadd.f32 %v890_v26, %v791_v38  ;;  %v975_v21 = vadd.f32 %v974_v29, %v875_v24  ;;  %v285_v24 = vld [vmem:[%s11358_s3 + $0x8] sm:$0xff]  ;;  %v9459_v26 = vand.u32 4294901760, %v1228_v13 }
 0x156   : > { %v896_v31 = vpop.f32.mrf.mxu0  ;;  %v981_v32 = vpop.f32.mrf.mxu1  ;;  %v1231_v38 = vsel %vm1226_vm4, %v285_v24, 0 }
 0x157   : > { %v982_v63 = vadd.f32 %v981_v32, %v881_v12  ;;  %v897_v35 = vadd.f32 %v896_v31, %v796_v2  ;;  %11516 = vst [vmem:[#allocation25_spill] sm:$0xff] %v9459_v26  ;;  %v9470_v56 = vand.u32 4294901760, %v1231_v38 }
 0x158   : > { %v898_v33 = vpop.f32.mrf.mxu0  ;;  %v983_v36 = vpop.f32.mrf.mxu1 }
 0x159   : > { %v984_v60 = vadd.f32 %v983_v36, %v883_v53  ;;  %v899_v12 = vadd.f32 %v898_v33, %v798_v59  ;;  %11518 = vst [vmem:[#allocation27_spill] sm:$0xff] %v9470_v56 }
 0x15a   : > { %v990_v39 = vpop.f32.mrf.mxu1  ;;  %v1077_v40 = vpop.f32.mrf.mxu0 }
 0x15b   : > { %v991_v7 = vadd.f32 %v990_v39, %v889_v23 }
 0x15c   : > { %v992_v44 = vpop.f32.mrf.mxu1  ;;  %v1079_v4 = vpop.f32.mrf.mxu0 }
 0x15d   : > { %v993_v34 = vadd.f32 %v992_v44, %v891_v6  ;;  %v1080_v1 = vadd.f32 %v1079_v4, %v975_v21 }
 0x15e   : > { %v999_v45 = vpop.f32.mrf.mxu1  ;;  %v1084_v46 = vpop.f32.mrf.mxu0 }
 0x15f   : > { %v1085_v16 = vadd.f32 %v1084_v46, %v982_v63  ;;  %v1000_v42 = vadd.f32 %v999_v45, %v897_v35  ;;  %v9463_v46 = vsub.f32 %v1228_v13, %v9459_v26 }
 0x160   : > { %v1001_v17 = vpop.f32.mrf.mxu1  ;;  %v1086_v15 = vpop.f32.mrf.mxu0 }
 0x161   : > { %v1087_v27 = vadd.f32 %v1086_v15, %v984_v60  ;;  %v1078_v15 = vadd.f32 %v1077_v40, %v973_v11  ;;  %v1002_v31 = vadd.f32 %v1001_v17, %v899_v12  ;;  %11517 = vst [vmem:[#allocation26_spill] sm:$0xff] %v9463_v46  ;;  %v286_v40 = vld [vmem:[%s11358_s3 + $0x10] sm:$0xff]  ;;  %v1237_v11 = vsel %vm1226_vm4, %v287_v48, 0 }
 0x162   : > { %v1091_v19 = vpop.f32.mrf.mxu0  ;;  %v1172_v0 = vpop.f32.mrf.mxu1  ;;  %v1234_v13 = vsel %vm1226_vm4, %v286_v40, 0  ;;  %v11530_v48 = vmov 0.0  }
 0x163   : > { %v1092_v9 = vadd.f32 %v1091_v19, %v991_v7  ;;  %v1173_v39 = vadd.f32 %v1172_v0, %v1078_v15  ;;  %v9485_v7 = vand.u32 4294901760, %v9463_v46 }
 0x164   : > { %v1174_v57 = vpop.f32.mrf.mxu1  ;;  %v1093_v55 = vpop.f32.mrf.mxu0 }
 0x165   : > { %v1094_v14 = vadd.f32 %v1093_v55, %v993_v34  ;;  %v1175_v19 = vadd.f32 %v1174_v57, %v1080_v1  ;;  %v1198_v57 = vmax.f32 %v1173_v39, 0.0  ;;  %11519 = vst [vmem:[#allocation28_spill] sm:$0xff] %v9485_v7 }
 0x166   : > { %v1179_v10 = vpop.f32.mrf.mxu1  ;;  %v1098_v28 = vpop.f32.mrf.mxu0 }
 0x167   : > { %v1180_v5 = vadd.f32 %v1179_v10, %v1085_v16  ;;  %v1099_v18 = vadd.f32 %v1098_v28, %v1000_v42  ;;  %v1199_v47 = vmax.f32 %v1175_v19, 0.0 }
 0x168   : > { %v1181_v3 = vpop.f32.mrf.mxu1  ;;  %v1100_v25 = vpop.f32.mrf.mxu0 }
 0x169   : > { %v1182_v22 = vadd.f32 %v1181_v3, %v1087_v27  ;;  %v1200_v45 = vmax.f32 %v1180_v5, 0.0  ;;  %v1101_v33 = vadd.f32 %v1100_v25, %v1002_v31  ;;  %v9490_v21 = vand.u32 4294901760, %v1199_v47 }
 0x16a   : > { %v1186_v20 = vpop.f32.mrf.mxu1  ;;  %v9496_v3 = vsub.f32 %v1231_v38, %v9470_v56  ;;  %v9503_v27 = vand.u32 4294901760, %v1234_v13  ;;  %v9535_v5 = vand.u32 4294901760, %v1237_v11 }
 0x16b   : > { %v1187_v23 = vadd.f32 %v1186_v20, %v1092_v9  ;;  %v1201_v41 = vmax.f32 %v1182_v22, 0.0  ;;  %v9479_v2 = vand.u32 4294901760, %v1200_v45  ;;  %v9505_v9 = vand.u32 4294901760, %v1198_v57 }
 0x16c   : > { %v1188_v8 = vpop.f32.mrf.mxu1  ;;  %11520 = vst [vmem:[#allocation29_spill] sm:$0xff] %v9496_v3  ;;  %11521 = vst [vmem:[#allocation30_spill] sm:$0xff] %v9503_v27  ;;  %v1315_v20 = vsub.f32 %v9463_v46, %v9485_v7  ;;  %v9527_v22 = vand.u32 4294901760, %v9496_v3  ;;  %v9533_v12 = vsub.f32 %v1234_v13, %v9503_v27 }
 0x16d   : > { %v1189_v29 = vadd.f32 %v1188_v8, %v1094_v14  ;;  %v1202_v32 = vmax.f32 %v1187_v23, 0.0  ;;  %v9474_v53 = vand.u32 4294901760, %v1201_v41  ;;  %v9513_v1 = vsub.f32 %v1200_v45, %v9479_v2  ;;  %11524 = vst [vmem:[#allocation33_spill] sm:$0xff] %v9535_v5 }
 0x16e   : > { %v1193_v36 = vpop.f32.mrf.mxu1  ;;  %v9523_v14 = vsub.f32 %v1199_v47, %v9490_v21  ;;  %11522 = vst [vmem:[#allocation31_spill] sm:$0xff] %v9527_v22  ;;  %11523 = vst [vmem:[#allocation32_spill] sm:$0xff] %v9533_v12  ;;  %v9538_v8 = vsub.f32 %v1198_v57, %v9505_v9  ;;  %v9547_v25 = vand.u32 4294901760, %v1315_v20 }
 0x16f   : > { %v1203_v44 = vmax.f32 %v1189_v29, 0.0  ;;  %v1194_v4 = vadd.f32 %v1193_v36, %v1099_v18  ;;  %v9472_v0 = vand.u32 4294901760, %v1202_v32  ;;  %v9508_v28 = vsub.f32 %v1201_v41, %v9474_v53 }
 0x170   : > { %v1195_v10 = vpop.f32.mrf.mxu1  ;;  %v1412_v18 = vand.u32 4294901760, %v9513_v1  ;;  %11525 = vst [vmem:[#allocation34_spill] sm:$0xff] %v9547_v25  ;;  %v1418_v36 = vand.u32 4294901760, %v9523_v14  ;;  %v9562_v41 = vand.u32 4294901760, %v9533_v12 }
 0x171   : > { %v9468_v17 = vand.u32 4294901760, %v1203_v44  ;;  %v1204_v51 = vmax.f32 %v1194_v4, 0.0  ;;  %v1196_v58 = vadd.f32 %v1195_v10, %v1101_v33  ;;  %v9499_v35 = vsub.f32 %v1202_v32, %v9472_v0 }
 0x172   : > { %v1406_v19 = vand.u32 4294901760, %v9508_v28  ;;  %v1326_v32 = vsub.f32 %v9496_v3, %v9527_v22  ;;  %11526 = vst [vmem:[#allocation35_spill] sm:$0xff] %v9562_v41  ;;  %v1424_v4 = vand.u32 4294901760, %v9538_v8  ;;  %v1413_v10 = vsub.f32 %v9513_v1, %v1412_v18 }
 0x173   : > { %v9476_v55 = vand.u32 4294901760, %v1204_v51  ;;  %v9482_v6 = vsub.f32 %v1203_v44, %v9468_v17  ;;  %v1205_v60 = vmax.f32 %v1196_v58, 0.0  ;;  %v1400_v23 = vand.u32 4294901760, %v9499_v35 }
 0x174   : > { %v9565_v44 = vsub.f32 %v1237_v11, %v9535_v5  ;;  %v1407_v33 = vsub.f32 %v9508_v28, %v1406_v19  ;;  %v9577_v47 = vand.u32 4294901760, %v1326_v32  ;;  %v1337_v57 = vsub.f32 %v9533_v12, %v9562_v41 }
 0x175   : > { %v9493_v63 = vsub.f32 %v1204_v51, %v9476_v55  ;;  %v9501_v34 = vand.u32 4294901760, %v1205_v60  ;;  %v1394_v42 = vand.u32 4294901760, %v9482_v6  ;;  %v1401_v38 = vsub.f32 %v9499_v35, %v1400_v23 }
 0x176   : > { %11527 = vst [vmem:[#allocation36_spill] sm:$0xff] %v9565_v44  ;;  %11528 = vst [vmem:[#allocation37_spill] sm:$0xff] %v9577_v47  ;;  %v1419_v51 = vsub.f32 %v9523_v14, %v1418_v36  ;;  %v9586_v13 = vand.u32 4294901760, %v9565_v44  ;;  %v1408_v11 = vand.u32 4294901760, %v1407_v33 }
 0x177   : > { %v1388_v59 = vand.u32 4294901760, %v9493_v63  ;;  %v9516_v16 = vsub.f32 %v1205_v60, %v9501_v34  ;;  %1264 = vmatprep.subr.mxu0 %v9501_v34  ;;  %v1395_v31 = vsub.f32 %v9482_v6, %v1394_v42  ;;  %v1402_v58 = vand.u32 4294901760, %v1401_v38 }
 0x178   : > { %1266 = vmatpush1.msra.mxu0 %v9476_v55  ;;  %11529 = vst [vmem:[#allocation38_spill] sm:$0xff] %v9586_v13  ;;  %v1425_v60 = vsub.f32 %v9538_v8, %v1424_v4  ;;  %v1420_v20 = vand.u32 4294901760, %v1419_v51  ;;  %v11538_v38 = vmov 2131351028  }
 0x179   : > { %1268 = vmatprep.subr.mxu0 %v9468_v17  ;;  %v1382_v24 = vand.u32 4294901760, %v9516_v16  ;;  %v1389_v15 = vsub.f32 %v9493_v63, %v1388_v59  ;;  %v1396_v40 = vand.u32 4294901760, %v1395_v31 }
 0x17a   : > { %1270 = vmatpush1.msra.mxu0 %v9472_v0  ;;  %v1426_v31 = vand.u32 4294901760, %v1425_v60 }
 0x17b   : > { %1272 = vmatprep.subr.mxu0 %v9474_v53  ;;  %v1383_v29 = vsub.f32 %v9516_v16, %v1382_v24  ;;  %v1390_v45 = vand.u32 4294901760, %v1389_v15  ;;  %v9596_v15 = vand.u32 4294901760, %v1337_v57 }
 0x17c   : > { %1274 = vmatpush1.msra.mxu0 %v9479_v2 }
 0x17d   : > { %1276 = vmatprep.subr.mxu0 %v9490_v21  ;;  %v1384_v39 = vand.u32 4294901760, %v1383_v29  ;;  %11531 = vst [vmem:[#allocation39_spill] sm:$0xff] %v9596_v15  ;;  %v1348_v29 = vsub.f32 %v9565_v44, %v9586_v13 }
 0x17e   : > { %1278 = vmatpush1.msra.mxu0 %v9505_v9 }
 0x17f   : > { %1317 = vmatmul.mubr.f32.vlgmr.msra.gmra.mxu0 %v9547_v25  ;;  %1385 = vmatprep.subr.mxu1 %v1384_v39  ;;  %v9606_v32 = vand.u32 4294901760, %v1348_v29 }
 0x180   : > { %1515 = vmatprep.subr.mxu0 %v9516_v16  ;;  %1391 = vmatpush1.msra.mxu1 %v1390_v45  ;;  %v1414_v16 = vand.u32 4294901760, %v1413_v10 }
 0x181   : > { %1518 = vmatpush1.msra.mxu0 %v9493_v63  ;;  %1397 = vmatprep.subr.mxu1 %v1396_v40  ;;  %11532 = vst [vmem:[#allocation40_spill] sm:$0xff] %v9606_v32 }
 0x182   : > { %1521 = vmatprep.subr.mxu0 %v9482_v6  ;;  %1322 = vmatprep.mubr.f32.mxu0 %v11530_v48 }
 0x183   : > { %1403 = vmatpush1.msra.mxu1 %v1402_v58  ;;  %1524 = vmatpush1.msra.mxu0 %v9499_v35  ;;  %v11533_v35 = vmov 2102212464  }
 0x184   : > { %1328 = vmatmul.mubr.f32.gmra.mxu0 %v9577_v47  ;;  %1409 = vmatprep.subr.mxu1 %v1408_v11 }
 0x185   : > { %1527 = vmatprep.subr.mxu0 %v9508_v28  ;;  %1415 = vmatpush1.msra.mxu1 %v1414_v16 }
 0x186   : > { %1530 = vmatpush1.msra.mxu0 %v9513_v1  ;;  %1421 = vmatprep.subr.mxu1 %v1420_v20 }
 0x187   : > { %1533 = vmatprep.subr.mxu0 %v9523_v14  ;;  %1333 = vmatprep.mubr.f32.mxu0 %v11530_v48  ;;  %v11535_v14 = vmov 1326507024  }
 0x188   : > { %1427 = vmatpush1.msra.mxu1 %v1426_v31  ;;  %1536 = vmatpush1.msra.mxu0 %v9538_v8 }
 0x189   : > { %1339 = vmatmul.mubr.f32.gmra.mxu0 %v9596_v15  ;;  %1462 = vmatmul.mubr.f32.vlgmr.msra.gmra.mxu1 %v9459_v26 }
 0x18a   : > { %1627 = vmatprep.subr.mxu1 %v9501_v34  ;;  %1738 = vmatprep.subr.mxu0 %v1382_v24  ;;  %v11536_v24 = vmov 683565275  }
 0x18b   : > { %1629 = vmatpush1.msra.mxu1 %v9476_v55  ;;  %1344 = vmatprep.mubr.f32.mxu0 %v11530_v48 }
 0x18c   : > { %1631 = vmatprep.subr.mxu1 %v9468_v17  ;;  %1467 = vmatprep.mubr.f32.mxu1 %v11530_v48 }
 0x18d   : > { %1633 = vmatpush1.msra.mxu1 %v9472_v0  ;;  %1350 = vmatmul.mubr.f32.gmra.mxu0 %v9606_v32 }
 0x18e   : > { %1469 = vmatmul.mubr.f32.gmra.mxu1 %v9470_v56  ;;  %1635 = vmatprep.subr.mxu1 %v9474_v53 }
 0x18f   : > { %1637 = vmatpush1.msra.mxu1 %v9479_v2  ;;  %1474 = vmatprep.mubr.f32.mxu1 %v11530_v48 }
 0x190   : > { %1639 = vmatprep.subr.mxu1 %v9490_v21  ;;  %1569 = vmatprep.mubr.f32.mxu0 %v11530_v48 }
 0x191   : > { %1641 = vmatpush1.msra.mxu1 %v9505_v9  ;;  %1572 = vmatmul.mubr.f32.vlgmr.msra.gmra.mxu0 %v9463_v46 }
 0x192   : > { %1476 = vmatmul.mubr.f32.gmra.mxu1 %v9503_v27  ;;  %1742 = vmatpush1.msra.mxu0 %v1388_v59 }
 0x193   : > { %1853 = vmatprep.subr.mxu1 %v9501_v34  ;;  %1746 = vmatprep.subr.mxu0 %v1394_v42 }
 0x194   : > { %1750 = vmatpush1.msra.mxu0 %v1400_v23  ;;  %1481 = vmatprep.mubr.f32.mxu1 %v11530_v48 }
 0x195   : > { %1577 = vmatprep.mubr.f32.mxu0 %v11530_v48  ;;  %1754 = vmatprep.subr.mxu0 %v1406_v19  ;;  %v11537_v19 = vmov 2475754826  }
 0x196   : > { %1483 = vmatmul.mubr.f32.gmra.mxu1 %v9535_v5  ;;  %1580 = vmatmul.mubr.f32.gmra.mxu0 %v9496_v3 }
 0x197   : > { %1758 = vmatpush1.msra.mxu0 %v1412_v18  ;;  %1585 = vmatprep.mubr.f32.mxu0 %v11530_v48 }
 0x198   : > { %1762 = vmatprep.subr.mxu0 %v1418_v36  ;;  %1674 = vmatprep.mubr.f32.mxu1 %v11530_v48 }
 0x199   : > { %1766 = vmatpush1.msra.mxu0 %v1424_v4 }
 0x19a   : > { %1588 = vmatmul.mubr.f32.gmra.mxu0 %v9533_v12  ;;  %1678 = vmatmul.mubr.f32.vlgmr.msra.gmra.mxu1 %v9485_v7 }
 0x19b   : > { %1855 = vmatpush1.msra.mxu1 %v9476_v55  ;;  %1593 = vmatprep.mubr.f32.mxu0 %v11530_v48 }
 0x19c   : > { %1857 = vmatprep.subr.mxu1 %v9468_v17  ;;  %1683 = vmatprep.mubr.f32.mxu1 %v11530_v48  ;;  %v9681_v17 = vld [vmem:[%s9250_s17 + $0x4] sm:$0xf] }
 0x19d   : > { %1859 = vmatpush1.msra.mxu1 %v9472_v0  ;;  %v2500_v0 = vand.u32 2139095040, %v9681_v17  ;;  %v2497_v59 = vand.u32 2147483647, %v9681_v17  ;;  %vm2499_vm12 = vcmp.lt.s32.totalorder %v9681_v17, 0 }
 0x19e   : > { %1861 = vmatprep.subr.mxu1 %v9474_v53  ;;  %1596 = vmatmul.mubr.f32.gmra.mxu0 %v9565_v44 }
 0x19f   : > { %1687 = vmatmul.mubr.f32.gmra.mxu1 %v9527_v22  ;;  %1799 = vmatprep.mubr.f32.mxu0 %v11530_v48  ;;  %v2501_v53 = vshrl.u32 %v2500_v0, 23  ;;  %v2504_v10 = vand.u32 8388607, %v2497_v59  ;;  %vm9739_vm13 = vcmp.le.f32.partialorder %v2497_v59, 0.7853982 }
 0x1a0   : > { %1863 = vmatpush1.msra.mxu1 %v9479_v2  ;;  %1692 = vmatprep.mubr.f32.mxu1 %v11530_v48 }
 0x1a1   : > { %1865 = vmatprep.subr.mxu1 %v9490_v21  ;;  %v8951_v55 = vadd.s32 4294967169, %v2501_v53  ;;  %v2505_v11 = vor.u32 8388608, %v2504_v10 }
 0x1a2   : > { %1867 = vmatpush1.msra.mxu1 %v9505_v9  ;;  %1801 = vmatmul.mubr.f32.vlgmr.msra.gmra.mxu0 %v9459_v26  ;;  %v11534_v9 = vmov 920167782  }
 0x1a3   : > { %1696 = vmatmul.mubr.f32.gmra.mxu1 %v9562_v41  ;;  %1806 = vmatprep.mubr.f32.mxu0 %v11530_v48  ;;  %v2507_v2 = vadd.s32 1, %v8951_v55  ;;  %v2545_v53 = vshll.u32 %v2505_v11, 8 }
 0x1a4   : > { %1701 = vmatprep.mubr.f32.mxu1 %v11530_v48 }
 0x1a5   : > { %vm2508_vm5 = vcmp.gt.s32.totalorder %v2507_v2, 0 }
 0x1a6   : > { %1808 = vmatmul.mubr.f32.gmra.mxu0 %v9470_v56  ;;  %v2509_v6 = vsel %vm2508_vm5, %v2507_v2, 0  ;;  %vm2589_vm5 = vweird.f32 %v9681_v17 }
 0x1a7   : > { %1705 = vmatmul.mubr.f32.gmra.mxu1 %v9586_v13  ;;  %1813 = vmatprep.mubr.f32.mxu0 %v11530_v48  ;;  %v2511_v21 = vand.u32 31, %v2509_v6  ;;  %v2510_v1 = vshrl.u32 %v2509_v6, 5 }
 0x1a8   : > { %1900 = vmatprep.mubr.f32.mxu1 %v11530_v48 }
 0x1a9   : > { %v2512_v63 = vsub.s32 32, %v2511_v21  ;;  %v2523_v34 = vshll.u32 %v11533_v35, %v2511_v21  ;;  %v2526_v42 = vshll.u32 %v11534_v9, %v2511_v21  ;;  %v2514_v8 = vshll.u32 %v11536_v24, %v2511_v21 }
 0x1aa   : > { %1815 = vmatmul.mubr.f32.gmra.mxu0 %v9503_v27  ;;  %v2517_v36 = vshll.u32 %v11537_v19, %v2511_v21  ;;  %v2520_v4 = vshll.u32 %v11538_v38, %v2511_v21  ;;  %vm2532_vm6 = vcmp.lt.s32.totalorder %v2510_v1, 4  ;;  %vm2529_vm7 = vcmp.lt.s32.totalorder %v2510_v1, 1 }
 0x1ab   : > { %1902 = vmatmul.mubr.f32.vlgmr.msra.gmra.mxu1 %v9459_v26  ;;  %1820 = vmatprep.mubr.f32.mxu0 %v11530_v48  ;;  %v2524_v28 = vshrl.u32 %v11534_v9, %v2512_v63  ;;  %v2527_v23 = vshrl.u32 %v11535_v14, %v2512_v63  ;;  %v2515_v18 = vshrl.u32 %v11537_v19, %v2512_v63  ;;  %vm2531_vm8 = vcmp.lt.s32.totalorder %v2510_v1, 3  ;;  %v288_v19 = vld [vmem:[%s11360_s5] sm:$0x7] }
 0x1ac   : > { %1907 = vmatprep.mubr.f32.mxu1 %v11530_v48  ;;  %v2518_v39 = vshrl.u32 %v11538_v38, %v2512_v63  ;;  %v2521_v45 = vshrl.u32 %v11533_v35, %v2512_v63  ;;  %vm2530_vm9 = vcmp.lt.s32.totalorder %v2510_v1, 2  ;;  %v1943_v9 = vsel %vm1226_vm4, %v288_v19, 0 }
 0x1ad   : > { %v2525_v33 = vor.u32 %v2524_v28, %v2523_v34  ;;  %v2528_v40 = vor.u32 %v2527_v23, %v2526_v42  ;;  %v2516_v51 = vor.u32 %v2515_v18, %v2514_v8  ;;  %v2513_v34 = vshrl.u32 %v11536_v24, %v2512_v63 }
 0x1ae   : > { %1822 = vmatmul.mubr.f32.gmra.mxu0 %v9535_v5  ;;  %v2519_v58 = vor.u32 %v2518_v39, %v2517_v36  ;;  %v2522_v57 = vor.u32 %v2521_v45, %v2520_v4  ;;  %v9790_v44 = vand.u32 4294901760, %v1943_v9 }
 0x1af   : > { %1909 = vmatmul.mubr.f32.gmra.mxu1 %v9470_v56  ;;  %2017 = vmatprep.mubr.f32.mxu0 %v11530_v48  ;;  %v2538_v60 = vsel %vm2532_vm6, %v2525_v33, 920167782  ;;  %v2542_v16 = vsel %vm2532_vm6, %v2528_v40, 1326507024  ;;  %v2533_v8 = vsel %vm2529_vm7, %v2513_v34, %v2516_v51 }
 0x1b0   : > { %1914 = vmatprep.mubr.f32.mxu1 %v11530_v48  ;;  %v2537_v20 = vsel %vm2529_vm7, %v2516_v51, %v2519_v58  ;;  %v2539_v29 = vsel %vm2531_vm8, %v2522_v57, %v2538_v60  ;;  %v2541_v31 = vsel %vm2529_vm7, %v2519_v58, %v2522_v57  ;;  %v2543_v0 = vsel %vm2531_vm8, %v2525_v33, %v2542_v16 }
 0x1b1   : > { %v2540_v55 = vsel %vm2530_vm9, %v2537_v20, %v2539_v29  ;;  %v2544_v2 = vsel %vm2530_vm9, %v2541_v31, %v2543_v0  ;;  %v2534_v23 = vsel %vm2532_vm6, %v2522_v57, 2102212464  ;;  %v9807_v15 = vsub.f32 %v1943_v9, %v9790_v44 }
 0x1b2   : > { %v9705_v6 = vmul.u32.u64.low %v2545_v53, %v2540_v55  ;;  %v9706_v21 = vmul.u32.u64.high %v2545_v53, %v2540_v55, %v9705_v6  ;;  %v9709_v28 = vmul.u32.u64.low %v2545_v53, %v2544_v2  ;;  %v9710_v42 = vmul.u32.u64.high %v2545_v53, %v2544_v2, %v9709_v28 }
 0x1b3   : > { %1916 = vmatmul.mubr.f32.gmra.mxu1 %v9503_v27  ;;  %v2535_v18 = vsel %vm2531_vm8, %v2519_v58, %v2534_v23 }
 0x1b4   : > { %1921 = vmatprep.mubr.f32.mxu1 %v11530_v48  ;;  %v2536_v36 = vsel %vm2530_vm9, %v2533_v8, %v2535_v18  ;;  %v2555_v39 = vadd.s32 1, %v9706_v21  ;;  %vm2554_vm10 = vc.u32 %v9710_v42, %v9705_v6  ;;  %v2553_v20 = vadd.s32 %v9705_v6, %v9710_v42 }
 0x1b5   : > { %v2552_v4 = vmul.u32 %v2545_v53, %v2536_v36 }
 0x1b6   : > { %v2556_v45 = vsel %vm2554_vm10, %v2555_v39, %v9706_v21 }
 0x1b7   : > { %1923 = vmatmul.mubr.f32.gmra.mxu1 %v9535_v5  ;;  %v2557_v33 = vadd.s32 %v2556_v45, %v2552_v4 }
 0x1b8   : > { %2133 = vmatprep.mubr.f32.mxu1 %v11530_v48 }
 0x1b9   : > { %v2558_v63 = vadd.s32 536870912, %v2557_v33 }
 0x1bb   : > { %v2559_v10 = vshrl.u32 %v2558_v63, 30 }
 0x1bd   : > { %v2560_v40 = vshll.u32 %v2559_v10, 30 }
 0x1bf   : > { %v2561_v60 = vsub.s32 %v2557_v33, %v2560_v40 }
 0x1c1   : > { %v2563_v11 = vsub.s32 0, %v2561_v60 }
 0x1c3   : > { %v8952_v57 = vmin.u32 %v2563_v11, %v2561_v60 }
 0x1c5   : > { %v2565_v16 = vclz %v8952_v57  ;;  %v9786_v57 = vpop.permute.xlu1 %1218 }
 0x1c6   : > { %11541 = vst [vmem:[#allocation41_spill] sm:$0xff] %v9786_v57 }
 0x1c7   : > { %v8953_v51 = vadd.s32 4294967294, %v2565_v16 }
 0x1c9   : > { %vm8954_vm11 = vcmp.lt.s32.totalorder %v8953_v51, 0  ;;  %v9801_v56 = vpop.permute.xlu1 %1208 }
 0x1ca   : > { %v2568_v58 = vsel %vm8954_vm11, 0, %v8953_v51  ;;  %11543 = vst [vmem:[#allocation43_spill] sm:$0xff] %v9801_v56 }
 0x1cb   : > { %v2573_v1 = vsub.s32 4294967266, %v2568_v58  ;;  %v2569_v29 = vsub.s32 32, %v2568_v58  ;;  %v2570_v0 = vshll.u32 %v2561_v60, %v2568_v58 }
 0x1cd   : > { %v2574_v31 = vadd.s32 127, %v2573_v1  ;;  %v2571_v53 = vshrl.u32 %v2553_v20, %v2569_v29 }
 0x1cf   : > { %v2575_v55 = vshll.u32 %v2574_v31, 23  ;;  %v2572_v21 = vor.u32 %v2571_v53, %v2570_v0  ;;  %v2583_v31 = vsub.s32 4, %v2559_v10 }
 0x1d1   : > { %v2576_v34 = vor.u32 4788187, %v2575_v55  ;;  %v2579_v18 = vcvt.s32.f32 %v2572_v21  ;;  %v2584_v21 = vsel %vm2499_vm12, %v2583_v31, %v2559_v10  ;;  %v9779_v31 = vpop.permute.xlu0 %1223 }
 0x1d3   : > { %v2577_v8 = vand.u32 2147483647, %v2576_v34 }
 0x1d5   : > { %v2580_v39 = vmul.f32 %v2579_v18, %v2577_v8  ;;  %v9795_v5 = vpop.permute.xlu0 %1213 }
 0x1d6   : > { %11542 = vst [vmem:[#allocation42_spill] sm:$0xff] %v9795_v5 }
 0x1d7   : > { %v2581_v33 = vxor.u32 2147483648, %v2580_v39 }
 0x1d9   : > { %v2582_v16 = vsel %vm2499_vm12, %v2581_v33, %v2580_v39  ;;  %v2586_v33 = vsel %vm9739_vm13, 0, %v2584_v21 }
 0x1da   : > { %v2585_v20 = vsel %vm9739_vm13, %v9681_v17, %v2582_v16  ;;  %v2590_v10 = vadd.s32 3, %v2586_v33  ;;  %v9798_v19 = vand.u32 3, %v2586_v33 }
 0x1db   : > { %9056 = vcosq.f32 %v2585_v20 }
 0x1dc   : > { %9058 = vsinq.f32 %v2585_v20  ;;  %v9788_v13 = vand.u32 3, %v2590_v10  ;;  %vm2696_vm4 = vcmp.eq.s32.totalorder %v9798_v19, 0  ;;  %vm2699_vm6 = vcmp.eq.s32.totalorder %v9798_v19, 2 }
 0x1dd   : > { %vm2695_vm7 = vcmp.lt.s32.totalorder %v9798_v19, 2 }
 0x1de   : > { %vm2596_vm14 = vcmp.eq.s32.totalorder %v9788_v13, 2  ;;  %vm2593_vm15 = vcmp.eq.s32.totalorder %v9788_v13, 0  ;;  %vm2592_vm0 = vcmp.lt.s32.totalorder %v9788_v13, 2 }
 0x1e8   : > { %v9784_v35 = vpop.eup %9056 }
 0x1e9   : > { %v9792_v7 = vpop.eup %9058 }
 0x1ea   : > { %v2594_v3 = vxor.u32 2147483648, %v9792_v7 }
 0x23f   : > { %v9720_v2 = vpop.f32.mrf.mxu0 }
 0x241   : > { %v9722_v28 = vpop.f32.mrf.mxu0 }
 0x242   : > { %v1321_v33 = vadd.f32 %v9722_v28, %v9801_v56 }
 0x244   : > { %v1329_v23 = vpop.f32.mrf.mxu0 }
 0x245   : > { %v1330_v32 = vadd.f32 %v1329_v23, %v9795_v5 }
 0x246   : > { %v1331_v36 = vpop.f32.mrf.mxu0 }
 0x247   : > { %v1332_v46 = vadd.f32 %v1331_v36, %v9795_v5  ;;  %v11544_v36 = vxor.u32 2147483648, %v9784_v35  ;;  %v1319_v5 = vadd.f32 %v9720_v2, %v9801_v56 }
 0x249   : > { %v9724_v4 = vpop.f32.mrf.mxu0  ;;  %v9726_v45 = vpop.f32.mrf.mxu1  ;;  %v2598_v23 = vsel %vm2596_vm14, %v11544_v36, %v9792_v7 }
 0x24a   : > { %v1341_v9 = vadd.f32 %v9724_v4, %v9786_v57  ;;  %v1464_v36 = vadd.f32 %v9726_v45, %v1319_v5 }
 0x24b   : > { %v9728_v6 = vpop.f32.mrf.mxu0  ;;  %v9730_v42 = vpop.f32.mrf.mxu1 }
 0x24c   : > { %v1466_v28 = vadd.f32 %v9730_v42, %v1321_v33 }
 0x24d   : > { %v9732_v63 = vpop.f32.mrf.mxu0 }
 0x24e   : > { %v1470_v40 = vpop.f32.mrf.mxu1 }
 0x24f   : > { %v9735_v60 = vpop.f32.mrf.mxu0  ;;  %v1471_v30 = vadd.f32 %v1470_v40, %v1330_v32  ;;  %v2595_v40 = vsel %vm2593_vm15, %v9784_v35, %v2594_v3 }
 0x250   : > { %v1472_v11 = vpop.f32.mrf.mxu1  ;;  %v1354_v5 = vadd.f32 %v9735_v60, %v9779_v31 }
 0x251   : > { %v9745_v51 = vpop.f32.mrf.mxu0  ;;  %v1473_v47 = vadd.f32 %v1472_v11, %v1332_v46  ;;  %v1343_v46 = vadd.f32 %v9728_v6, %v9786_v57  ;;  %v1352_v6 = vadd.f32 %v9732_v63, %v9779_v31 }
 0x252   : > { %v9747_v58 = vpop.f32.mrf.mxu1  ;;  %v1574_v45 = vadd.f32 %v9745_v51, %v1464_v36 }
 0x253   : > { %v9749_v1 = vpop.f32.mrf.mxu0  ;;  %v1478_v2 = vadd.f32 %v9747_v58, %v1341_v9 }
 0x254   : > { %v9754_v29 = vpop.f32.mrf.mxu1  ;;  %v1576_v42 = vadd.f32 %v9749_v1, %v1466_v28 }
 0x256   : > { %v9756_v59 = vpop.f32.mrf.mxu1  ;;  %v1581_v0 = vpop.f32.mrf.mxu0 }
 0x257   : > { %v1582_v56 = vadd.f32 %v1581_v0, %v1471_v30  ;;  %v1485_v33 = vadd.f32 %v9756_v59, %v1352_v6 }
 0x258   : > { %v9758_v53 = vpop.f32.mrf.mxu1  ;;  %v1583_v55 = vpop.f32.mrf.mxu0 }
 0x259   : > { %v1584_v11 = vadd.f32 %v1583_v55, %v1473_v47  ;;  %v1480_v47 = vadd.f32 %v9754_v29, %v1343_v46  ;;  %v1487_v29 = vadd.f32 %v9758_v53, %v1354_v5 }
 0x25a   : > { %v9762_v34 = vpop.f32.mrf.mxu0  ;;  %v9764_v8 = vpop.f32.mrf.mxu1 }
 0x25b   : > { %v1590_v30 = vadd.f32 %v9762_v34, %v1478_v2 }
 0x25c   : > { %v9766_v18 = vpop.f32.mrf.mxu0  ;;  %v9768_v39 = vpop.f32.mrf.mxu1 }
 0x25d   : > { %v1592_v9 = vadd.f32 %v9766_v18, %v1480_v47  ;;  %v1682_v63 = vadd.f32 %v9768_v39, %v1576_v42  ;;  %v2599_v39 = vsel %vm2592_vm0, %v2595_v40, %v2598_v23  ;;  %v11545_v23 = vxor.u32 2147483648, %v9784_v35 }
 0x25e   : > { %v9772_v16 = vpop.f32.mrf.mxu0 }
 0x25f   : > { %v1688_v38 = vpop.f32.mrf.mxu1  ;;  %v1598_v51 = vadd.f32 %v9772_v16, %v1485_v33 }
 0x260   : > { %v9777_v20 = vpop.f32.mrf.mxu0  ;;  %v1689_v58 = vadd.f32 %v1688_v38, %v1582_v56 }
 0x261   : > { %v1690_v24 = vpop.f32.mrf.mxu1  ;;  %v1600_v53 = vadd.f32 %v9777_v20, %v1487_v29 }
 0x262   : > { %v9781_v14 = vpop.f32.mrf.mxu0  ;;  %v1691_v55 = vadd.f32 %v1690_v24, %v1584_v11  ;;  %v1680_v24 = vadd.f32 %v9764_v8, %v1574_v45 }
 0x263   : > { %v1697_v21 = vpop.f32.mrf.mxu1 }
 0x264   : > { %v1804_v41 = vpop.f32.mrf.mxu0  ;;  %v1698_v1 = vadd.f32 %v1697_v21, %v1590_v30  ;;  %v1803_v59 = vadd.f32 %v9781_v14, %v1680_v24 }
 0x265   : > { %v1699_v22 = vpop.f32.mrf.mxu1  ;;  %v1805_v56 = vadd.f32 %v1804_v41, %v1682_v63 }
 0x266   : > { %v1809_v12 = vpop.f32.mrf.mxu0  ;;  %v1700_v34 = vadd.f32 %v1699_v22, %v1592_v9  ;;  %v2698_v22 = vsel %vm2696_vm4, %v9784_v35, %v2594_v3  ;;  %v9871_v35 = vand.u32 4294901760, %v9807_v15 }
 0x267   : > { %v1706_v27 = vpop.f32.mrf.mxu1  ;;  %v1810_v46 = vadd.f32 %v1809_v12, %v1689_v58 }
 0x268   : > { %v1811_v10 = vpop.f32.mrf.mxu0  ;;  %v1707_v8 = vadd.f32 %v1706_v27, %v1598_v51  ;;  %v2711_v51 = vrot.slane %v9681_v17, %v9324_v54 }
 0x269   : > { %v9804_v26 = vpop.f32.mrf.mxu1  ;;  %v1812_v57 = vadd.f32 %v1811_v10, %v1691_v55 }
 0x26a   : > { %v1816_v25 = vpop.f32.mrf.mxu0 }
 0x26b   : > { %v1903_v61 = vpop.f32.mrf.mxu1  ;;  %v1817_v11 = vadd.f32 %v1816_v25, %v1698_v1  ;;  %v1709_v25 = vadd.f32 %v9804_v26, %v1600_v53 }
 0x26c   : > { %v1818_v4 = vpop.f32.mrf.mxu0  ;;  %v1904_v10 = vadd.f32 %v1903_v61, %v1803_v59  ;;  %v2600_v61 = vsel %vm2589_vm5, nan, %v2599_v39 }
 0x26d   : > { %v1905_v32 = vpop.f32.mrf.mxu1  ;;  %v1819_v21 = vadd.f32 %v1818_v4, %v1700_v34  ;;  %v2701_v4 = vsel %vm2699_vm6, %v11545_v23, %v9792_v7  ;;  %v2716_v33 = vcombine.low %v2600_v61, %v2600_v61 }
 0x26e   : > { %v1823_v60 = vpop.f32.mrf.mxu0  ;;  %v1906_v12 = vadd.f32 %v1905_v32, %v1805_v56  ;;  %v1929_v26 = vmax.f32 %v1904_v10, 0.0  ;;  %v2702_v7 = vsel %vm2695_vm7, %v2698_v22, %v2701_v4  ;;  %v2021_v56 = vsub.f32 %v9807_v15, %v9871_v35 }
 0x26f   : > { %v1910_v0 = vpop.f32.mrf.mxu1  ;;  %v1824_v41 = vadd.f32 %v1823_v60, %v1707_v8  ;;  %v2723_v59 = vrot.slane %v2716_v33, %v9324_v54 }
 0x270   : > { %v1911_v18 = vadd.f32 %v1910_v0, %v1810_v46  ;;  %v1825_v2 = vpop.f32.mrf.mxu0  ;;  %v1930_v32 = vmax.f32 %v1906_v12, 0.0  ;;  %v9882_v1 = vand.u32 4294901760, %v1929_v26  ;;  %v2712_v12 = vcombine.high %v2711_v51, %v2711_v51 }
 0x271   : > { %v1912_v28 = vpop.f32.mrf.mxu1  ;;  %v1826_v40 = vadd.f32 %v1825_v2, %v1709_v25  ;;  %v9929_v22 = vand.u32 4294901760, %v2021_v56 }
 0x272   : > { %v1913_v38 = vadd.f32 %v1912_v28, %v1812_v57  ;;  %v1931_v57 = vmax.f32 %v1911_v18, 0.0  ;;  %v9875_v9 = vand.u32 4294901760, %v1930_v32  ;;  %v9915_v53 = vsub.f32 %v1929_v26, %v9882_v1 }
 0x273   : > { %v1917_v36 = vpop.f32.mrf.mxu1 }
 0x274   : > { %v1918_v6 = vadd.f32 %v1917_v36, %v1817_v11  ;;  %v1932_v13 = vmax.f32 %v1913_v38, 0.0  ;;  %v9868_v0 = vand.u32 4294901760, %v1931_v57  ;;  %v2703_v38 = vsel %vm2589_vm5, nan, %v2702_v7 }
 0x275   : > { %v1919_v16 = vpop.f32.mrf.mxu1  ;;  %v9906_v11 = vsub.f32 %v1930_v32, %v9875_v9 }
 0x276   : > { %v1920_v14 = vadd.f32 %v1919_v16, %v1819_v21  ;;  %v1933_v20 = vmax.f32 %v1918_v6, 0.0  ;;  %v9864_v5 = vand.u32 4294901760, %v1932_v13  ;;  %v9898_v34 = vsub.f32 %v1931_v57, %v9868_v0 }
 0x277   : > { %v1924_v27 = vpop.f32.mrf.mxu1  ;;  %v2724_v6 = vcombine.high %v2723_v59, %v2723_v59  ;;  %v2734_v16 = vrot.slane %v2703_v38, %v9324_v54 }
 0x278   : > { %v1934_v3 = vmax.f32 %v1920_v14, 0.0  ;;  %v1925_v47 = vadd.f32 %v1924_v27, %v1824_v41  ;;  %v9862_v42 = vand.u32 4294901760, %v1933_v20  ;;  %v9888_v60 = vsub.f32 %v1932_v13, %v9864_v5 }
 0x279   : > { %v1926_v55 = vpop.f32.mrf.mxu1  ;;  %v2085_v10 = vand.u32 4294901760, %v9898_v34  ;;  %v2091_v13 = vand.u32 4294901760, %v9906_v11  ;;  %v2097_v14 = vand.u32 4294901760, %v9915_v53  ;;  %v2739_v4 = vsel %vm540_vm1, %v2712_v12, %v2724_v6 }
 0x27a   : > { %v9866_v45 = vand.u32 4294901760, %v1934_v3  ;;  %v1935_v30 = vmax.f32 %v1925_v47, 0.0  ;;  %v1927_v58 = vadd.f32 %v1926_v55, %v1826_v40  ;;  %v9885_v46 = vsub.f32 %v1933_v20, %v9862_v42 }
 0x27b   : > { %v2079_v21 = vand.u32 4294901760, %v9888_v60  ;;  %v2086_v61 = vsub.f32 %v9898_v34, %v2085_v10  ;;  %v2735_v32 = vcombine.low %v2734_v16, %v2734_v16  ;;  %v2738_v47 = vsel %vm540_vm1, %v2711_v51, %v2723_v59 }
 0x27c   : > { %v9878_v63 = vsub.f32 %v1934_v3, %v9866_v45  ;;  %v9880_v29 = vand.u32 4294901760, %v1935_v30  ;;  %v1936_v24 = vmax.f32 %v1927_v58, 0.0  ;;  %v2073_v17 = vand.u32 4294901760, %v9885_v46 }
 0x27d   : > { %v2080_v27 = vsub.f32 %v9888_v60, %v2079_v21  ;;  %v2092_v3 = vsub.f32 %v9906_v11, %v2091_v13  ;;  %v2098_v26 = vsub.f32 %v9915_v53, %v2097_v14  ;;  %v2741_v58 = vsel %vm543_vm2, %v2739_v4, %v2734_v16 }
 0x27e   : > { %v9891_v19 = vsub.f32 %v1935_v30, %v9880_v29  ;;  %v9893_v28 = vand.u32 4294901760, %v1936_v24  ;;  %v2067_v39 = vand.u32 4294901760, %v9878_v63  ;;  %v2074_v57 = vsub.f32 %v9885_v46, %v2073_v17 }
 0x27f   : > { %v2081_v30 = vand.u32 4294901760, %v2080_v27  ;;  %v2087_v7 = vand.u32 4294901760, %v2086_v61  ;;  %v2740_v33 = vsel %vm543_vm2, %v2738_v47, %v2735_v32  ;;  %v2099_v51 = vand.u32 4294901760, %v2098_v26 }
 0x280   : > { %v2061_v18 = vand.u32 4294901760, %v9891_v19  ;;  %v9910_v36 = vsub.f32 %v1936_v24, %v9893_v28  ;;  %1970 = vmatprep.subr.mxu0 %v9893_v28  ;;  %v2068_v41 = vsub.f32 %v9878_v63, %v2067_v39  ;;  %v2075_v55 = vand.u32 4294901760, %v2074_v57 }
 0x281   : > { %1972 = vmatpush1.msra.mxu0 %v9880_v29  ;;  %v2093_v24 = vand.u32 4294901760, %v2092_v3  ;;  %v2746_v56 = vsel %vm579_vm3, %v2741_v58, 0  ;;  %v2743_v38 = vsel %vm579_vm3, %v2740_v33, 0 }
 0x282   : > { %1974 = vmatprep.subr.mxu0 %v9866_v45  ;;  %v2055_v8 = vand.u32 4294901760, %v9910_v36  ;;  %v2062_v2 = vsub.f32 %v9891_v19, %v2061_v18  ;;  %v2069_v40 = vand.u32 4294901760, %v2068_v41  ;;  %v2778_v59 = vand.u32 4294901760, %v2746_v56 }
 0x283   : > { %1976 = vmatpush1.msra.mxu0 %v9862_v42 }
 0x284   : > { %1978 = vmatprep.subr.mxu0 %v9864_v5  ;;  %v2056_v25 = vsub.f32 %v9910_v36, %v2055_v8  ;;  %v2063_v23 = vand.u32 4294901760, %v2062_v2  ;;  %v10061_v2 = vpop.permute.xlu0 %1939 }
 0x285   : > { %1980 = vmatpush1.msra.mxu0 %v9868_v0  ;;  %11556 = vst [vmem:[#allocation44_spill] sm:$0xff] %v10061_v2 }
 0x286   : > { %1982 = vmatprep.subr.mxu0 %v9875_v9  ;;  %v2057_v20 = vand.u32 4294901760, %v2056_v25 }
 0x287   : > { %1984 = vmatpush1.msra.mxu0 %v9882_v1 }
 0x288   : > { %2023 = vmatmul.mubr.f32.vlgmr.msra.gmra.mxu0 %v9929_v22  ;;  %2058 = vmatprep.subr.mxu1 %v2057_v20 }
 0x289   : > { %2167 = vmatprep.subr.mxu0 %v9910_v36  ;;  %2064 = vmatpush1.msra.mxu1 %v2063_v23  ;;  %v9971_v36 = vand.u32 4294901760, %v2743_v38 }
 0x28a   : > { %2170 = vmatpush1.msra.mxu0 %v9891_v19  ;;  %2070 = vmatprep.subr.mxu1 %v2069_v40 }
 0x28b   : > { %2173 = vmatprep.subr.mxu0 %v9878_v63  ;;  %2076 = vmatpush1.msra.mxu1 %v2075_v55 }
 0x28c   : > { %2176 = vmatpush1.msra.mxu0 %v9885_v46  ;;  %2082 = vmatprep.subr.mxu1 %v2081_v30 }
 0x28d   : > { %2179 = vmatprep.subr.mxu0 %v9888_v60  ;;  %2088 = vmatpush1.msra.mxu1 %v2087_v7 }
 0x28e   : > { %2182 = vmatpush1.msra.mxu0 %v9898_v34  ;;  %2094 = vmatprep.subr.mxu1 %v2093_v24  ;;  %v11552_v34 = vld [vmem:[#allocation15_spill] sm:$0xff] }
 0x28f   : > { %2185 = vmatprep.subr.mxu0 %v9906_v11  ;;  %2100 = vmatpush1.msra.mxu1 %v2099_v51  ;;  %v2890_v11 = vsub.f32 %v2746_v56, %v2778_v59 }
 0x290   : > { %2188 = vmatpush1.msra.mxu0 %v9915_v53  ;;  %2135 = vmatmul.mubr.f32.vlgmr.msra.gmra.mxu1 %v9790_v44  ;;  %v11555_v53 = vld [vmem:[#allocation17_spill] sm:$0xff] }
 0x291   : > { %2221 = vmatprep.mubr.f32.mxu0 %v11530_v48  ;;  %2255 = vmatprep.subr.mxu1 %v9893_v28  ;;  %v2891_v63 = vand.u32 4294901760, %v2890_v11 }
 0x292   : > { %2339 = vmatprep.subr.mxu0 %v2055_v8  ;;  %2224 = vmatmul.mubr.f32.vlgmr.msra.gmra.mxu0 %v9807_v15  ;;  %v2896_v8 = vsub.f32 %v2743_v38, %v9971_v36 }
 0x293   : > { %2257 = vmatpush1.msra.mxu1 %v9880_v29  ;;  %2343 = vmatpush1.msra.mxu0 %v2061_v18  ;;  %v2892_v60 = vsub.f32 %v2890_v11, %v2891_v63  ;;  %v11553_v18 = vld [vmem:[#allocation13_spill] sm:$0xff] }
 0x294   : > { %2259 = vmatprep.subr.mxu1 %v9866_v45  ;;  %2347 = vmatprep.subr.mxu0 %v2067_v39  ;;  %v2897_v46 = vand.u32 4294901760, %v2896_v8  ;;  %v11554_v39 = vld [vmem:[#allocation14_spill] sm:$0xff] }
 0x295   : > { %2261 = vmatpush1.msra.mxu1 %v9862_v42  ;;  %2351 = vmatpush1.msra.mxu0 %v2073_v17 }
 0x296   : > { %2263 = vmatprep.subr.mxu1 %v9864_v5  ;;  %2355 = vmatprep.subr.mxu0 %v2079_v21  ;;  %v2898_v19 = vsub.f32 %v2896_v8, %v2897_v46 }
 0x297   : > { %2265 = vmatpush1.msra.mxu1 %v9868_v0  ;;  %2359 = vmatpush1.msra.mxu0 %v2085_v10 }
 0x298   : > { %2267 = vmatprep.subr.mxu1 %v9875_v9  ;;  %2363 = vmatprep.subr.mxu0 %v2091_v13 }
 0x299   : > { %2269 = vmatpush1.msra.mxu1 %v9882_v1  ;;  %2302 = vmatprep.mubr.f32.mxu1 %v11530_v48 }
 0x29a   : > { %2367 = vmatpush1.msra.mxu0 %v2097_v14  ;;  %2400 = vmatprep.mubr.f32.mxu0 %v11530_v48 }
 0x29b   : > { %2306 = vmatmul.mubr.f32.vlgmr.msra.gmra.mxu1 %v9871_v35  ;;  %2402 = vmatmul.mubr.f32.vlgmr.msra.gmra.mxu0 %v9790_v44 }
 0x29c   : > { %2433 = vmatprep.subr.mxu1 %v9893_v28  ;;  %2779 = vmatprep.subr.mxu0 %v2778_v59  ;;  %v2893_v28 = vand.u32 4294901760, %v2892_v60 }
 0x29d   : > { %2435 = vmatpush1.msra.mxu1 %v9880_v29  ;;  %2781 = vmatpush1.msra.mxu0 %v9971_v36  ;;  %v2899_v29 = vand.u32 4294901760, %v2898_v19 }
 0x29e   : > { %2437 = vmatprep.subr.mxu1 %v9866_v45  ;;  %2814 = vmatprep.mubr.f32.mxu0 %v11530_v48  ;;  %v11548_v45 = vld [vmem:[#allocation10_spill] sm:$0xff] }
 0x29f   : > { %2439 = vmatpush1.msra.mxu1 %v9862_v42  ;;  %2820 = vmatmul.mubr.f32.vlgmr.msra.gmra.mxu0 %v9371_v37  ;;  %v11546_v42 = vld [vmem:[#allocation6_spill] sm:$0xff] }
 0x2a0   : > { %2441 = vmatprep.subr.mxu1 %v9864_v5  ;;  %2480 = vmatprep.mubr.f32.mxu1 %v11530_v48  ;;  %v11547_v5 = vld [vmem:[#allocation8_spill] sm:$0xff] }
 0x2a1   : > { %2443 = vmatpush1.msra.mxu1 %v9868_v0  ;;  %2825 = vmatprep.mubr.f32.mxu0 %v11530_v48  ;;  %v11549_v0 = vld [vmem:[#allocation12_spill] sm:$0xff] }
 0x2a2   : > { %2445 = vmatprep.subr.mxu1 %v9875_v9  ;;  %2994 = vmatprep.subr.mxu0 %v2890_v11  ;;  %v11550_v9 = vld [vmem:[#allocation11_spill] sm:$0xff] }
 0x2a3   : > { %2447 = vmatpush1.msra.mxu1 %v9882_v1  ;;  %2831 = vmatmul.mubr.f32.gmra.mxu0 %v9379_v43  ;;  %v11551_v1 = vld [vmem:[#allocation9_spill] sm:$0xff] }
 0x2a4   : > { %2482 = vmatmul.mubr.f32.vlgmr.msra.gmra.mxu1 %v9790_v44  ;;  %2894 = vmatprep.subr.mxu1 %v2893_v28 }
 0x2a5   : > { %2836 = vmatprep.mubr.f32.mxu0 %v11530_v48  ;;  %2900 = vmatpush1.msra.mxu1 %v2899_v29 }
 0x2a6   : > { %2933 = vmatprep.mubr.f32.mxu1 %v11530_v48  ;;  %2997 = vmatpush1.msra.mxu0 %v2896_v8 }
 0x2a7   : > { %2842 = vmatmul.mubr.f32.gmra.mxu0 %v9385_v50  ;;  %3094 = vmatprep.subr.mxu1 %v2778_v59 }
 0x2a8   : > { %2935 = vmatmul.mubr.f32.vlgmr.msra.gmra.mxu1 %v9318_v49  ;;  %2847 = vmatprep.mubr.f32.mxu0 %v11530_v48 }
 0x2a9   : > { %2940 = vmatprep.mubr.f32.mxu1 %v11530_v48  ;;  %3096 = vmatpush1.msra.mxu1 %v9971_v36 }
 0x2aa   : > { %3199 = vmatprep.subr.mxu0 %v2891_v63  ;;  %3296 = vmatprep.subr.mxu1 %v2778_v59 }
 0x2ab   : > { %2853 = vmatmul.mubr.f32.gmra.mxu0 %v9392_v52 }
 0x2ac   : > { %2942 = vmatmul.mubr.f32.gmra.mxu1 %v9331_v62  ;;  %3030 = vmatprep.mubr.f32.mxu0 %v11530_v48 }
 0x2ad   : > { %2947 = vmatprep.mubr.f32.mxu1 %v11530_v48 }
 0x2af   : > { %3033 = vmatmul.mubr.f32.vlgmr.msra.gmra.mxu0 %v11546_v42 }
 0x2b0   : > { %2949 = vmatmul.mubr.f32.gmra.mxu1 %v11547_v5  ;;  %3038 = vmatprep.mubr.f32.mxu0 %v11530_v48 }
 0x2b1   : > { %2954 = vmatprep.mubr.f32.mxu1 %v11530_v48  ;;  %3203 = vmatpush1.msra.mxu0 %v2897_v46 }
 0x2b3   : > { %3041 = vmatmul.mubr.f32.gmra.mxu0 %v11548_v45 }
 0x2b4   : > { %2956 = vmatmul.mubr.f32.gmra.mxu1 %v11549_v0  ;;  %3046 = vmatprep.mubr.f32.mxu0 %v11530_v48 }
 0x2b5   : > { %3129 = vmatprep.mubr.f32.mxu1 %v11530_v48 }
 0x2b7   : > { %3049 = vmatmul.mubr.f32.gmra.mxu0 %v11550_v9 }
 0x2b8   : > { %3133 = vmatmul.mubr.f32.vlgmr.msra.gmra.mxu1 %v11551_v1  ;;  %3054 = vmatprep.mubr.f32.mxu0 %v11530_v48 }
 0x2b9   : > { %3138 = vmatprep.mubr.f32.mxu1 %v11530_v48  ;;  %3298 = vmatpush1.msra.mxu1 %v9971_v36 }
 0x2bb   : > { %3057 = vmatmul.mubr.f32.gmra.mxu0 %v11552_v34 }
 0x2bc   : > { %3142 = vmatmul.mubr.f32.gmra.mxu1 %v11553_v18  ;;  %3236 = vmatprep.mubr.f32.mxu0 %v11530_v48 }
 0x2bd   : > { %3147 = vmatprep.mubr.f32.mxu1 %v11530_v48 }
 0x2bf   : > { %3238 = vmatmul.mubr.f32.vlgmr.msra.gmra.mxu0 %v9318_v49 }
 0x2c0   : > { %3151 = vmatmul.mubr.f32.gmra.mxu1 %v11554_v39  ;;  %3243 = vmatprep.mubr.f32.mxu0 %v11530_v48  ;;  %v11559_v39 = vld [vmem:[#allocation23_spill] sm:$0xff] }
 0x2c1   : > { %3156 = vmatprep.mubr.f32.mxu1 %v11530_v48 }
 0x2c3   : > { %3245 = vmatmul.mubr.f32.gmra.mxu0 %v9331_v62 }
 0x2c4   : > { %3160 = vmatmul.mubr.f32.gmra.mxu1 %v11555_v53  ;;  %3250 = vmatprep.mubr.f32.mxu0 %v11530_v48  ;;  %v11558_v53 = vld [vmem:[#allocation24_spill] sm:$0xff] }
 0x2c5   : > { %3331 = vmatprep.mubr.f32.mxu1 %v11530_v48 }
 0x2c7   : > { %3252 = vmatmul.mubr.f32.gmra.mxu0 %v11547_v5 }
 0x2c8   : > { %3333 = vmatmul.mubr.f32.vlgmr.msra.gmra.mxu1 %v9318_v49  ;;  %3257 = vmatprep.mubr.f32.mxu0 %v11530_v48  ;;  %v11560_v49 = vld [vmem:[#allocation21_spill] sm:$0xff] }
 0x2c9   : > { %3338 = vmatprep.mubr.f32.mxu1 %v11530_v48 }
 0x2cb   : > { %3259 = vmatmul.mubr.f32.gmra.mxu0 %v11549_v0 }
 0x2cc   : > { %3340 = vmatmul.mubr.f32.gmra.mxu1 %v9331_v62  ;;  %3440 = vmatprep.mubr.f32.mxu0 %v11530_v48 }
 0x2cd   : > { %3345 = vmatprep.mubr.f32.mxu1 %v11530_v48 }
 0x2d0   : > { %3347 = vmatmul.mubr.f32.gmra.mxu1 %v11547_v5 }
 0x2d1   : > { %3352 = vmatprep.mubr.f32.mxu1 %v11530_v48 }
 0x2d4   : > { %3354 = vmatmul.mubr.f32.gmra.mxu1 %v11549_v0 }
 0x2d5   : > { %3589 = vmatprep.mubr.f32.mxu1 %v11530_v48 }
 0x348   : > { %v2024_v17 = vpop.f32.mrf.mxu0 }
 0x349   : > { %v2025_v6 = vadd.f32 %v2024_v17, %v10061_v2 }
 0x34a   : > { %v2026_v21 = vpop.f32.mrf.mxu0 }
 0x34b   : > { %v2027_v25 = vadd.f32 %v2026_v21, %v10061_v2 }
 0x350   : > { %v2136_v12 = vpop.f32.mrf.mxu1 }
 0x351   : > { %v2137_v41 = vadd.f32 %v2136_v12, %v2025_v6 }
 0x352   : > { %v2225_v10 = vpop.f32.mrf.mxu0  ;;  %v2138_v16 = vpop.f32.mrf.mxu1 }
 0x353   : > { %v2139_v14 = vadd.f32 %v2138_v16, %v2027_v25  ;;  %v2226_v27 = vadd.f32 %v2225_v10, %v2137_v41 }
 0x354   : > { %v2227_v13 = vpop.f32.mrf.mxu0 }
 0x355   : > { %v2228_v4 = vadd.f32 %v2227_v13, %v2139_v14 }
 0x35b   : > { %v2307_v57 = vpop.f32.mrf.mxu1  ;;  %v2403_v20 = vpop.f32.mrf.mxu0 }
 0x35c   : > { %v2308_v32 = vadd.f32 %v2307_v57, %v2226_v27 }
 0x35d   : > { %v2405_v61 = vpop.f32.mrf.mxu0  ;;  %v2309_v23 = vpop.f32.mrf.mxu1 }
 0x35e   : > { %v2310_v3 = vadd.f32 %v2309_v23, %v2228_v4  ;;  %v2404_v26 = vadd.f32 %v2403_v20, %v2308_v32 }
 0x35f   : > { %v2821_v40 = vpop.f32.mrf.mxu0 }
 0x360   : > { %v2406_v58 = vadd.f32 %v2405_v61, %v2310_v3  ;;  %v2822_v45 = vadd.f32 %v2821_v40, %v11558_v53 }
 0x361   : > { %v2823_v47 = vpop.f32.mrf.mxu0 }
 0x363   : > { %v2832_v55 = vpop.f32.mrf.mxu0 }
 0x364   : > { %v2483_v30 = vpop.f32.mrf.mxu1 }
 0x365   : > { %v2484_v7 = vadd.f32 %v2483_v30, %v2404_v26  ;;  %v2834_v33 = vpop.f32.mrf.mxu0 }
 0x366   : > { %v2485_v24 = vpop.f32.mrf.mxu1 }
 0x367   : > { %v2486_v51 = vadd.f32 %v2485_v24, %v2406_v58  ;;  %v2843_v56 = vpop.f32.mrf.mxu0  ;;  %9060 = vtanh.f32 %v2484_v7  ;;  %v11557_v24 = vld [vmem:[#allocation22_spill] sm:$0xff] }
 0x368   : > { %v2936_v38 = vpop.f32.mrf.mxu1  ;;  %v2844_v18 = vadd.f32 %v2843_v56, %v11559_v39 }
 0x369   : > { %9062 = vtanh.f32 %v2486_v51  ;;  %v2845_v59 = vpop.f32.mrf.mxu0  ;;  %v2835_v51 = vadd.f32 %v2834_v33, %v11557_v24  ;;  %v2937_v43 = vadd.f32 %v2936_v38, %v2822_v45 }
 0x36a   : > { %v2938_v36 = vpop.f32.mrf.mxu1  ;;  %v2846_v9 = vadd.f32 %v2845_v59, %v11559_v39 }
 0x36b   : > { %v2854_v11 = vpop.f32.mrf.mxu0 }
 0x36c   : > { %v2943_v8 = vpop.f32.mrf.mxu1  ;;  %v2855_v50 = vadd.f32 %v2854_v11, %v11560_v49 }
 0x36d   : > { %v2856_v63 = vpop.f32.mrf.mxu0 }
 0x36e   : > { %v2945_v46 = vpop.f32.mrf.mxu1 }
 0x36f   : > { %v3034_v60 = vpop.f32.mrf.mxu0  ;;  %v2946_v34 = vadd.f32 %v2945_v46, %v2835_v51  ;;  %v2857_v51 = vadd.f32 %v2856_v63, %v11560_v49 }
 0x370   : > { %v2950_v19 = vpop.f32.mrf.mxu1  ;;  %v3035_v40 = vadd.f32 %v3034_v60, %v2937_v43 }
 0x371   : > { %v3036_v28 = vpop.f32.mrf.mxu0  ;;  %v2951_v42 = vadd.f32 %v2950_v19, %v2844_v18 }
 0x372   : > { %v2952_v29 = vpop.f32.mrf.mxu1 }
 0x373   : > { %v3042_v17 = vpop.f32.mrf.mxu0 }
 0x374   : > { %v2957_v21 = vpop.f32.mrf.mxu1  ;;  %v9061_v12 = vpop.eup %9060 }
 0x375   : > { %v3044_v10 = vpop.f32.mrf.mxu0  ;;  %v2958_v59 = vadd.f32 %v2957_v21, %v2855_v50 }
 0x376   : > { %v9063_v6 = vpop.eup %9062  ;;  %v2959_v16 = vpop.f32.mrf.mxu1  ;;  %v3045_v62 = vadd.f32 %v3044_v10, %v2946_v34 }
 0x377   : > { %v3050_v25 = vpop.f32.mrf.mxu0  ;;  %v2492_v41 = vcombine.low %v9061_v12, %v9063_v6  ;;  %v2833_v6 = vadd.f32 %v2832_v55, %v11557_v24  ;;  %v2953_v55 = vadd.f32 %v2952_v29, %v2846_v9 }
 0x378   : > { %v3134_v13 = vpop.f32.mrf.mxu1  ;;  %v3051_v37 = vadd.f32 %v3050_v25, %v2951_v42 }
 0x379   : > { %v3052_v14 = vpop.f32.mrf.mxu0  ;;  %2494 = vst [vmem:[%s10068_s16] sm:$0x77] %v2492_v41  ;;  %v2824_v41 = vadd.f32 %v2823_v47, %v11558_v53  ;;  %v2944_v0 = vadd.f32 %v2943_v8, %v2833_v6  ;;  %v3135_v45 = vadd.f32 %v3134_v13, %v3035_v40 }
 0x37a   : > { %v3136_v57 = vpop.f32.mrf.mxu1  ;;  %v3053_v8 = vadd.f32 %v3052_v14, %v2953_v55 }
 0x37b   : > { %v3058_v20 = vpop.f32.mrf.mxu0  ;;  %v2939_v5 = vadd.f32 %v2938_v36, %v2824_v41  ;;  %v3043_v24 = vadd.f32 %v3042_v17, %v2944_v0  ;;  %v2960_v41 = vadd.f32 %v2959_v16, %v2857_v51 }
 0x37c   : > { %v3143_v27 = vpop.f32.mrf.mxu1  ;;  %v3059_v11 = vadd.f32 %v3058_v20, %v2958_v59 }
 0x37d   : > { %v3060_v61 = vpop.f32.mrf.mxu0  ;;  %v3037_v47 = vadd.f32 %v3036_v28, %v2939_v5  ;;  %v3144_v6 = vadd.f32 %v3143_v27, %v3043_v24 }
 0x37e   : > { %v3145_v23 = vpop.f32.mrf.mxu1  ;;  %v3061_v28 = vadd.f32 %v3060_v61, %v2960_v41 }
 0x37f   : > { %v3239_v4 = vpop.f32.mrf.mxu0  ;;  %v3146_v56 = vadd.f32 %v3145_v23, %v3045_v62  ;;  %v3137_v36 = vadd.f32 %v3136_v57, %v3037_v47 }
 0x380   : > { %v3152_v32 = vpop.f32.mrf.mxu1  ;;  %v3240_v17 = vadd.f32 %v3239_v4, %v3135_v45 }
 0x381   : > { %v3241_v3 = vpop.f32.mrf.mxu0  ;;  %v3153_v18 = vadd.f32 %v3152_v32, %v3051_v37 }
 0x382   : > { %v3154_v26 = vpop.f32.mrf.mxu1  ;;  %v3242_v5 = vadd.f32 %v3241_v3, %v3137_v36 }
 0x383   : > { %v3246_v30 = vpop.f32.mrf.mxu0  ;;  %v3155_v9 = vadd.f32 %v3154_v26, %v3053_v8 }
 0x384   : > { %v3161_v58 = vpop.f32.mrf.mxu1  ;;  %v3247_v0 = vadd.f32 %v3246_v30, %v3144_v6 }
 0x385   : > { %v3248_v7 = vpop.f32.mrf.mxu0  ;;  %v3162_v63 = vadd.f32 %v3161_v58, %v3059_v11 }
 0x386   : > { %v3163_v12 = vpop.f32.mrf.mxu1  ;;  %v3249_v34 = vadd.f32 %v3248_v7, %v3146_v56 }
 0x387   : > { %v3253_v2 = vpop.f32.mrf.mxu0  ;;  %v3164_v25 = vadd.f32 %v3163_v12, %v3061_v28 }
 0x388   : > { %v3334_v1 = vpop.f32.mrf.mxu1  ;;  %v3254_v42 = vadd.f32 %v3253_v2, %v3153_v18 }
 0x389   : > { %v3255_v52 = vpop.f32.mrf.mxu0  ;;  %v3335_v57 = vadd.f32 %v3334_v1, %v3240_v17  ;;  %v11561_v17 = vld [vmem:[#allocation34_spill] sm:$0xff] }
 0x38a   : > { %v3336_v33 = vpop.f32.mrf.mxu1  ;;  %v3256_v50 = vadd.f32 %v3255_v52, %v3155_v9 }
 0x38b   : > { %v3260_v19 = vpop.f32.mrf.mxu0  ;;  %v3337_v43 = vadd.f32 %v3336_v33, %v3242_v5  ;;  %v3360_v7 = vmax.f32 %v3335_v57, 0.0 }
 0x38c   : > { %v3341_v46 = vpop.f32.mrf.mxu1  ;;  %v3261_v14 = vadd.f32 %v3260_v19, %v3162_v63 }
 0x38d   : > { %v3342_v29 = vadd.f32 %v3341_v46, %v3247_v0  ;;  %v3262_v60 = vpop.f32.mrf.mxu0  ;;  %v3361_v61 = vmax.f32 %v3337_v43, 0.0  ;;  %v10102_v59 = vand.u32 4294901760, %v3360_v7 }
 0x38e   : > { %v3343_v10 = vpop.f32.mrf.mxu1  ;;  %v3263_v2 = vadd.f32 %v3262_v60, %v3164_v25 }
 0x38f   : > { %v3344_v62 = vadd.f32 %v3343_v10, %v3249_v34  ;;  %v3362_v23 = vmax.f32 %v3342_v29, 0.0  ;;  %v10092_v47 = vand.u32 4294901760, %v3361_v61  ;;  %v10121_v41 = vsub.f32 %v3360_v7, %v10102_v59  ;;  %v11573_v7 = vld [vmem:[#allocation36_spill] sm:$0xff] }
 0x390   : > { %v3348_v38 = vpop.f32.mrf.mxu1 }
 0x391   : > { %v3349_v37 = vadd.f32 %v3348_v38, %v3254_v42  ;;  %v3363_v20 = vmax.f32 %v3344_v62, 0.0  ;;  %v10085_v12 = vand.u32 4294901760, %v3362_v23  ;;  %v10115_v34 = vsub.f32 %v3361_v61, %v10092_v47  ;;  %v11569_v61 = vld [vmem:[#allocation33_spill] sm:$0xff] }
 0x392   : > { %v3350_v21 = vpop.f32.mrf.mxu1  ;;  %v3553_v28 = vand.u32 4294901760, %v10121_v41 }
 0x393   : > { %v3351_v16 = vadd.f32 %v3350_v21, %v3256_v50  ;;  %v3364_v27 = vmax.f32 %v3349_v37, 0.0  ;;  %v10083_v24 = vand.u32 4294901760, %v3363_v20  ;;  %v10108_v6 = vsub.f32 %v3362_v23, %v10085_v12  ;;  %v11565_v23 = vld [vmem:[#allocation40_spill] sm:$0xff] }
 0x394   : > { %v3355_v13 = vpop.f32.mrf.mxu1  ;;  %v3547_v42 = vand.u32 4294901760, %v10115_v34  ;;  %v3554_v21 = vsub.f32 %v10121_v41, %v3553_v28 }
 0x395   : > { %v3365_v32 = vmax.f32 %v3351_v16, 0.0  ;;  %v3356_v3 = vadd.f32 %v3355_v13, %v3261_v14  ;;  %v10079_v52 = vand.u32 4294901760, %v3364_v27  ;;  %v10105_v8 = vsub.f32 %v3363_v20, %v10083_v24  ;;  %v11562_v16 = vld [vmem:[#allocation37_spill] sm:$0xff] }
 0x396   : > { %v3357_v26 = vpop.f32.mrf.mxu1  ;;  %v3541_v0 = vand.u32 4294901760, %v10108_v6  ;;  %v3548_v60 = vsub.f32 %v10115_v34, %v3547_v42  ;;  %v3555_v20 = vand.u32 4294901760, %v3554_v21  ;;  %v11564_v13 = vld [vmem:[#allocation25_spill] sm:$0xff] }
 0x397   : > { %v10081_v4 = vand.u32 4294901760, %v3365_v32  ;;  %v3366_v30 = vmax.f32 %v3356_v3, 0.0  ;;  %v3358_v58 = vadd.f32 %v3357_v26, %v3263_v2  ;;  %v10095_v56 = vsub.f32 %v3364_v27, %v10079_v52  ;;  %v11563_v27 = vld [vmem:[#allocation39_spill] sm:$0xff]  ;;  %v11568_v3 = vld [vmem:[#allocation30_spill] sm:$0xff]  ;;  %v11570_v26 = vld [vmem:[#allocation29_spill] sm:$0xff] }
 0x398   : > { %v3535_v9 = vand.u32 4294901760, %v10105_v8  ;;  %v3542_v29 = vsub.f32 %v10108_v6, %v3541_v0  ;;  %v3549_v57 = vand.u32 4294901760, %v3548_v60  ;;  %v11566_v2 = vld [vmem:[#allocation27_spill] sm:$0xff] }
 0x399   : > { %v10088_v1 = vsub.f32 %v3365_v32, %v10081_v4  ;;  %v10090_v33 = vand.u32 4294901760, %v3366_v30  ;;  %v3367_v55 = vmax.f32 %v3358_v58, 0.0  ;;  %v3529_v19 = vand.u32 4294901760, %v10095_v56  ;;  %v11567_v32 = vld [vmem:[#allocation26_spill] sm:$0xff]  ;;  %v11572_v58 = vld [vmem:[#allocation28_spill] sm:$0xff] }
 0x39a   : > { %v3536_v50 = vsub.f32 %v10105_v8, %v3535_v9  ;;  %v3543_v14 = vand.u32 4294901760, %v3542_v29 }
 0x39b   : > { %v10098_v46 = vsub.f32 %v3366_v30, %v10090_v33  ;;  %v10100_v51 = vand.u32 4294901760, %v3367_v55  ;;  %v3523_v18 = vand.u32 4294901760, %v10088_v1  ;;  %v3530_v62 = vsub.f32 %v10095_v56, %v3529_v19  ;;  %v11571_v30 = vld [vmem:[#allocation32_spill] sm:$0xff] }
 0x39c   : > { %v3537_v25 = vand.u32 4294901760, %v3536_v50 }
 0x39d   : > { %v3517_v40 = vand.u32 4294901760, %v10098_v46  ;;  %v3510_v36 = vsub.f32 %v3367_v55, %v10100_v51  ;;  %3393 = vmatprep.subr.mxu0 %v10100_v51  ;;  %v3524_v5 = vsub.f32 %v10088_v1, %v3523_v18  ;;  %v3531_v37 = vand.u32 4294901760, %v3530_v62 }
 0x39e   : > { %3395 = vmatpush1.msra.mxu0 %v10090_v33 }
 0x39f   : > { %3397 = vmatprep.subr.mxu0 %v10081_v4  ;;  %v3511_v10 = vand.u32 4294901760, %v3510_v36  ;;  %v3518_v11 = vsub.f32 %v10098_v46, %v3517_v40  ;;  %v3525_v43 = vand.u32 4294901760, %v3524_v5  ;;  %v11582_v5 = vmov 2131351028  }
 0x3a0   : > { %3399 = vmatpush1.msra.mxu0 %v10079_v52 }
 0x3a1   : > { %3401 = vmatprep.subr.mxu0 %v10083_v24  ;;  %v3512_v45 = vsub.f32 %v3510_v36, %v3511_v10  ;;  %v3519_v63 = vand.u32 4294901760, %v3518_v11 }
 0x3a2   : > { %3403 = vmatpush1.msra.mxu0 %v10085_v12 }
 0x3a3   : > { %3405 = vmatprep.subr.mxu0 %v10092_v47  ;;  %v3513_v38 = vand.u32 4294901760, %v3512_v45 }
 0x3a4   : > { %3407 = vmatpush1.msra.mxu0 %v10102_v59 }
 0x3a5   : > { %3446 = vmatmul.mubr.f32.vlgmr.msra.gmra.mxu0 %v11561_v17  ;;  %3514 = vmatprep.subr.mxu1 %v3513_v38 }
 0x3a6   : > { %3644 = vmatprep.subr.mxu0 %v3510_v36  ;;  %3520 = vmatpush1.msra.mxu1 %v3519_v63 }
 0x3a7   : > { %3647 = vmatpush1.msra.mxu0 %v10098_v46  ;;  %3526 = vmatprep.subr.mxu1 %v3525_v43 }
 0x3a8   : > { %3650 = vmatprep.subr.mxu0 %v10088_v1  ;;  %3451 = vmatprep.mubr.f32.mxu0 %v11530_v48  ;;  %v11574_v1 = vld [vmem:[#allocation31_spill] sm:$0xff] }
 0x3a9   : > { %3532 = vmatpush1.msra.mxu1 %v3531_v37  ;;  %3653 = vmatpush1.msra.mxu0 %v10095_v56 }
 0x3aa   : > { %3457 = vmatmul.mubr.f32.gmra.mxu0 %v11562_v16  ;;  %3538 = vmatprep.subr.mxu1 %v3537_v25 }
 0x3ab   : > { %3656 = vmatprep.subr.mxu0 %v10105_v8  ;;  %3544 = vmatpush1.msra.mxu1 %v3543_v14 }
 0x3ac   : > { %3659 = vmatpush1.msra.mxu0 %v10108_v6  ;;  %3550 = vmatprep.subr.mxu1 %v3549_v57  ;;  %v11578_v6 = vmov 920167782  }
 0x3ad   : > { %3662 = vmatprep.subr.mxu0 %v10115_v34  ;;  %3462 = vmatprep.mubr.f32.mxu0 %v11530_v48 }
 0x3ae   : > { %3556 = vmatpush1.msra.mxu1 %v3555_v20  ;;  %3665 = vmatpush1.msra.mxu0 %v10121_v41  ;;  %v11580_v41 = vmov 683565275  }
 0x3af   : > { %3468 = vmatmul.mubr.f32.gmra.mxu0 %v11563_v27  ;;  %3591 = vmatmul.mubr.f32.vlgmr.msra.gmra.mxu1 %v11564_v13 }
 0x3b0   : > { %3756 = vmatprep.subr.mxu1 %v10100_v51  ;;  %3867 = vmatprep.subr.mxu0 %v3511_v10 }
 0x3b1   : > { %3758 = vmatpush1.msra.mxu1 %v10090_v33  ;;  %3473 = vmatprep.mubr.f32.mxu0 %v11530_v48 }
 0x3b2   : > { %3760 = vmatprep.subr.mxu1 %v10081_v4  ;;  %3596 = vmatprep.mubr.f32.mxu1 %v11530_v48 }
 0x3b3   : > { %3762 = vmatpush1.msra.mxu1 %v10079_v52  ;;  %3479 = vmatmul.mubr.f32.gmra.mxu0 %v11565_v23 }
 0x3b4   : > { %3598 = vmatmul.mubr.f32.gmra.mxu1 %v11566_v2  ;;  %3764 = vmatprep.subr.mxu1 %v10083_v24 }
 0x3b5   : > { %3766 = vmatpush1.msra.mxu1 %v10085_v12  ;;  %3603 = vmatprep.mubr.f32.mxu1 %v11530_v48 }
 0x3b6   : > { %3768 = vmatprep.subr.mxu1 %v10092_v47  ;;  %3698 = vmatprep.mubr.f32.mxu0 %v11530_v48 }
 0x3b7   : > { %3770 = vmatpush1.msra.mxu1 %v10102_v59  ;;  %3701 = vmatmul.mubr.f32.vlgmr.msra.gmra.mxu0 %v11567_v32  ;;  %v11586_v32 = vld [vmem:[#allocation43_spill] sm:$0xff] }
 0x3b8   : > { %3605 = vmatmul.mubr.f32.gmra.mxu1 %v11568_v3  ;;  %3871 = vmatpush1.msra.mxu0 %v3517_v40 }
 0x3b9   : > { %3982 = vmatprep.subr.mxu1 %v10100_v51  ;;  %3875 = vmatprep.subr.mxu0 %v3523_v18 }
 0x3ba   : > { %3879 = vmatpush1.msra.mxu0 %v3529_v19  ;;  %3610 = vmatprep.mubr.f32.mxu1 %v11530_v48  ;;  %v11579_v19 = vmov 1326507024  }
 0x3bb   : > { %3706 = vmatprep.mubr.f32.mxu0 %v11530_v48  ;;  %3883 = vmatprep.subr.mxu0 %v3535_v9  ;;  %v11581_v9 = vmov 2475754826  }
 0x3bc   : > { %3612 = vmatmul.mubr.f32.gmra.mxu1 %v11569_v61  ;;  %3709 = vmatmul.mubr.f32.gmra.mxu0 %v11570_v26 }
 0x3bd   : > { %3887 = vmatpush1.msra.mxu0 %v3541_v0  ;;  %3714 = vmatprep.mubr.f32.mxu0 %v11530_v48 }
 0x3be   : > { %3891 = vmatprep.subr.mxu0 %v3547_v42  ;;  %3803 = vmatprep.mubr.f32.mxu1 %v11530_v48 }
 0x3bf   : > { %3895 = vmatpush1.msra.mxu0 %v3553_v28 }
 0x3c0   : > { %3717 = vmatmul.mubr.f32.gmra.mxu0 %v11571_v30  ;;  %3807 = vmatmul.mubr.f32.vlgmr.msra.gmra.mxu1 %v11572_v58  ;;  %v11585_v58 = vld [vmem:[#allocation42_spill] sm:$0xff] }
 0x3c1   : > { %3984 = vmatpush1.msra.mxu1 %v10090_v33  ;;  %3722 = vmatprep.mubr.f32.mxu0 %v11530_v48 }
 0x3c2   : > { %3986 = vmatprep.subr.mxu1 %v10081_v4  ;;  %3812 = vmatprep.mubr.f32.mxu1 %v11530_v48  ;;  %v11575_v4 = vld [vmem:[#allocation35_spill] sm:$0xff] }
 0x3c3   : > { %3988 = vmatpush1.msra.mxu1 %v10079_v52  ;;  %v11576_v52 = vld [vmem:[#allocation38_spill] sm:$0xff] }
 0x3c4   : > { %3990 = vmatprep.subr.mxu1 %v10083_v24  ;;  %3725 = vmatmul.mubr.f32.gmra.mxu0 %v11573_v7  ;;  %v10239_v24 = vld [vmem:[%s9250_s17 + $0x8] sm:$0xf] }
 0x3c5   : > { %3816 = vmatmul.mubr.f32.gmra.mxu1 %v11574_v1  ;;  %3928 = vmatprep.mubr.f32.mxu0 %v11530_v48  ;;  %v4619_v36 = vand.u32 2147483647, %v10239_v24  ;;  %vm4621_vm15 = vcmp.lt.s32.totalorder %v10239_v24, 0 }
 0x3c6   : > { %3992 = vmatpush1.msra.mxu1 %v10085_v12  ;;  %3821 = vmatprep.mubr.f32.mxu1 %v11530_v48  ;;  %v4622_v12 = vand.u32 2139095040, %v10239_v24 }
 0x3c7   : > { %3994 = vmatprep.subr.mxu1 %v10092_v47  ;;  %v4626_v63 = vand.u32 8388607, %v4619_v36  ;;  %vm10289_vm0 = vcmp.le.f32.partialorder %v4619_v36, 0.7853982 }
 0x3c8   : > { %3996 = vmatpush1.msra.mxu1 %v10102_v59  ;;  %3930 = vmatmul.mubr.f32.vlgmr.msra.gmra.mxu0 %v11564_v13  ;;  %v4623_v33 = vshrl.u32 %v4622_v12, 23  ;;  %v11577_v59 = vmov 2102212464  }
 0x3c9   : > { %3825 = vmatmul.mubr.f32.gmra.mxu1 %v11575_v4  ;;  %3935 = vmatprep.mubr.f32.mxu0 %v11530_v48  ;;  %v4627_v21 = vor.u32 8388608, %v4626_v63 }
 0x3ca   : > { %3830 = vmatprep.mubr.f32.mxu1 %v11530_v48  ;;  %v8961_v55 = vadd.s32 4294967169, %v4623_v33 }
 0x3cb   : > { %v4667_v33 = vshll.u32 %v4627_v21, 8 }
 0x3cc   : > { %3937 = vmatmul.mubr.f32.gmra.mxu0 %v11566_v2  ;;  %v4629_v47 = vadd.s32 1, %v8961_v55 }
 0x3cd   : > { %3834 = vmatmul.mubr.f32.gmra.mxu1 %v11576_v52  ;;  %3942 = vmatprep.mubr.f32.mxu0 %v11530_v48 }
 0x3ce   : > { %4029 = vmatprep.mubr.f32.mxu1 %v11530_v48  ;;  %vm4630_vm8 = vcmp.gt.s32.totalorder %v4629_v47, 0 }
 0x3cf   : > { %v4631_v56 = vsel %vm4630_vm8, %v4629_v47, 0  ;;  %vm4711_vm8 = vweird.f32 %v10239_v24 }
 0x3d0   : > { %3944 = vmatmul.mubr.f32.gmra.mxu0 %v11568_v3  ;;  %v4633_v46 = vand.u32 31, %v4631_v56  ;;  %v4632_v18 = vshrl.u32 %v4631_v56, 5 }
 0x3d1   : > { %4031 = vmatmul.mubr.f32.vlgmr.msra.gmra.mxu1 %v11564_v13  ;;  %3949 = vmatprep.mubr.f32.mxu0 %v11530_v48 }
 0x3d2   : > { %4036 = vmatprep.mubr.f32.mxu1 %v11530_v48  ;;  %v4634_v51 = vsub.s32 32, %v4633_v46  ;;  %v4645_v8 = vshll.u32 %v11577_v59, %v4633_v46  ;;  %v4648_v34 = vshll.u32 %v11578_v6, %v4633_v46  ;;  %v4636_v11 = vshll.u32 %v11580_v41, %v4633_v46 }
 0x3d3   : > { %v4639_v45 = vshll.u32 %v11581_v9, %v4633_v46  ;;  %v4642_v62 = vshll.u32 %v11582_v5, %v4633_v46  ;;  %vm4654_vm9 = vcmp.lt.s32.totalorder %v4632_v18, 4  ;;  %vm4651_vm10 = vcmp.lt.s32.totalorder %v4632_v18, 1 }
 0x3d4   : > { %3951 = vmatmul.mubr.f32.gmra.mxu0 %v11569_v61  ;;  %v4646_v40 = vshrl.u32 %v11578_v6, %v4634_v51  ;;  %v4649_v10 = vshrl.u32 %v11579_v19, %v4634_v51  ;;  %v4637_v0 = vshrl.u32 %v11581_v9, %v4634_v51  ;;  %v4640_v42 = vshrl.u32 %v11582_v5, %v4634_v51 }
 0x3d5   : > { %4038 = vmatmul.mubr.f32.gmra.mxu1 %v11566_v2  ;;  %4138 = vmatprep.mubr.f32.mxu0 %v11530_v48  ;;  %v4643_v38 = vshrl.u32 %v11577_v59, %v4634_v51  ;;  %vm4653_vm11 = vcmp.lt.s32.totalorder %v4632_v18, 3  ;;  %vm4652_vm12 = vcmp.lt.s32.totalorder %v4632_v18, 2 }
 0x3d6   : > { %4043 = vmatprep.mubr.f32.mxu1 %v11530_v48  ;;  %v4647_v28 = vor.u32 %v4646_v40, %v4645_v8  ;;  %v4650_v50 = vor.u32 %v4649_v10, %v4648_v34  ;;  %v4638_v29 = vor.u32 %v4637_v0, %v4636_v11  ;;  %v4641_v43 = vor.u32 %v4640_v42, %v4639_v45 }
 0x3d7   : > { %v4644_v60 = vor.u32 %v4643_v38, %v4642_v62  ;;  %v4635_v8 = vshrl.u32 %v11580_v41, %v4634_v51 }
 0x3d8   : > { %v4660_v37 = vsel %vm4654_vm9, %v4647_v28, 920167782  ;;  %v4664_v25 = vsel %vm4654_vm9, %v4650_v50, 1326507024  ;;  %v4659_v14 = vsel %vm4651_vm10, %v4638_v29, %v4641_v43 }
 0x3d9   : > { %4045 = vmatmul.mubr.f32.gmra.mxu1 %v11568_v3  ;;  %v4661_v57 = vsel %vm4653_vm11, %v4644_v60, %v4660_v37  ;;  %v4663_v20 = vsel %vm4651_vm10, %v4641_v43, %v4644_v60  ;;  %v4665_v12 = vsel %vm4653_vm11, %v4647_v28, %v4664_v25  ;;  %v4656_v10 = vsel %vm4654_vm9, %v4644_v60, 2102212464 }
 0x3da   : > { %4050 = vmatprep.mubr.f32.mxu1 %v11530_v48  ;;  %v4662_v55 = vsel %vm4652_vm12, %v4659_v14, %v4661_v57  ;;  %v4666_v47 = vsel %vm4652_vm12, %v4663_v20, %v4665_v12  ;;  %v4655_v11 = vsel %vm4651_vm10, %v4635_v8, %v4638_v29  ;;  %v4657_v0 = vsel %vm4653_vm11, %v4641_v43, %v4656_v10 }
 0x3db   : > { %v10263_v56 = vmul.u32.u64.low %v4667_v33, %v4662_v55  ;;  %v10264_v46 = vmul.u32.u64.high %v4667_v33, %v4662_v55, %v10263_v56  ;;  %v10267_v40 = vmul.u32.u64.low %v4667_v33, %v4666_v47  ;;  %v10268_v34 = vmul.u32.u64.high %v4667_v33, %v4666_v47, %v10267_v40 }
 0x3dc   : > { %v4658_v45 = vsel %vm4652_vm12, %v4655_v11, %v4657_v0 }
 0x3dd   : > { %4052 = vmatmul.mubr.f32.gmra.mxu1 %v11569_v61  ;;  %v4677_v42 = vadd.s32 1, %v10264_v46  ;;  %vm4676_vm13 = vc.u32 %v10268_v34, %v10263_v56  ;;  %v4674_v62 = vmul.u32 %v4667_v33, %v4658_v45  ;;  %v4675_v14 = vadd.s32 %v10263_v56, %v10268_v34 }
 0x3de   : > { %4254 = vmatprep.mubr.f32.mxu1 %v11530_v48 }
 0x3df   : > { %v4678_v38 = vsel %vm4676_vm13, %v4677_v42, %v10264_v46 }
 0x3e0   : > { %v4679_v28 = vadd.s32 %v4678_v38, %v4674_v62 }
 0x3e2   : > { %v4680_v51 = vadd.s32 536870912, %v4679_v28 }
 0x3e4   : > { %v4681_v63 = vshrl.u32 %v4680_v51, 30 }
 0x3e6   : > { %v4682_v50 = vshll.u32 %v4681_v63, 30 }
 0x3e8   : > { %v4683_v37 = vsub.s32 %v4679_v28, %v4682_v50 }
 0x3ea   : > { %v4685_v21 = vsub.s32 0, %v4683_v37 }
 0x3ec   : > { %v8962_v60 = vmin.u32 %v4685_v21, %v4683_v37 }
 0x3ee   : > { %v4687_v25 = vclz %v8962_v60 }
 0x3f0   : > { %v8963_v29 = vadd.s32 4294967294, %v4687_v25 }
 0x3f2   : > { %vm8964_vm14 = vcmp.lt.s32.totalorder %v8963_v29, 0 }
 0x3f3   : > { %v4690_v43 = vsel %vm8964_vm14, 0, %v8963_v29 }
 0x3f4   : > { %v4695_v18 = vsub.s32 4294967266, %v4690_v43  ;;  %v4691_v57 = vsub.s32 32, %v4690_v43  ;;  %v4692_v12 = vshll.u32 %v4683_v37, %v4690_v43 }
 0x3f6   : > { %v4696_v20 = vadd.s32 127, %v4695_v18  ;;  %v4693_v33 = vshrl.u32 %v4675_v14, %v4691_v57 }
 0x3f8   : > { %v4697_v55 = vshll.u32 %v4696_v20, 23  ;;  %v4694_v46 = vor.u32 %v4693_v33, %v4692_v12  ;;  %v4705_v20 = vsub.s32 4, %v4681_v63 }
 0x3fa   : > { %v4698_v8 = vor.u32 4788187, %v4697_v55  ;;  %v4701_v0 = vcvt.s32.f32 %v4694_v46  ;;  %v4706_v46 = vsel %vm4621_vm15, %v4705_v20, %v4681_v63 }
 0x3fc   : > { %v4699_v11 = vand.u32 2147483647, %v4698_v8 }
 0x3fe   : > { %v4702_v42 = vmul.f32 %v4701_v0, %v4699_v11 }
 0x400   : > { %v4703_v34 = vxor.u32 2147483648, %v4702_v42 }
 0x402   : > { %v4704_v25 = vsel %vm4621_vm15, %v4703_v34, %v4702_v42  ;;  %v4708_v34 = vsel %vm10289_vm0, 0, %v4706_v46 }
 0x403   : > { %v4707_v14 = vsel %vm10289_vm0, %v10239_v24, %v4704_v25  ;;  %v4712_v9 = vadd.s32 3, %v4708_v34  ;;  %v10320_v7 = vand.u32 3, %v4708_v34 }
 0x404   : > { %9064 = vcosq.f32 %v4707_v14 }
 0x405   : > { %9066 = vsinq.f32 %v4707_v14  ;;  %v10314_v63 = vand.u32 3, %v4712_v9  ;;  %vm4818_vm7 = vcmp.eq.s32.totalorder %v10320_v7, 0  ;;  %vm4821_vm9 = vcmp.eq.s32.totalorder %v10320_v7, 2 }
 0x406   : > { %vm4817_vm10 = vcmp.lt.s32.totalorder %v10320_v7, 2 }
 0x407   : > { %vm4718_vm4 = vcmp.eq.s32.totalorder %v10314_v63, 2  ;;  %vm4715_vm5 = vcmp.eq.s32.totalorder %v10314_v63, 0  ;;  %vm4714_vm6 = vcmp.lt.s32.totalorder %v10314_v63, 2 }
 0x411   : > { %v10312_v59 = vpop.eup %9064 }
 0x412   : > { %v10316_v4 = vpop.eup %9066  ;;  %v11587_v34 = vxor.u32 2147483648, %v10312_v59 }
 0x413   : > { %v4716_v9 = vxor.u32 2147483648, %v10316_v4 }
 0x414   : > { %v4720_v13 = vsel %vm4718_vm4, %v11587_v34, %v10316_v4 }
 0x465   : > { %v10278_v47 = vpop.f32.mrf.mxu0 }
 0x467   : > { %v3449_v40 = vpop.f32.mrf.mxu0 }
 0x468   : > { %v3450_v2 = vadd.f32 %v3449_v40, %v11586_v32 }
 0x46a   : > { %v3458_v10 = vpop.f32.mrf.mxu0 }
 0x46b   : > { %v3459_v61 = vadd.f32 %v3458_v10, %v11585_v58  ;;  %v11588_v10 = vld [vmem:[#allocation41_spill] sm:$0xff] }
 0x46c   : > { %v3460_v45 = vpop.f32.mrf.mxu0 }
 0x46d   : > { %v3461_v30 = vadd.f32 %v3460_v45, %v11585_v58  ;;  %v3448_v45 = vadd.f32 %v10278_v47, %v11586_v32 }
 0x46f   : > { %v3469_v62 = vpop.f32.mrf.mxu0  ;;  %v10280_v38 = vpop.f32.mrf.mxu1 }
 0x470   : > { %v3470_v58 = vadd.f32 %v3469_v62, %v11588_v10 }
 0x471   : > { %v3471_v28 = vpop.f32.mrf.mxu0  ;;  %v3594_v56 = vpop.f32.mrf.mxu1 }
 0x472   : > { %v3472_v17 = vadd.f32 %v3471_v28, %v11588_v10  ;;  %v3595_v40 = vadd.f32 %v3594_v56, %v3450_v2 }
 0x473   : > { %v10282_v51 = vpop.f32.mrf.mxu0 }
 0x474   : > { %v3599_v50 = vpop.f32.mrf.mxu1  ;;  %v3481_v62 = vadd.f32 %v10282_v51, %v9779_v31 }
 0x475   : > { %v10285_v37 = vpop.f32.mrf.mxu0  ;;  %v3600_v27 = vadd.f32 %v3599_v50, %v3459_v61  ;;  %v4717_v61 = vsel %vm4715_vm5, %v10312_v59, %v4716_v9 }
 0x476   : > { %v3601_v21 = vpop.f32.mrf.mxu1  ;;  %v3483_v56 = vadd.f32 %v10285_v37, %v9779_v31 }
 0x477   : > { %v10295_v29 = vpop.f32.mrf.mxu0  ;;  %v3602_v23 = vadd.f32 %v3601_v21, %v3461_v30  ;;  %v3593_v21 = vadd.f32 %v10280_v38, %v3448_v45 }
 0x478   : > { %v3606_v43 = vpop.f32.mrf.mxu1 }
 0x479   : > { %v3704_v18 = vpop.f32.mrf.mxu0  ;;  %v3607_v34 = vadd.f32 %v3606_v43, %v3470_v58  ;;  %v3703_v50 = vadd.f32 %v10295_v29, %v3593_v21 }
 0x47a   : > { %v3608_v57 = vpop.f32.mrf.mxu1  ;;  %v3705_v2 = vadd.f32 %v3704_v18, %v3595_v40 }
 0x47b   : > { %v3609_v28 = vadd.f32 %v3608_v57, %v3472_v17 }
 0x47c   : > { %v10300_v12 = vpop.f32.mrf.mxu1  ;;  %v3710_v33 = vpop.f32.mrf.mxu0 }
 0x47d   : > { %v3711_v49 = vadd.f32 %v3710_v33, %v3600_v27  ;;  %v3614_v43 = vadd.f32 %v10300_v12, %v3481_v62  ;;  %v4721_v12 = vsel %vm4714_vm6, %v4717_v61, %v4720_v13 }
 0x47e   : > { %v10302_v36 = vpop.f32.mrf.mxu1  ;;  %v3712_v55 = vpop.f32.mrf.mxu0 }
 0x47f   : > { %v3713_v30 = vadd.f32 %v3712_v55, %v3602_v23  ;;  %v3616_v10 = vadd.f32 %v10302_v36, %v3483_v56 }
 0x480   : > { %v3718_v8 = vpop.f32.mrf.mxu0  ;;  %v3808_v11 = vpop.f32.mrf.mxu1 }
 0x481   : > { %v3719_v38 = vadd.f32 %v3718_v8, %v3607_v34  ;;  %v3809_v32 = vadd.f32 %v3808_v11, %v3703_v50 }
 0x482   : > { %v3720_v0 = vpop.f32.mrf.mxu0  ;;  %v3810_v42 = vpop.f32.mrf.mxu1 }
 0x483   : > { %v3721_v33 = vadd.f32 %v3720_v0, %v3609_v28  ;;  %v3811_v55 = vadd.f32 %v3810_v42, %v3705_v2 }
 0x484   : > { %v10308_v25 = vpop.f32.mrf.mxu0 }
 0x485   : > { %v3817_v5 = vpop.f32.mrf.mxu1  ;;  %v3727_v57 = vadd.f32 %v10308_v25, %v3614_v43 }
 0x486   : > { %v10310_v41 = vpop.f32.mrf.mxu0  ;;  %v3818_v58 = vadd.f32 %v3817_v5, %v3711_v49 }
 0x487   : > { %v3819_v19 = vpop.f32.mrf.mxu1 }
 0x488   : > { %v3931_v6 = vpop.f32.mrf.mxu0  ;;  %v3820_v23 = vadd.f32 %v3819_v19, %v3713_v30 }
 0x489   : > { %v3826_v52 = vpop.f32.mrf.mxu1  ;;  %v3932_v8 = vadd.f32 %v3931_v6, %v3809_v32  ;;  %v4820_v32 = vsel %vm4818_vm7, %v10312_v59, %v4716_v9 }
 0x48a   : > { %v3933_v14 = vpop.f32.mrf.mxu0  ;;  %v3827_v51 = vadd.f32 %v3826_v52, %v3719_v38 }
 0x48b   : > { %v3828_v20 = vpop.f32.mrf.mxu1  ;;  %v3934_v40 = vadd.f32 %v3933_v14, %v3811_v55 }
 0x48c   : > { %v3938_v1 = vpop.f32.mrf.mxu0  ;;  %v3829_v37 = vadd.f32 %v3828_v20, %v3721_v33 }
 0x48d   : > { %v3835_v46 = vpop.f32.mrf.mxu1  ;;  %v3939_v17 = vadd.f32 %v3938_v1, %v3818_v58 }
 0x48e   : > { %v3940_v26 = vpop.f32.mrf.mxu0  ;;  %v3836_v36 = vadd.f32 %v3835_v46, %v3727_v57 }
 0x48f   : > { %v10324_v3 = vpop.f32.mrf.mxu1  ;;  %v3941_v45 = vadd.f32 %v3940_v26, %v3820_v23  ;;  %v3729_v26 = vadd.f32 %v10310_v41, %v3616_v10 }
 0x490   : > { %v3945_v60 = vpop.f32.mrf.mxu0 }
 0x491   : > { %v4032_v16 = vpop.f32.mrf.mxu1  ;;  %v3946_v49 = vadd.f32 %v3945_v60, %v3827_v51  ;;  %v3838_v6 = vadd.f32 %v10324_v3, %v3729_v26  ;;  %v4833_v51 = vrot.slane %v10239_v24, %v9324_v54 }
 0x492   : > { %v3947_v39 = vpop.f32.mrf.mxu0  ;;  %v4033_v1 = vadd.f32 %v4032_v16, %v3932_v8  ;;  %v11589_v16 = vxor.u32 2147483648, %v10312_v59 }
 0x493   : > { %v4034_v47 = vpop.f32.mrf.mxu1  ;;  %v3948_v11 = vadd.f32 %v3947_v39, %v3829_v37  ;;  %v4722_v39 = vsel %vm4711_vm8, nan, %v4721_v12 }
 0x494   : > { %v3952_v18 = vpop.f32.mrf.mxu0  ;;  %v4035_v52 = vadd.f32 %v4034_v47, %v3934_v40  ;;  %v4823_v60 = vsel %vm4821_vm9, %v11589_v16, %v10316_v4  ;;  %v4058_v3 = vmax.f32 %v4033_v1, 0.0  ;;  %v4838_v4 = vcombine.low %v4722_v39, %v4722_v39 }
 0x495   : > { %v4039_v27 = vpop.f32.mrf.mxu1  ;;  %v3953_v25 = vadd.f32 %v3952_v18, %v3836_v36  ;;  %v4824_v59 = vsel %vm4817_vm10, %v4820_v32, %v4823_v60 }
 0x496   : > { %v4040_v5 = vadd.f32 %v4039_v27, %v3939_v17  ;;  %v3954_v0 = vpop.f32.mrf.mxu0  ;;  %v4059_v46 = vmax.f32 %v4035_v52, 0.0  ;;  %v10384_v43 = vand.u32 4294901760, %v4058_v3  ;;  %v4825_v18 = vsel %vm4711_vm8, nan, %v4824_v59 }
 0x497   : > { %v4041_v19 = vpop.f32.mrf.mxu1  ;;  %v3955_v10 = vadd.f32 %v3954_v0, %v3838_v6 }
 0x498   : > { %v4042_v29 = vadd.f32 %v4041_v19, %v3941_v45  ;;  %v4060_v14 = vmax.f32 %v4040_v5, 0.0  ;;  %v10377_v50 = vand.u32 4294901760, %v4059_v46  ;;  %v4845_v19 = vrot.slane %v4838_v4, %v9324_v54 }
 0x499   : > { %v4046_v30 = vpop.f32.mrf.mxu1  ;;  %v10415_v8 = vsub.f32 %v4058_v3, %v10384_v43 }
 0x49a   : > { %v4047_v42 = vadd.f32 %v4046_v30, %v3946_v49  ;;  %v4061_v63 = vmax.f32 %v4042_v29, 0.0  ;;  %v10373_v56 = vand.u32 4294901760, %v4060_v14  ;;  %v10406_v57 = vsub.f32 %v4059_v46, %v10377_v50 }
 0x49b   : > { %v4048_v21 = vpop.f32.mrf.mxu1  ;;  %v4834_v30 = vcombine.high %v4833_v51, %v4833_v51  ;;  %v4846_v36 = vcombine.high %v4845_v19, %v4845_v19  ;;  %v4860_v39 = vsel %vm540_vm1, %v4833_v51, %v4845_v19  ;;  %v11598_v19 = vld [vmem:[#allocation10_spill] sm:$0xff] }
 0x49c   : > { %v4049_v13 = vadd.f32 %v4048_v21, %v3948_v11  ;;  %v4062_v41 = vmax.f32 %v4047_v42, 0.0  ;;  %v10369_v62 = vand.u32 4294901760, %v4061_v63  ;;  %v10400_v17 = vsub.f32 %v4060_v14, %v10373_v56 }
 0x49d   : > { %v4053_v20 = vpop.f32.mrf.mxu1  ;;  %v4856_v11 = vrot.slane %v4825_v18, %v9324_v54  ;;  %v4212_v0 = vand.u32 4294901760, %v10406_v57  ;;  %v4218_v42 = vand.u32 4294901760, %v10415_v8  ;;  %v11597_v18 = vld [vmem:[#allocation8_spill] sm:$0xff] }
 0x49e   : > { %v4063_v9 = vmax.f32 %v4049_v13, 0.0  ;;  %v4054_v34 = vadd.f32 %v4053_v20, %v3953_v25  ;;  %v10367_v47 = vand.u32 4294901760, %v4062_v41  ;;  %v10390_v55 = vsub.f32 %v4061_v63, %v10369_v62 }
 0x49f   : > { %v4055_v61 = vpop.f32.mrf.mxu1  ;;  %v4206_v12 = vand.u32 4294901760, %v10400_v17  ;;  %v4861_v13 = vsel %vm540_vm1, %v4834_v30, %v4846_v36  ;;  %v4857_v14 = vcombine.low %v4856_v11, %v4856_v11  ;;  %v4213_v20 = vsub.f32 %v10406_v57, %v4212_v0  ;;  %v11606_v36 = vld [vmem:[#allocation44_spill] sm:$0xff] }
 0x4a0   : > { %v10371_v28 = vand.u32 4294901760, %v4063_v9  ;;  %v4064_v2 = vmax.f32 %v4054_v34, 0.0  ;;  %v4056_v23 = vadd.f32 %v4055_v61, %v3955_v10  ;;  %v10387_v33 = vsub.f32 %v4062_v41, %v10367_v47 }
 0x4a1   : > { %v4200_v5 = vand.u32 4294901760, %v10390_v55  ;;  %v4207_v25 = vsub.f32 %v10400_v17, %v4206_v12  ;;  %v4219_v16 = vsub.f32 %v10415_v8, %v4218_v42  ;;  %v4863_v10 = vsel %vm543_vm2, %v4861_v13, %v4856_v11 }
 0x4a2   : > { %v10380_v38 = vsub.f32 %v4063_v9, %v10371_v28  ;;  %v10382_v58 = vand.u32 4294901760, %v4064_v2  ;;  %v4065_v27 = vmax.f32 %v4056_v23, 0.0  ;;  %v4194_v24 = vand.u32 4294901760, %v10387_v33 }
 0x4a3   : > { %v4201_v6 = vsub.f32 %v10390_v55, %v4200_v5  ;;  %v4208_v9 = vand.u32 4294901760, %v4207_v25  ;;  %v4862_v34 = vsel %vm543_vm2, %v4860_v39, %v4857_v14  ;;  %v4214_v3 = vand.u32 4294901760, %v4213_v20 }
 0x4a4   : > { %v10393_v7 = vsub.f32 %v4064_v2, %v10382_v58  ;;  %v10395_v45 = vand.u32 4294901760, %v4065_v27  ;;  %v4188_v29 = vand.u32 4294901760, %v10380_v38  ;;  %v4195_v21 = vsub.f32 %v10387_v33, %v4194_v24 }
 0x4a5   : > { %v4202_v46 = vand.u32 4294901760, %v4201_v6  ;;  %v4220_v61 = vand.u32 4294901760, %v4219_v16  ;;  %v4868_v2 = vsel %vm579_vm3, %v4863_v10, 0  ;;  %v4865_v23 = vsel %vm579_vm3, %v4862_v34, 0 }
 0x4a6   : > { %v4182_v37 = vand.u32 4294901760, %v10393_v7  ;;  %v10410_v40 = vsub.f32 %v4065_v27, %v10395_v45  ;;  %4091 = vmatprep.subr.mxu0 %v10395_v45  ;;  %v4189_v1 = vsub.f32 %v10380_v38, %v4188_v29  ;;  %v4196_v60 = vand.u32 4294901760, %v4195_v21 }
 0x4a7   : > { %4093 = vmatpush1.msra.mxu0 %v10382_v58  ;;  %v4900_v59 = vand.u32 4294901760, %v4868_v2  ;;  %v10469_v4 = vand.u32 4294901760, %v4865_v23 }
 0x4a8   : > { %4095 = vmatprep.subr.mxu0 %v10371_v28  ;;  %v4176_v49 = vand.u32 4294901760, %v10410_v40  ;;  %v4183_v26 = vsub.f32 %v10393_v7, %v4182_v37  ;;  %v4190_v41 = vand.u32 4294901760, %v4189_v1 }
 0x4a9   : > { %4097 = vmatpush1.msra.mxu0 %v10367_v47  ;;  %v5012_v27 = vsub.f32 %v4868_v2, %v4900_v59  ;;  %v5018_v51 = vsub.f32 %v4865_v23, %v10469_v4 }
 0x4aa   : > { %4099 = vmatprep.subr.mxu0 %v10369_v62  ;;  %v4177_v52 = vsub.f32 %v10410_v40, %v4176_v49  ;;  %v4184_v63 = vand.u32 4294901760, %v4183_v26 }
 0x4ab   : > { %4101 = vmatpush1.msra.mxu0 %v10373_v56 }
 0x4ac   : > { %4103 = vmatprep.subr.mxu0 %v10377_v50  ;;  %v4178_v32 = vand.u32 4294901760, %v4177_v52 }
 0x4ad   : > { %4105 = vmatpush1.msra.mxu0 %v10384_v43 }
 0x4ae   : > { %4144 = vmatmul.mubr.f32.vlgmr.msra.gmra.mxu0 %v9929_v22  ;;  %4179 = vmatprep.subr.mxu1 %v4178_v32 }
 0x4af   : > { %4288 = vmatprep.subr.mxu0 %v10410_v40  ;;  %4185 = vmatpush1.msra.mxu1 %v4184_v63  ;;  %v11601_v40 = vld [vmem:[#allocation9_spill] sm:$0xff] }
 0x4b0   : > { %4291 = vmatpush1.msra.mxu0 %v10393_v7  ;;  %4191 = vmatprep.subr.mxu1 %v4190_v41 }
 0x4b1   : > { %4294 = vmatprep.subr.mxu0 %v10380_v38  ;;  %4197 = vmatpush1.msra.mxu1 %v4196_v60  ;;  %v5013_v38 = vand.u32 4294901760, %v5012_v27 }
 0x4b2   : > { %4297 = vmatpush1.msra.mxu0 %v10387_v33  ;;  %4203 = vmatprep.subr.mxu1 %v4202_v46  ;;  %v5019_v33 = vand.u32 4294901760, %v5018_v51 }
 0x4b3   : > { %4300 = vmatprep.subr.mxu0 %v10390_v55  ;;  %4209 = vmatpush1.msra.mxu1 %v4208_v9  ;;  %v5014_v55 = vsub.f32 %v5012_v27, %v5013_v38 }
 0x4b4   : > { %4303 = vmatpush1.msra.mxu0 %v10400_v17  ;;  %4215 = vmatprep.subr.mxu1 %v4214_v3  ;;  %v5020_v7 = vsub.f32 %v5018_v51, %v5019_v33  ;;  %v11590_v17 = vld [vmem:[#allocation16_spill] sm:$0xff] }
 0x4b5   : > { %4306 = vmatprep.subr.mxu0 %v10406_v57  ;;  %4221 = vmatpush1.msra.mxu1 %v4220_v61  ;;  %v11599_v57 = vld [vmem:[#allocation12_spill] sm:$0xff] }
 0x4b6   : > { %4309 = vmatpush1.msra.mxu0 %v10415_v8  ;;  %4256 = vmatmul.mubr.f32.vlgmr.msra.gmra.mxu1 %v9790_v44  ;;  %v11603_v8 = vld [vmem:[#allocation13_spill] sm:$0xff] }
 0x4b7   : > { %4342 = vmatprep.mubr.f32.mxu0 %v11530_v48  ;;  %4376 = vmatprep.subr.mxu1 %v10395_v45 }
 0x4b8   : > { %4460 = vmatprep.subr.mxu0 %v4176_v49  ;;  %4345 = vmatmul.mubr.f32.vlgmr.msra.gmra.mxu0 %v9807_v15  ;;  %v11605_v49 = vld [vmem:[#allocation17_spill] sm:$0xff] }
 0x4b9   : > { %4378 = vmatpush1.msra.mxu1 %v10382_v58  ;;  %4464 = vmatpush1.msra.mxu0 %v4182_v37  ;;  %v11600_v37 = vld [vmem:[#allocation11_spill] sm:$0xff] }
 0x4ba   : > { %4380 = vmatprep.subr.mxu1 %v10371_v28  ;;  %4468 = vmatprep.subr.mxu0 %v4188_v29  ;;  %v11602_v29 = vld [vmem:[#allocation15_spill] sm:$0xff] }
 0x4bb   : > { %4382 = vmatpush1.msra.mxu1 %v10367_v47  ;;  %4472 = vmatpush1.msra.mxu0 %v4194_v24  ;;  %v11604_v24 = vld [vmem:[#allocation14_spill] sm:$0xff] }
 0x4bc   : > { %4384 = vmatprep.subr.mxu1 %v10369_v62  ;;  %4476 = vmatprep.subr.mxu0 %v4200_v5 }
 0x4bd   : > { %4386 = vmatpush1.msra.mxu1 %v10373_v56  ;;  %4480 = vmatpush1.msra.mxu0 %v4206_v12 }
 0x4be   : > { %4388 = vmatprep.subr.mxu1 %v10377_v50  ;;  %4484 = vmatprep.subr.mxu0 %v4212_v0 }
 0x4bf   : > { %4390 = vmatpush1.msra.mxu1 %v10384_v43  ;;  %4423 = vmatprep.mubr.f32.mxu1 %v11530_v48 }
 0x4c0   : > { %4488 = vmatpush1.msra.mxu0 %v4218_v42  ;;  %4521 = vmatprep.mubr.f32.mxu0 %v11530_v48 }
 0x4c1   : > { %4427 = vmatmul.mubr.f32.vlgmr.msra.gmra.mxu1 %v9871_v35  ;;  %4523 = vmatmul.mubr.f32.vlgmr.msra.gmra.mxu0 %v9790_v44 }
 0x4c2   : > { %4554 = vmatprep.subr.mxu1 %v10395_v45  ;;  %4901 = vmatprep.subr.mxu0 %v4900_v59  ;;  %v5015_v45 = vand.u32 4294901760, %v5014_v55 }
 0x4c3   : > { %4556 = vmatpush1.msra.mxu1 %v10382_v58  ;;  %4903 = vmatpush1.msra.mxu0 %v10469_v4  ;;  %v5021_v58 = vand.u32 4294901760, %v5020_v7 }
 0x4c4   : > { %4558 = vmatprep.subr.mxu1 %v10371_v28  ;;  %4936 = vmatprep.mubr.f32.mxu0 %v11530_v48  ;;  %v11591_v28 = vld [vmem:[#allocation18_spill] sm:$0xff] }
 0x4c5   : > { %4560 = vmatpush1.msra.mxu1 %v10367_v47  ;;  %4942 = vmatmul.mubr.f32.vlgmr.msra.gmra.mxu0 %v11590_v17  ;;  %v11592_v47 = vld [vmem:[#allocation19_spill] sm:$0xff] }
 0x4c6   : > { %4562 = vmatprep.subr.mxu1 %v10369_v62  ;;  %4601 = vmatprep.mubr.f32.mxu1 %v11530_v48  ;;  %v11593_v62 = vld [vmem:[#allocation5_spill] sm:$0xff] }
 0x4c7   : > { %4564 = vmatpush1.msra.mxu1 %v10373_v56  ;;  %4947 = vmatprep.mubr.f32.mxu0 %v11530_v48  ;;  %v11594_v56 = vld [vmem:[#allocation20_spill] sm:$0xff] }
 0x4c8   : > { %4566 = vmatprep.subr.mxu1 %v10377_v50  ;;  %5116 = vmatprep.subr.mxu0 %v5012_v27  ;;  %v11595_v50 = vld [vmem:[#allocation7_spill] sm:$0xff] }
 0x4c9   : > { %4568 = vmatpush1.msra.mxu1 %v10384_v43  ;;  %4953 = vmatmul.mubr.f32.gmra.mxu0 %v11591_v28  ;;  %v11596_v43 = vld [vmem:[#allocation6_spill] sm:$0xff] }
 0x4ca   : > { %4603 = vmatmul.mubr.f32.vlgmr.msra.gmra.mxu1 %v9790_v44  ;;  %5016 = vmatprep.subr.mxu1 %v5015_v45 }
 0x4cb   : > { %4958 = vmatprep.mubr.f32.mxu0 %v11530_v48  ;;  %5022 = vmatpush1.msra.mxu1 %v5021_v58 }
 0x4cc   : > { %5055 = vmatprep.mubr.f32.mxu1 %v11530_v48  ;;  %5119 = vmatpush1.msra.mxu0 %v5018_v51 }
 0x4cd   : > { %4964 = vmatmul.mubr.f32.gmra.mxu0 %v11592_v47  ;;  %5216 = vmatprep.subr.mxu1 %v4900_v59 }
 0x4ce   : > { %5057 = vmatmul.mubr.f32.vlgmr.msra.gmra.mxu1 %v11593_v62  ;;  %4969 = vmatprep.mubr.f32.mxu0 %v11530_v48 }
 0x4cf   : > { %5062 = vmatprep.mubr.f32.mxu1 %v11530_v48  ;;  %5218 = vmatpush1.msra.mxu1 %v10469_v4 }
 0x4d0   : > { %5321 = vmatprep.subr.mxu0 %v5013_v38  ;;  %5418 = vmatprep.subr.mxu1 %v4900_v59 }
 0x4d1   : > { %4975 = vmatmul.mubr.f32.gmra.mxu0 %v11594_v56 }
 0x4d2   : > { %5064 = vmatmul.mubr.f32.gmra.mxu1 %v11595_v50  ;;  %5152 = vmatprep.mubr.f32.mxu0 %v11530_v48 }
 0x4d3   : > { %5069 = vmatprep.mubr.f32.mxu1 %v11530_v48 }
 0x4d5   : > { %5155 = vmatmul.mubr.f32.vlgmr.msra.gmra.mxu0 %v11596_v43 }
 0x4d6   : > { %5071 = vmatmul.mubr.f32.gmra.mxu1 %v11597_v18  ;;  %5160 = vmatprep.mubr.f32.mxu0 %v11530_v48 }
 0x4d7   : > { %5076 = vmatprep.mubr.f32.mxu1 %v11530_v48  ;;  %5325 = vmatpush1.msra.mxu0 %v5019_v33 }
 0x4d9   : > { %5163 = vmatmul.mubr.f32.gmra.mxu0 %v11598_v19 }
 0x4da   : > { %5078 = vmatmul.mubr.f32.gmra.mxu1 %v11599_v57  ;;  %5168 = vmatprep.mubr.f32.mxu0 %v11530_v48 }
 0x4db   : > { %5251 = vmatprep.mubr.f32.mxu1 %v11530_v48 }
 0x4dd   : > { %5171 = vmatmul.mubr.f32.gmra.mxu0 %v11600_v37 }
 0x4de   : > { %5255 = vmatmul.mubr.f32.vlgmr.msra.gmra.mxu1 %v11601_v40  ;;  %5176 = vmatprep.mubr.f32.mxu0 %v11530_v48 }
 0x4df   : > { %5260 = vmatprep.mubr.f32.mxu1 %v11530_v48  ;;  %5420 = vmatpush1.msra.mxu1 %v10469_v4 }
 0x4e1   : > { %5179 = vmatmul.mubr.f32.gmra.mxu0 %v11602_v29 }
 0x4e2   : > { %5264 = vmatmul.mubr.f32.gmra.mxu1 %v11603_v8  ;;  %5358 = vmatprep.mubr.f32.mxu0 %v11530_v48 }
 0x4e3   : > { %5269 = vmatprep.mubr.f32.mxu1 %v11530_v48 }
 0x4e5   : > { %5360 = vmatmul.mubr.f32.vlgmr.msra.gmra.mxu0 %v11593_v62 }
 0x4e6   : > { %5273 = vmatmul.mubr.f32.gmra.mxu1 %v11604_v24  ;;  %5365 = vmatprep.mubr.f32.mxu0 %v11530_v48  ;;  %v11608_v24 = vld [vmem:[#allocation23_spill] sm:$0xff] }
 0x4e7   : > { %5278 = vmatprep.mubr.f32.mxu1 %v11530_v48 }
 0x4e9   : > { %5367 = vmatmul.mubr.f32.gmra.mxu0 %v11595_v50 }
 0x4ea   : > { %5282 = vmatmul.mubr.f32.gmra.mxu1 %v11605_v49  ;;  %5372 = vmatprep.mubr.f32.mxu0 %v11530_v48 }
 0x4eb   : > { %5453 = vmatprep.mubr.f32.mxu1 %v11530_v48 }
 0x4ed   : > { %5374 = vmatmul.mubr.f32.gmra.mxu0 %v11597_v18 }
 0x4ee   : > { %5455 = vmatmul.mubr.f32.vlgmr.msra.gmra.mxu1 %v11593_v62  ;;  %5379 = vmatprep.mubr.f32.mxu0 %v11530_v48  ;;  %v11609_v62 = vld [vmem:[#allocation21_spill] sm:$0xff] }
 0x4ef   : > { %5460 = vmatprep.mubr.f32.mxu1 %v11530_v48 }
 0x4f1   : > { %5381 = vmatmul.mubr.f32.gmra.mxu0 %v11599_v57 }
 0x4f2   : > { %5462 = vmatmul.mubr.f32.gmra.mxu1 %v11595_v50  ;;  %5562 = vmatprep.mubr.f32.mxu0 %v11530_v48 }
 0x4f3   : > { %5467 = vmatprep.mubr.f32.mxu1 %v11530_v48 }
 0x4f6   : > { %5469 = vmatmul.mubr.f32.gmra.mxu1 %v11597_v18 }
 0x4f7   : > { %5474 = vmatprep.mubr.f32.mxu1 %v11530_v48 }
 0x4fa   : > { %5476 = vmatmul.mubr.f32.gmra.mxu1 %v11599_v57 }
 0x4fb   : > { %5711 = vmatprep.mubr.f32.mxu1 %v11530_v48 }
 0x56e   : > { %v4145_v5 = vpop.f32.mrf.mxu0 }
 0x56f   : > { %v4146_v11 = vadd.f32 %v4145_v5, %v11606_v36 }
 0x570   : > { %v4147_v30 = vpop.f32.mrf.mxu0 }
 0x571   : > { %v4148_v1 = vadd.f32 %v4147_v30, %v11606_v36 }
 0x576   : > { %v4257_v12 = vpop.f32.mrf.mxu1 }
 0x577   : > { %v4258_v0 = vadd.f32 %v4257_v12, %v4146_v11 }
 0x578   : > { %v4346_v26 = vpop.f32.mrf.mxu0  ;;  %v4259_v52 = vpop.f32.mrf.mxu1 }
 0x579   : > { %v4260_v21 = vadd.f32 %v4259_v52, %v4148_v1  ;;  %v4347_v25 = vadd.f32 %v4346_v26, %v4258_v0 }
 0x57a   : > { %v4348_v42 = vpop.f32.mrf.mxu0 }
 0x57b   : > { %v4349_v14 = vadd.f32 %v4348_v42, %v4260_v21 }
 0x581   : > { %v4428_v32 = vpop.f32.mrf.mxu1  ;;  %v4524_v6 = vpop.f32.mrf.mxu0 }
 0x582   : > { %v4429_v41 = vadd.f32 %v4428_v32, %v4347_v25 }
 0x583   : > { %v4526_v63 = vpop.f32.mrf.mxu0  ;;  %v4430_v13 = vpop.f32.mrf.mxu1 }
 0x584   : > { %v4431_v39 = vadd.f32 %v4430_v13, %v4349_v14  ;;  %v4525_v60 = vadd.f32 %v4524_v6, %v4429_v41 }
 0x585   : > { %v4943_v20 = vpop.f32.mrf.mxu0 }
 0x586   : > { %v4527_v9 = vadd.f32 %v4526_v63, %v4431_v39  ;;  %v4944_v19 = vadd.f32 %v4943_v20, %v11558_v53 }
 0x587   : > { %v4945_v16 = vpop.f32.mrf.mxu0 }
 0x589   : > { %v4954_v46 = vpop.f32.mrf.mxu0 }
 0x58a   : > { %v4604_v10 = vpop.f32.mrf.mxu1 }
 0x58b   : > { %v4605_v34 = vadd.f32 %v4604_v10, %v4525_v60  ;;  %v4956_v3 = vpop.f32.mrf.mxu0 }
 0x58c   : > { %v4606_v61 = vpop.f32.mrf.mxu1 }
 0x58d   : > { %v4607_v2 = vadd.f32 %v4606_v61, %v4527_v9  ;;  %v4965_v23 = vpop.f32.mrf.mxu0  ;;  %9068 = vtanh.f32 %v4605_v34 }
 0x58e   : > { %v5058_v59 = vpop.f32.mrf.mxu1  ;;  %v4966_v8 = vadd.f32 %v4965_v23, %v11608_v24 }
 0x58f   : > { %9070 = vtanh.f32 %v4607_v2  ;;  %v4967_v4 = vpop.f32.mrf.mxu0  ;;  %v11607_v2 = vld [vmem:[#allocation22_spill] sm:$0xff]  ;;  %v5059_v28 = vadd.f32 %v5058_v59, %v4944_v19 }
 0x590   : > { %v5060_v27 = vpop.f32.mrf.mxu1  ;;  %v4957_v36 = vadd.f32 %v4956_v3, %v11607_v2  ;;  %v4968_v37 = vadd.f32 %v4967_v4, %v11608_v24 }
 0x591   : > { %v4976_v51 = vpop.f32.mrf.mxu0 }
 0x592   : > { %v5065_v38 = vpop.f32.mrf.mxu1  ;;  %v4977_v47 = vadd.f32 %v4976_v51, %v11609_v62 }
 0x593   : > { %v4978_v33 = vpop.f32.mrf.mxu0 }
 0x594   : > { %v5067_v55 = vpop.f32.mrf.mxu1 }
 0x595   : > { %v5156_v7 = vpop.f32.mrf.mxu0  ;;  %v5068_v29 = vadd.f32 %v5067_v55, %v4957_v36  ;;  %v4979_v55 = vadd.f32 %v4978_v33, %v11609_v62 }
 0x596   : > { %v5072_v45 = vpop.f32.mrf.mxu1  ;;  %v5157_v20 = vadd.f32 %v5156_v7, %v5059_v28 }
 0x597   : > { %v5158_v58 = vpop.f32.mrf.mxu0  ;;  %v5073_v43 = vadd.f32 %v5072_v45, %v4966_v8 }
 0x598   : > { %v5074_v5 = vpop.f32.mrf.mxu1 }
 0x599   : > { %v5164_v30 = vpop.f32.mrf.mxu0 }
 0x59a   : > { %v5079_v12 = vpop.f32.mrf.mxu1  ;;  %v9069_v26 = vpop.eup %9068 }
 0x59b   : > { %v5166_v11 = vpop.f32.mrf.mxu0  ;;  %v5080_v4 = vadd.f32 %v5079_v12, %v4977_v47 }
 0x59c   : > { %v9071_v52 = vpop.eup %9070  ;;  %v5081_v1 = vpop.f32.mrf.mxu1  ;;  %v5167_v50 = vadd.f32 %v5166_v11, %v5068_v29 }
 0x59d   : > { %v5172_v0 = vpop.f32.mrf.mxu0  ;;  %v4613_v42 = vcombine.low %v9069_v26, %v9071_v52  ;;  %v4955_v26 = vadd.f32 %v4954_v46, %v11607_v2  ;;  %v5075_v46 = vadd.f32 %v5074_v5, %v4968_v37 }
 0x59e   : > { %v5256_v21 = vpop.f32.mrf.mxu1  ;;  %v5173_v17 = vadd.f32 %v5172_v0, %v5073_v43 }
 0x59f   : > { %v5174_v32 = vpop.f32.mrf.mxu0  ;;  %8959 = vst [vmem:[%s10068_s16 + $0x8] sm:$0x77] %v4613_v42  ;;  %v4946_v42 = vadd.f32 %v4945_v16, %v11558_v53  ;;  %v5066_v57 = vadd.f32 %v5065_v38, %v4955_v26  ;;  %v5257_v19 = vadd.f32 %v5256_v21, %v5157_v20 }
 0x5a0   : > { %v5258_v6 = vpop.f32.mrf.mxu1  ;;  %v5175_v38 = vadd.f32 %v5174_v32, %v5075_v46 }
 0x5a1   : > { %v5180_v25 = vpop.f32.mrf.mxu0  ;;  %v5061_v18 = vadd.f32 %v5060_v27, %v4946_v42  ;;  %v5165_v2 = vadd.f32 %v5164_v30, %v5066_v57  ;;  %v5082_v42 = vadd.f32 %v5081_v1, %v4979_v55 }
 0x5a2   : > { %v5265_v63 = vpop.f32.mrf.mxu1  ;;  %v5181_v51 = vadd.f32 %v5180_v25, %v5080_v4 }
 0x5a3   : > { %v5182_v13 = vpop.f32.mrf.mxu0  ;;  %v5159_v16 = vadd.f32 %v5158_v58, %v5061_v18  ;;  %v5266_v26 = vadd.f32 %v5265_v63, %v5165_v2 }
 0x5a4   : > { %v5267_v14 = vpop.f32.mrf.mxu1  ;;  %v5183_v58 = vadd.f32 %v5182_v13, %v5082_v42 }
 0x5a5   : > { %v5361_v41 = vpop.f32.mrf.mxu0  ;;  %v5268_v23 = vadd.f32 %v5267_v14, %v5167_v50  ;;  %v5259_v27 = vadd.f32 %v5258_v6, %v5159_v16 }
 0x5a6   : > { %v5274_v39 = vpop.f32.mrf.mxu1  ;;  %v5362_v30 = vadd.f32 %v5361_v41, %v5257_v19 }
 0x5a7   : > { %v5363_v60 = vpop.f32.mrf.mxu0  ;;  %v5275_v8 = vadd.f32 %v5274_v39, %v5173_v17 }
 0x5a8   : > { %v5276_v10 = vpop.f32.mrf.mxu1  ;;  %v5364_v18 = vadd.f32 %v5363_v60, %v5259_v27 }
 0x5a9   : > { %v5368_v9 = vpop.f32.mrf.mxu0  ;;  %v5277_v37 = vadd.f32 %v5276_v10, %v5175_v38 }
 0x5aa   : > { %v5283_v34 = vpop.f32.mrf.mxu1  ;;  %v5369_v57 = vadd.f32 %v5368_v9, %v5266_v26 }
 0x5ab   : > { %v5370_v61 = vpop.f32.mrf.mxu0  ;;  %v5284_v33 = vadd.f32 %v5283_v34, %v5181_v51 }
 0x5ac   : > { %v5285_v49 = vpop.f32.mrf.mxu1  ;;  %v5371_v29 = vadd.f32 %v5370_v61, %v5268_v23 }
 0x5ad   : > { %v5375_v52 = vpop.f32.mrf.mxu0  ;;  %v5286_v0 = vadd.f32 %v5285_v49, %v5183_v58 }
 0x5ae   : > { %v5456_v40 = vpop.f32.mrf.mxu1  ;;  %v5376_v43 = vadd.f32 %v5375_v52, %v5275_v8 }
 0x5af   : > { %v5377_v56 = vpop.f32.mrf.mxu0  ;;  %v5457_v6 = vadd.f32 %v5456_v40, %v5362_v30  ;;  %v11610_v30 = vld [vmem:[#allocation34_spill] sm:$0xff] }
 0x5b0   : > { %v5458_v3 = vpop.f32.mrf.mxu1  ;;  %v5378_v47 = vadd.f32 %v5377_v56, %v5277_v37 }
 0x5b1   : > { %v5382_v45 = vpop.f32.mrf.mxu0  ;;  %v5459_v28 = vadd.f32 %v5458_v3, %v5364_v18  ;;  %v5482_v2 = vmax.f32 %v5457_v6, 0.0 }
 0x5b2   : > { %v5463_v36 = vpop.f32.mrf.mxu1  ;;  %v5383_v32 = vadd.f32 %v5382_v45, %v5284_v33 }
 0x5b3   : > { %v5464_v5 = vadd.f32 %v5463_v36, %v5369_v57  ;;  %v5384_v7 = vpop.f32.mrf.mxu0  ;;  %v5483_v13 = vmax.f32 %v5459_v28, 0.0  ;;  %v10593_v4 = vand.u32 4294901760, %v5482_v2 }
 0x5b4   : > { %v5465_v11 = vpop.f32.mrf.mxu1  ;;  %v5385_v39 = vadd.f32 %v5384_v7, %v5286_v0 }
 0x5b5   : > { %v5466_v50 = vadd.f32 %v5465_v11, %v5371_v29  ;;  %v5484_v14 = vmax.f32 %v5464_v5, 0.0  ;;  %v10583_v16 = vand.u32 4294901760, %v5483_v13  ;;  %v10612_v42 = vsub.f32 %v5482_v2, %v10593_v4  ;;  %v11622_v2 = vld [vmem:[#allocation36_spill] sm:$0xff] }
 0x5b6   : > { %v5470_v59 = vpop.f32.mrf.mxu1 }
 0x5b7   : > { %v5471_v17 = vadd.f32 %v5470_v59, %v5376_v43  ;;  %v5485_v25 = vmax.f32 %v5466_v50, 0.0  ;;  %v10576_v52 = vand.u32 4294901760, %v5484_v14  ;;  %v10606_v29 = vsub.f32 %v5483_v13, %v10583_v16  ;;  %v11618_v13 = vld [vmem:[#allocation33_spill] sm:$0xff] }
 0x5b8   : > { %v5472_v12 = vpop.f32.mrf.mxu1  ;;  %v5675_v58 = vand.u32 4294901760, %v10612_v42 }
 0x5b9   : > { %v5473_v1 = vadd.f32 %v5472_v12, %v5378_v47  ;;  %v5486_v63 = vmax.f32 %v5471_v17, 0.0  ;;  %v10574_v49 = vand.u32 4294901760, %v5485_v25  ;;  %v10599_v26 = vsub.f32 %v5484_v14, %v10576_v52  ;;  %v11614_v14 = vld [vmem:[#allocation40_spill] sm:$0xff] }
 0x5ba   : > { %v5477_v21 = vpop.f32.mrf.mxu1  ;;  %v5669_v43 = vand.u32 4294901760, %v10606_v29  ;;  %v5676_v12 = vsub.f32 %v10612_v42, %v5675_v58 }
 0x5bb   : > { %v5487_v60 = vmax.f32 %v5473_v1, 0.0  ;;  %v5478_v10 = vadd.f32 %v5477_v21, %v5383_v32  ;;  %v10570_v56 = vand.u32 4294901760, %v5486_v63  ;;  %v10596_v38 = vsub.f32 %v5485_v25, %v10574_v49  ;;  %v11611_v1 = vld [vmem:[#allocation37_spill] sm:$0xff] }
 0x5bc   : > { %v5479_v9 = vpop.f32.mrf.mxu1  ;;  %v5663_v57 = vand.u32 4294901760, %v10599_v26  ;;  %v5670_v7 = vsub.f32 %v10606_v29, %v5669_v43  ;;  %v5677_v25 = vand.u32 4294901760, %v5676_v12  ;;  %v11613_v21 = vld [vmem:[#allocation25_spill] sm:$0xff] }
 0x5bd   : > { %v10572_v41 = vand.u32 4294901760, %v5487_v60  ;;  %v5488_v34 = vmax.f32 %v5478_v10, 0.0  ;;  %v5480_v61 = vadd.f32 %v5479_v9, %v5385_v39  ;;  %v10586_v23 = vsub.f32 %v5486_v63, %v10570_v56  ;;  %v11612_v63 = vld [vmem:[#allocation39_spill] sm:$0xff]  ;;  %v11617_v10 = vld [vmem:[#allocation30_spill] sm:$0xff]  ;;  %v11619_v9 = vld [vmem:[#allocation29_spill] sm:$0xff] }
 0x5be   : > { %v5657_v37 = vand.u32 4294901760, %v10596_v38  ;;  %v5664_v5 = vsub.f32 %v10599_v26, %v5663_v57  ;;  %v5671_v6 = vand.u32 4294901760, %v5670_v7  ;;  %v11615_v39 = vld [vmem:[#allocation27_spill] sm:$0xff] }
 0x5bf   : > { %v10579_v40 = vsub.f32 %v5487_v60, %v10572_v41  ;;  %v10581_v3 = vand.u32 4294901760, %v5488_v34  ;;  %v5489_v46 = vmax.f32 %v5480_v61, 0.0  ;;  %v5651_v45 = vand.u32 4294901760, %v10586_v23  ;;  %v11616_v60 = vld [vmem:[#allocation26_spill] sm:$0xff]  ;;  %v11621_v61 = vld [vmem:[#allocation28_spill] sm:$0xff] }
 0x5c0   : > { %v5658_v47 = vsub.f32 %v10596_v38, %v5657_v37  ;;  %v5665_v32 = vand.u32 4294901760, %v5664_v5 }
 0x5c1   : > { %v10589_v36 = vsub.f32 %v5488_v34, %v10581_v3  ;;  %v10591_v55 = vand.u32 4294901760, %v5489_v46  ;;  %v5645_v8 = vand.u32 4294901760, %v10579_v40  ;;  %v5652_v50 = vsub.f32 %v10586_v23, %v5651_v45  ;;  %v11620_v34 = vld [vmem:[#allocation32_spill] sm:$0xff] }
 0x5c2   : > { %v5659_v0 = vand.u32 4294901760, %v5658_v47 }
 0x5c3   : > { %v5639_v20 = vand.u32 4294901760, %v10589_v36  ;;  %v5632_v27 = vsub.f32 %v5489_v46, %v10591_v55  ;;  %5515 = vmatprep.subr.mxu0 %v10591_v55  ;;  %v5646_v18 = vsub.f32 %v10579_v40, %v5645_v8  ;;  %v5653_v17 = vand.u32 4294901760, %v5652_v50 }
 0x5c4   : > { %5517 = vmatpush1.msra.mxu0 %v10581_v3 }
 0x5c5   : > { %5519 = vmatprep.subr.mxu0 %v10572_v41  ;;  %v5633_v11 = vand.u32 4294901760, %v5632_v27  ;;  %v5640_v51 = vsub.f32 %v10589_v36, %v5639_v20  ;;  %v5647_v28 = vand.u32 4294901760, %v5646_v18  ;;  %v11631_v18 = vmov 2131351028  }
 0x5c6   : > { %5521 = vmatpush1.msra.mxu0 %v10570_v56 }
 0x5c7   : > { %5523 = vmatprep.subr.mxu0 %v10574_v49  ;;  %v5634_v19 = vsub.f32 %v5632_v27, %v5633_v11  ;;  %v5641_v33 = vand.u32 4294901760, %v5640_v51 }
 0x5c8   : > { %5525 = vmatpush1.msra.mxu0 %v10576_v52 }
 0x5c9   : > { %5527 = vmatprep.subr.mxu0 %v10583_v16  ;;  %v5635_v59 = vand.u32 4294901760, %v5634_v19 }
 0x5ca   : > { %5529 = vmatpush1.msra.mxu0 %v10593_v4 }
 0x5cb   : > { %5568 = vmatmul.mubr.f32.vlgmr.msra.gmra.mxu0 %v11610_v30  ;;  %5636 = vmatprep.subr.mxu1 %v5635_v59 }
 0x5cc   : > { %5766 = vmatprep.subr.mxu0 %v5632_v27  ;;  %5642 = vmatpush1.msra.mxu1 %v5641_v33 }
 0x5cd   : > { %5769 = vmatpush1.msra.mxu0 %v10589_v36  ;;  %5648 = vmatprep.subr.mxu1 %v5647_v28 }
 0x5ce   : > { %5772 = vmatprep.subr.mxu0 %v10579_v40  ;;  %5573 = vmatprep.mubr.f32.mxu0 %v11530_v48  ;;  %v11623_v40 = vld [vmem:[#allocation31_spill] sm:$0xff] }
 0x5cf   : > { %5654 = vmatpush1.msra.mxu1 %v5653_v17  ;;  %5775 = vmatpush1.msra.mxu0 %v10586_v23 }
 0x5d0   : > { %5579 = vmatmul.mubr.f32.gmra.mxu0 %v11611_v1  ;;  %5660 = vmatprep.subr.mxu1 %v5659_v0 }
 0x5d1   : > { %5778 = vmatprep.subr.mxu0 %v10596_v38  ;;  %5666 = vmatpush1.msra.mxu1 %v5665_v32 }
 0x5d2   : > { %5781 = vmatpush1.msra.mxu0 %v10599_v26  ;;  %5672 = vmatprep.subr.mxu1 %v5671_v6  ;;  %v11627_v26 = vmov 920167782  }
 0x5d3   : > { %5784 = vmatprep.subr.mxu0 %v10606_v29  ;;  %5584 = vmatprep.mubr.f32.mxu0 %v11530_v48 }
 0x5d4   : > { %5678 = vmatpush1.msra.mxu1 %v5677_v25  ;;  %5787 = vmatpush1.msra.mxu0 %v10612_v42  ;;  %v11629_v42 = vmov 683565275  }
 0x5d5   : > { %5590 = vmatmul.mubr.f32.gmra.mxu0 %v11612_v63  ;;  %5713 = vmatmul.mubr.f32.vlgmr.msra.gmra.mxu1 %v11613_v21 }
 0x5d6   : > { %5878 = vmatprep.subr.mxu1 %v10591_v55  ;;  %5989 = vmatprep.subr.mxu0 %v5633_v11 }
 0x5d7   : > { %5880 = vmatpush1.msra.mxu1 %v10581_v3  ;;  %5595 = vmatprep.mubr.f32.mxu0 %v11530_v48 }
 0x5d8   : > { %5882 = vmatprep.subr.mxu1 %v10572_v41  ;;  %5718 = vmatprep.mubr.f32.mxu1 %v11530_v48 }
 0x5d9   : > { %5884 = vmatpush1.msra.mxu1 %v10570_v56  ;;  %5601 = vmatmul.mubr.f32.gmra.mxu0 %v11614_v14 }
 0x5da   : > { %5720 = vmatmul.mubr.f32.gmra.mxu1 %v11615_v39  ;;  %5886 = vmatprep.subr.mxu1 %v10574_v49 }
 0x5db   : > { %5888 = vmatpush1.msra.mxu1 %v10576_v52  ;;  %5725 = vmatprep.mubr.f32.mxu1 %v11530_v48 }
 0x5dc   : > { %5890 = vmatprep.subr.mxu1 %v10583_v16  ;;  %5820 = vmatprep.mubr.f32.mxu0 %v11530_v48 }
 0x5dd   : > { %5892 = vmatpush1.msra.mxu1 %v10593_v4  ;;  %5823 = vmatmul.mubr.f32.vlgmr.msra.gmra.mxu0 %v11616_v60  ;;  %v11635_v60 = vld [vmem:[#allocation43_spill] sm:$0xff] }
 0x5de   : > { %5727 = vmatmul.mubr.f32.gmra.mxu1 %v11617_v10  ;;  %5993 = vmatpush1.msra.mxu0 %v5639_v20 }
 0x5df   : > { %6104 = vmatprep.subr.mxu1 %v10591_v55  ;;  %5997 = vmatprep.subr.mxu0 %v5645_v8 }
 0x5e0   : > { %6001 = vmatpush1.msra.mxu0 %v5651_v45  ;;  %5732 = vmatprep.mubr.f32.mxu1 %v11530_v48  ;;  %v11628_v45 = vmov 1326507024  }
 0x5e1   : > { %5828 = vmatprep.mubr.f32.mxu0 %v11530_v48  ;;  %6005 = vmatprep.subr.mxu0 %v5657_v37  ;;  %v11630_v37 = vmov 2475754826  }
 0x5e2   : > { %5734 = vmatmul.mubr.f32.gmra.mxu1 %v11618_v13  ;;  %5831 = vmatmul.mubr.f32.gmra.mxu0 %v11619_v9 }
 0x5e3   : > { %6009 = vmatpush1.msra.mxu0 %v5663_v57  ;;  %5836 = vmatprep.mubr.f32.mxu0 %v11530_v48 }
 0x5e4   : > { %6013 = vmatprep.subr.mxu0 %v5669_v43  ;;  %5925 = vmatprep.mubr.f32.mxu1 %v11530_v48 }
 0x5e5   : > { %6017 = vmatpush1.msra.mxu0 %v5675_v58 }
 0x5e6   : > { %5839 = vmatmul.mubr.f32.gmra.mxu0 %v11620_v34  ;;  %5929 = vmatmul.mubr.f32.vlgmr.msra.gmra.mxu1 %v11621_v61  ;;  %v11634_v61 = vld [vmem:[#allocation42_spill] sm:$0xff] }
 0x5e7   : > { %6106 = vmatpush1.msra.mxu1 %v10581_v3  ;;  %5844 = vmatprep.mubr.f32.mxu0 %v11530_v48 }
 0x5e8   : > { %6108 = vmatprep.subr.mxu1 %v10572_v41  ;;  %5934 = vmatprep.mubr.f32.mxu1 %v11530_v48  ;;  %v11624_v41 = vld [vmem:[#allocation35_spill] sm:$0xff] }
 0x5e9   : > { %6110 = vmatpush1.msra.mxu1 %v10570_v56  ;;  %v11625_v56 = vld [vmem:[#allocation38_spill] sm:$0xff] }
 0x5ea   : > { %6112 = vmatprep.subr.mxu1 %v10574_v49  ;;  %5847 = vmatmul.mubr.f32.gmra.mxu0 %v11622_v2  ;;  %v10730_v49 = vld [vmem:[%s9250_s17 + $0xc] sm:$0xf]  ;;  %s8985_s17 = sshll.u32 %s9217_s28, 9  ;;  %s9090_s28 = scalar_lea.vmem %s9089_s8, 1024 }
 0x5eb   : > { %5938 = vmatmul.mubr.f32.gmra.mxu1 %v11623_v40  ;;  %6050 = vmatprep.mubr.f32.mxu0 %v11530_v48  ;;  %v6741_v27 = vand.u32 2147483647, %v10730_v49  ;;  %vm6743_vm5 = vcmp.lt.s32.totalorder %v10730_v49, 0  ;;  %s8874_s21 = scalar_lea.hbm %s11362_s7, %s8985_s17  ;;  %p9092_p1 = scmp.lt.s32.totalorder %s9090_s28, %s9084_s23 }
 0x5ec   : > { %6114 = vmatpush1.msra.mxu1 %v10576_v52  ;;  %5943 = vmatprep.mubr.f32.mxu1 %v11530_v48  ;;  %v6744_v52 = vand.u32 2139095040, %v10730_v49 }
 0x5ed   : > { %6116 = vmatprep.subr.mxu1 %v10583_v16  ;;  %v6748_v33 = vand.u32 8388607, %v6741_v27  ;;  %vm10780_vm6 = vcmp.le.f32.partialorder %v6741_v27, 0.7853982  ;;  %p9093_p2 = por %p9092_p1, %p9091_p0 }
 0x5ee   : > { %6118 = vmatpush1.msra.mxu1 %v10593_v4  ;;  %6052 = vmatmul.mubr.f32.vlgmr.msra.gmra.mxu0 %v11613_v21  ;;  %v6745_v3 = vshrl.u32 %v6744_v52, 23  ;;  %v11626_v4 = vmov 2102212464  }
 0x5ef   : > { %5947 = vmatmul.mubr.f32.gmra.mxu1 %v11624_v41  ;;  %6057 = vmatprep.mubr.f32.mxu0 %v11530_v48  ;;  %v6749_v12 = vor.u32 8388608, %v6748_v33  ;;  %p9094_p3 = pnand %p9093_p2, %p9087_p13 }
 0x5f0   : > { %5952 = vmatprep.mubr.f32.mxu1 %v11530_v48  ;;  %v8971_v46 = vadd.s32 4294967169, %v6745_v3 }
 0x5f1   : > { %v6789_v3 = vshll.u32 %v6749_v12, 8 }
 0x5f2   : > { %6059 = vmatmul.mubr.f32.gmra.mxu0 %v11615_v39  ;;  %v6751_v16 = vadd.s32 1, %v8971_v46 }
 0x5f3   : > { %5956 = vmatmul.mubr.f32.gmra.mxu1 %v11625_v56  ;;  %6064 = vmatprep.mubr.f32.mxu0 %v11530_v48 }
 0x5f4   : > { %6151 = vmatprep.mubr.f32.mxu1 %v11530_v48  ;;  %vm6752_vm11 = vcmp.gt.s32.totalorder %v6751_v16, 0 }
 0x5f5   : > { %v6753_v23 = vsel %vm6752_vm11, %v6751_v16, 0  ;;  %vm6833_vm11 = vweird.f32 %v10730_v49 }
 0x5f6   : > { %6066 = vmatmul.mubr.f32.gmra.mxu0 %v11617_v10  ;;  %v6755_v36 = vand.u32 31, %v6753_v23  ;;  %v6754_v8 = vshrl.u32 %v6753_v23, 5 }
 0x5f7   : > { %6153 = vmatmul.mubr.f32.vlgmr.msra.gmra.mxu1 %v11613_v21  ;;  %6071 = vmatprep.mubr.f32.mxu0 %v11530_v48 }
 0x5f8   : > { %6158 = vmatprep.mubr.f32.mxu1 %v11530_v48  ;;  %v6756_v55 = vsub.s32 32, %v6755_v36  ;;  %v6767_v38 = vshll.u32 %v11626_v4, %v6755_v36  ;;  %v6770_v29 = vshll.u32 %v11627_v26, %v6755_v36  ;;  %v6758_v51 = vshll.u32 %v11629_v42, %v6755_v36 }
 0x5f9   : > { %v6761_v19 = vshll.u32 %v11630_v37, %v6755_v36  ;;  %v6764_v50 = vshll.u32 %v11631_v18, %v6755_v36  ;;  %vm6776_vm12 = vcmp.lt.s32.totalorder %v6754_v8, 4  ;;  %vm6773_vm13 = vcmp.lt.s32.totalorder %v6754_v8, 1 }
 0x5fa   : > { %6073 = vmatmul.mubr.f32.gmra.mxu0 %v11618_v13  ;;  %v6768_v20 = vshrl.u32 %v11627_v26, %v6756_v55  ;;  %v6771_v11 = vshrl.u32 %v11628_v45, %v6756_v55  ;;  %v6759_v57 = vshrl.u32 %v11630_v37, %v6756_v55  ;;  %v6762_v43 = vshrl.u32 %v11631_v18, %v6756_v55 }
 0x5fb   : > { %6160 = vmatmul.mubr.f32.gmra.mxu1 %v11615_v39  ;;  %6260 = vmatprep.mubr.f32.mxu0 %v11530_v48  ;;  %v6765_v59 = vshrl.u32 %v11626_v4, %v6756_v55  ;;  %vm6775_vm14 = vcmp.lt.s32.totalorder %v6754_v8, 3  ;;  %vm6774_vm15 = vcmp.lt.s32.totalorder %v6754_v8, 2  ;;  %v6757_v4 = vshrl.u32 %v11629_v42, %v6756_v55 }
 0x5fc   : > { %6165 = vmatprep.mubr.f32.mxu1 %v11530_v48  ;;  %v6769_v58 = vor.u32 %v6768_v20, %v6767_v38  ;;  %v6772_v47 = vor.u32 %v6771_v11, %v6770_v29  ;;  %v6760_v5 = vor.u32 %v6759_v57, %v6758_v51  ;;  %v6763_v28 = vor.u32 %v6762_v43, %v6761_v19 }
 0x5fd   : > { %v6766_v7 = vor.u32 %v6765_v59, %v6764_v50 }
 0x5fe   : > { %v6782_v17 = vsel %vm6776_vm12, %v6769_v58, 920167782  ;;  %v6786_v0 = vsel %vm6776_vm12, %v6772_v47, 1326507024  ;;  %v6781_v32 = vsel %vm6773_vm13, %v6760_v5, %v6763_v28  ;;  %v6777_v29 = vsel %vm6773_vm13, %v6757_v4, %v6760_v5 }
 0x5ff   : > { %6167 = vmatmul.mubr.f32.gmra.mxu1 %v11617_v10  ;;  %v6783_v6 = vsel %vm6775_vm14, %v6766_v7, %v6782_v17  ;;  %v6785_v25 = vsel %vm6773_vm13, %v6763_v28, %v6766_v7  ;;  %v6787_v52 = vsel %vm6775_vm14, %v6769_v58, %v6786_v0  ;;  %v6778_v20 = vsel %vm6776_vm12, %v6766_v7, 2102212464 }
 0x600   : > { %6172 = vmatprep.mubr.f32.mxu1 %v11530_v48  ;;  %v6784_v46 = vsel %vm6774_vm15, %v6781_v32, %v6783_v6  ;;  %v6788_v16 = vsel %vm6774_vm15, %v6785_v25, %v6787_v52  ;;  %v6779_v45 = vsel %vm6775_vm14, %v6763_v28, %v6778_v20 }
 0x601   : > { %v10754_v23 = vmul.u32.u64.low %v6789_v3, %v6784_v46  ;;  %v10755_v36 = vmul.u32.u64.high %v6789_v3, %v6784_v46, %v10754_v23  ;;  %v10758_v38 = vmul.u32.u64.low %v6789_v3, %v6788_v16  ;;  %v10759_v26 = vmul.u32.u64.high %v6789_v3, %v6788_v16, %v10758_v38 }
 0x602   : > { %v6780_v11 = vsel %vm6774_vm15, %v6777_v29, %v6779_v45 }
 0x603   : > { %6174 = vmatmul.mubr.f32.gmra.mxu1 %v11618_v13  ;;  %v6799_v51 = vadd.s32 1, %v10755_v36  ;;  %vm6798_vm0 = vc.u32 %v10759_v26, %v10754_v23  ;;  %v6796_v37 = vmul.u32 %v6789_v3, %v6780_v11  ;;  %v6797_v5 = vadd.s32 %v10754_v23, %v10759_v26 }
 0x604   : > { %6376 = vmatprep.mubr.f32.mxu1 %v11530_v48 }
 0x605   : > { %v6800_v57 = vsel %vm6798_vm0, %v6799_v51, %v10755_v36 }
 0x606   : > { %v6801_v19 = vadd.s32 %v6800_v57, %v6796_v37 }
 0x608   : > { %v6802_v55 = vadd.s32 536870912, %v6801_v19 }
 0x60a   : > { %v6803_v42 = vshrl.u32 %v6802_v55, 30 }
 0x60c   : > { %v6804_v18 = vshll.u32 %v6803_v42, 30 }
 0x60e   : > { %v6805_v43 = vsub.s32 %v6801_v19, %v6804_v18 }
 0x610   : > { %v6807_v50 = vsub.s32 0, %v6805_v43 }
 0x612   : > { %v8972_v59 = vmin.u32 %v6807_v50, %v6805_v43 }
 0x614   : > { %v6809_v58 = vclz %v8972_v59 }
 0x616   : > { %v8973_v33 = vadd.s32 4294967294, %v6809_v58  ;;  %v6827_v58 = vsub.s32 4, %v6803_v42 }
 0x618   : > { %vm8974_vm4 = vcmp.lt.s32.totalorder %v8973_v33, 0 }
 0x619   : > { %v6812_v47 = vsel %vm8974_vm4, 0, %v8973_v33 }
 0x61a   : > { %v6817_v8 = vsub.s32 4294967266, %v6812_v47  ;;  %v6813_v28 = vsub.s32 32, %v6812_v47  ;;  %v6814_v17 = vshll.u32 %v6805_v43, %v6812_v47 }
 0x61c   : > { %v6818_v7 = vadd.s32 127, %v6817_v8  ;;  %v6815_v12 = vshrl.u32 %v6797_v5, %v6813_v28  ;;  %v6828_v5 = vsel %vm6743_vm5, %v6827_v58, %v6803_v42 }
 0x61e   : > { %v6819_v0 = vshll.u32 %v6818_v7, 23  ;;  %v6816_v6 = vor.u32 %v6815_v12, %v6814_v17 }
 0x620   : > { %v6820_v25 = vor.u32 4788187, %v6819_v0  ;;  %v6823_v16 = vcvt.s32.f32 %v6816_v6  ;;  %v6830_v0 = vsel %vm10780_vm6, 0, %v6828_v5 }
 0x621   : > { %v10811_v2 = vand.u32 3, %v6830_v0 }
 0x622   : > { %v6821_v46 = vand.u32 2147483647, %v6820_v25 }
 0x623   : > { %vm6940_vm10 = vcmp.eq.s32.totalorder %v10811_v2, 0  ;;  %vm6943_vm12 = vcmp.eq.s32.totalorder %v10811_v2, 2  ;;  %vm6939_vm13 = vcmp.lt.s32.totalorder %v10811_v2, 2 }
 0x624   : > { %v6824_v4 = vmul.f32 %v6823_v16, %v6821_v46  ;;  %v6834_v46 = vadd.s32 3, %v6830_v0 }
 0x626   : > { %v6825_v26 = vxor.u32 2147483648, %v6824_v4  ;;  %v10805_v42 = vand.u32 3, %v6834_v46 }
 0x628   : > { %v6826_v19 = vsel %vm6743_vm5, %v6825_v26, %v6824_v4  ;;  %vm6840_vm7 = vcmp.eq.s32.totalorder %v10805_v42, 2  ;;  %vm6837_vm8 = vcmp.eq.s32.totalorder %v10805_v42, 0  ;;  %vm6836_vm9 = vcmp.lt.s32.totalorder %v10805_v42, 2 }
 0x629   : > { %v6829_v50 = vsel %vm10780_vm6, %v10730_v49, %v6826_v19 }
 0x62a   : > { %9072 = vcosq.f32 %v6829_v50 }
 0x62b   : > { %9074 = vsinq.f32 %v6829_v50 }
 0x637   : > { %v10803_v19 = vpop.eup %9072 }
 0x638   : > { %v10807_v41 = vpop.eup %9074  ;;  %v11636_v0 = vxor.u32 2147483648, %v10803_v19 }
 0x639   : > { %v6838_v46 = vxor.u32 2147483648, %v10807_v41 }
 0x63a   : > { %v6842_v21 = vsel %vm6840_vm7, %v11636_v0, %v10807_v41 }
 0x68b   : > { %v10769_v32 = vpop.f32.mrf.mxu0 }
 0x68d   : > { %v5571_v52 = vpop.f32.mrf.mxu0 }
 0x68e   : > { %v5572_v39 = vadd.f32 %v5571_v52, %v11635_v60 }
 0x690   : > { %v5580_v3 = vpop.f32.mrf.mxu0 }
 0x691   : > { %v5581_v13 = vadd.f32 %v5580_v3, %v11634_v61  ;;  %v11637_v3 = vld [vmem:[#allocation41_spill] sm:$0xff] }
 0x692   : > { %v5582_v36 = vpop.f32.mrf.mxu0 }
 0x693   : > { %v5583_v34 = vadd.f32 %v5582_v36, %v11634_v61  ;;  %v5570_v36 = vadd.f32 %v10769_v32, %v11635_v60 }
 0x695   : > { %v5591_v38 = vpop.f32.mrf.mxu0  ;;  %v10771_v20 = vpop.f32.mrf.mxu1 }
 0x696   : > { %v5592_v61 = vadd.f32 %v5591_v38, %v11637_v3 }
 0x697   : > { %v5593_v29 = vpop.f32.mrf.mxu0  ;;  %v5716_v23 = vpop.f32.mrf.mxu1 }
 0x698   : > { %v5594_v30 = vadd.f32 %v5593_v29, %v11637_v3  ;;  %v5717_v52 = vadd.f32 %v5716_v23, %v5572_v39 }
 0x699   : > { %v10773_v45 = vpop.f32.mrf.mxu0 }
 0x69a   : > { %v5721_v11 = vpop.f32.mrf.mxu1  ;;  %v5603_v38 = vadd.f32 %v10773_v45, %v9779_v31 }
 0x69b   : > { %v10776_v51 = vpop.f32.mrf.mxu0  ;;  %v5722_v63 = vadd.f32 %v5721_v11, %v5581_v13  ;;  %v6839_v13 = vsel %vm6837_vm8, %v10803_v19, %v6838_v46 }
 0x69c   : > { %v5723_v37 = vpop.f32.mrf.mxu1  ;;  %v5605_v23 = vadd.f32 %v10776_v51, %v9779_v31 }
 0x69d   : > { %v10786_v55 = vpop.f32.mrf.mxu0  ;;  %v5724_v14 = vadd.f32 %v5723_v37, %v5583_v34  ;;  %v5715_v37 = vadd.f32 %v10771_v20, %v5570_v36 }
 0x69e   : > { %v5728_v18 = vpop.f32.mrf.mxu1 }
 0x69f   : > { %v5826_v43 = vpop.f32.mrf.mxu0  ;;  %v5729_v0 = vadd.f32 %v5728_v18, %v5592_v61  ;;  %v5825_v11 = vadd.f32 %v10786_v55, %v5715_v37 }
 0x6a0   : > { %v5730_v59 = vpop.f32.mrf.mxu1  ;;  %v5827_v39 = vadd.f32 %v5826_v43, %v5717_v52 }
 0x6a1   : > { %v5731_v29 = vadd.f32 %v5730_v59, %v5594_v30 }
 0x6a2   : > { %v10791_v33 = vpop.f32.mrf.mxu1  ;;  %v5832_v47 = vpop.f32.mrf.mxu0 }
 0x6a3   : > { %v5833_v62 = vadd.f32 %v5832_v47, %v5722_v63  ;;  %v5736_v18 = vadd.f32 %v10791_v33, %v5603_v38  ;;  %v6843_v33 = vsel %vm6836_vm9, %v6839_v13, %v6842_v21 }
 0x6a4   : > { %v10793_v27 = vpop.f32.mrf.mxu1  ;;  %v5834_v8 = vpop.f32.mrf.mxu0 }
 0x6a5   : > { %v5835_v34 = vadd.f32 %v5834_v8, %v5724_v14  ;;  %v5738_v3 = vadd.f32 %v10793_v27, %v5605_v23 }
 0x6a6   : > { %v5840_v28 = vpop.f32.mrf.mxu0  ;;  %v5930_v7 = vpop.f32.mrf.mxu1 }
 0x6a7   : > { %v5841_v20 = vadd.f32 %v5840_v28, %v5729_v0  ;;  %v5931_v60 = vadd.f32 %v5930_v7, %v5825_v11 }
 0x6a8   : > { %v5842_v17 = vpop.f32.mrf.mxu0  ;;  %v5932_v12 = vpop.f32.mrf.mxu1 }
 0x6a9   : > { %v5843_v47 = vadd.f32 %v5842_v17, %v5731_v29  ;;  %v5933_v8 = vadd.f32 %v5932_v12, %v5827_v39 }
 0x6aa   : > { %v10799_v6 = vpop.f32.mrf.mxu0 }
 0x6ab   : > { %v5939_v25 = vpop.f32.mrf.mxu1 }
 0x6ac   : > { %v10801_v16 = vpop.f32.mrf.mxu0  ;;  %v5940_v61 = vadd.f32 %v5939_v25, %v5833_v62 }
 0x6ad   : > { %v5941_v4 = vpop.f32.mrf.mxu1 }
 0x6ae   : > { %v6053_v26 = vpop.f32.mrf.mxu0  ;;  %v5942_v14 = vadd.f32 %v5941_v4, %v5835_v34  ;;  %v5849_v4 = vadd.f32 %v10799_v6, %v5736_v18 }
 0x6af   : > { %v5948_v56 = vpop.f32.mrf.mxu1  ;;  %v6054_v28 = vadd.f32 %v6053_v26, %v5931_v60  ;;  %v6942_v60 = vsel %vm6940_vm10, %v10803_v19, %v6838_v46 }
 0x6b0   : > { %v6055_v50 = vpop.f32.mrf.mxu0  ;;  %v5949_v45 = vadd.f32 %v5948_v56, %v5841_v20 }
 0x6b1   : > { %v5950_v58 = vpop.f32.mrf.mxu1  ;;  %v6056_v52 = vadd.f32 %v6055_v50, %v5933_v8 }
 0x6b2   : > { %v6060_v40 = vpop.f32.mrf.mxu0  ;;  %v5951_v51 = vadd.f32 %v5950_v58, %v5843_v47 }
 0x6b3   : > { %v5957_v5 = vpop.f32.mrf.mxu1  ;;  %v6061_v30 = vadd.f32 %v6060_v40, %v5940_v61 }
 0x6b4   : > { %v6062_v9 = vpop.f32.mrf.mxu0  ;;  %v5958_v27 = vadd.f32 %v5957_v5, %v5849_v4 }
 0x6b5   : > { %v10815_v10 = vpop.f32.mrf.mxu1  ;;  %v6063_v36 = vadd.f32 %v6062_v9, %v5942_v14  ;;  %v5851_v9 = vadd.f32 %v10801_v16, %v5738_v3 }
 0x6b6   : > { %v6067_v57 = vpop.f32.mrf.mxu0 }
 0x6b7   : > { %v6154_v1 = vpop.f32.mrf.mxu1  ;;  %v6068_v62 = vadd.f32 %v6067_v57, %v5949_v45  ;;  %v5960_v6 = vadd.f32 %v10815_v10, %v5851_v9  ;;  %v6955_v45 = vrot.slane %v10730_v49, %v9324_v54 }
 0x6b8   : > { %v6069_v24 = vpop.f32.mrf.mxu0  ;;  %v6155_v40 = vadd.f32 %v6154_v1, %v6054_v28  ;;  %v11638_v1 = vxor.u32 2147483648, %v10803_v19 }
 0x6b9   : > { %v6156_v32 = vpop.f32.mrf.mxu1  ;;  %v6070_v7 = vadd.f32 %v6069_v24, %v5951_v51  ;;  %v6844_v24 = vsel %vm6833_vm11, nan, %v6843_v33 }
 0x6ba   : > { %v6074_v43 = vpop.f32.mrf.mxu0  ;;  %v6157_v56 = vadd.f32 %v6156_v32, %v6056_v52  ;;  %v6945_v57 = vsel %vm6943_vm12, %v11638_v1, %v10807_v41  ;;  %v6180_v10 = vmax.f32 %v6155_v40, 0.0  ;;  %v6960_v41 = vcombine.low %v6844_v24, %v6844_v24 }
 0x6bb   : > { %v6161_v63 = vpop.f32.mrf.mxu1  ;;  %v6075_v26 = vadd.f32 %v6074_v43, %v5958_v27  ;;  %v6946_v19 = vsel %vm6939_vm13, %v6942_v60, %v6945_v57 }
 0x6bc   : > { %v6162_v25 = vadd.f32 %v6161_v63, %v6061_v30  ;;  %v6076_v17 = vpop.f32.mrf.mxu0  ;;  %v6181_v5 = vmax.f32 %v6157_v56, 0.0  ;;  %v10875_v18 = vand.u32 4294901760, %v6180_v10  ;;  %v6947_v43 = vsel %vm6833_vm11, nan, %v6946_v19 }
 0x6bd   : > { %v6163_v59 = vpop.f32.mrf.mxu1  ;;  %v6077_v3 = vadd.f32 %v6076_v17, %v5960_v6 }
 0x6be   : > { %v6164_v55 = vadd.f32 %v6163_v59, %v6063_v36  ;;  %v6182_v50 = vmax.f32 %v6162_v25, 0.0  ;;  %v10868_v11 = vand.u32 4294901760, %v6181_v5  ;;  %v6967_v59 = vrot.slane %v6960_v41, %v9324_v54 }
 0x6bf   : > { %v6168_v34 = vpop.f32.mrf.mxu1  ;;  %v10906_v28 = vsub.f32 %v6180_v10, %v10875_v18 }
 0x6c0   : > { %v6169_v12 = vadd.f32 %v6168_v34, %v6068_v62  ;;  %v6183_v42 = vmax.f32 %v6164_v55, 0.0  ;;  %v10864_v23 = vand.u32 4294901760, %v6182_v50  ;;  %v10897_v4 = vsub.f32 %v6181_v5, %v10868_v11 }
 0x6c1   : > { %v6170_v37 = vpop.f32.mrf.mxu1  ;;  %v6956_v34 = vcombine.high %v6955_v45, %v6955_v45  ;;  %v6968_v27 = vcombine.high %v6967_v59, %v6967_v59 }
 0x6c2   : > { %v6171_v21 = vadd.f32 %v6170_v37, %v6070_v7  ;;  %v6184_v16 = vmax.f32 %v6169_v12, 0.0  ;;  %v10860_v38 = vand.u32 4294901760, %v6183_v42  ;;  %v10891_v30 = vsub.f32 %v6182_v50, %v10864_v23 }
 0x6c3   : > { %v6175_v58 = vpop.f32.mrf.mxu1  ;;  %v6978_v7 = vrot.slane %v6947_v43, %v9324_v54  ;;  %v6334_v17 = vand.u32 4294901760, %v10897_v4  ;;  %v6340_v12 = vand.u32 4294901760, %v10906_v28  ;;  %v11647_v43 = vld [vmem:[#allocation10_spill] sm:$0xff] }
 0x6c4   : > { %v6185_v46 = vmax.f32 %v6171_v21, 0.0  ;;  %v6176_v0 = vadd.f32 %v6175_v58, %v6075_v26  ;;  %v10858_v32 = vand.u32 4294901760, %v6184_v16  ;;  %v10881_v8 = vsub.f32 %v6183_v42, %v10860_v38 }
 0x6c5   : > { %v6177_v13 = vpop.f32.mrf.mxu1  ;;  %v6328_v33 = vand.u32 4294901760, %v10891_v30  ;;  %v6983_v42 = vsel %vm540_vm1, %v6956_v34, %v6968_v27  ;;  %v6979_v21 = vcombine.low %v6978_v7, %v6978_v7  ;;  %v6982_v58 = vsel %vm540_vm1, %v6955_v45, %v6967_v59  ;;  %v11639_v45 = vld [vmem:[#allocation16_spill] sm:$0xff] }
 0x6c6   : > { %v10862_v29 = vand.u32 4294901760, %v6185_v46  ;;  %v6186_v39 = vmax.f32 %v6176_v0, 0.0  ;;  %v6178_v14 = vadd.f32 %v6177_v13, %v6077_v3  ;;  %v10878_v47 = vsub.f32 %v6184_v16, %v10858_v32  ;;  %v11648_v59 = vld [vmem:[#allocation12_spill] sm:$0xff] }
 0x6c7   : > { %v6322_v25 = vand.u32 4294901760, %v10881_v8  ;;  %v6329_v6 = vsub.f32 %v10891_v30, %v6328_v33  ;;  %v6335_v16 = vsub.f32 %v10897_v4, %v6334_v17  ;;  %v6341_v24 = vsub.f32 %v10906_v28, %v6340_v12 }
 0x6c8   : > { %v10871_v20 = vsub.f32 %v6185_v46, %v10862_v29  ;;  %v10873_v61 = vand.u32 4294901760, %v6186_v39  ;;  %v6187_v63 = vmax.f32 %v6178_v14, 0.0  ;;  %v6316_v49 = vand.u32 4294901760, %v10878_v47 }
 0x6c9   : > { %v6323_v60 = vsub.f32 %v10881_v8, %v6322_v25  ;;  %v6985_v5 = vsel %vm543_vm2, %v6983_v42, %v6978_v7  ;;  %v6330_v3 = vand.u32 4294901760, %v6329_v6  ;;  %v6984_v46 = vsel %vm543_vm2, %v6982_v58, %v6979_v21 }
 0x6ca   : > { %v10884_v2 = vsub.f32 %v6186_v39, %v10873_v61  ;;  %v10886_v36 = vand.u32 4294901760, %v6187_v63  ;;  %v6310_v55 = vand.u32 4294901760, %v10871_v20  ;;  %v6317_v37 = vsub.f32 %v10878_v47, %v6316_v49 }
 0x6cb   : > { %v6324_v57 = vand.u32 4294901760, %v6323_v60  ;;  %v6336_v0 = vand.u32 4294901760, %v6335_v16  ;;  %v6342_v10 = vand.u32 4294901760, %v6341_v24  ;;  %v6990_v13 = vsel %vm579_vm3, %v6985_v5, 0 }
 0x6cc   : > { %v6304_v51 = vand.u32 4294901760, %v10884_v2  ;;  %v10901_v52 = vsub.f32 %v6187_v63, %v10886_v36  ;;  %6213 = vmatprep.subr.mxu0 %v10886_v36  ;;  %v6311_v40 = vsub.f32 %v10871_v20, %v6310_v55  ;;  %v6318_v1 = vand.u32 4294901760, %v6317_v37 }
 0x6cd   : > { %6215 = vmatpush1.msra.mxu0 %v10873_v61  ;;  %v6987_v39 = vsel %vm579_vm3, %v6984_v46, 0  ;;  %v7022_v14 = vand.u32 4294901760, %v6990_v13 }
 0x6ce   : > { %6217 = vmatprep.subr.mxu0 %v10862_v29  ;;  %v6298_v62 = vand.u32 4294901760, %v10901_v52  ;;  %v6305_v9 = vsub.f32 %v10884_v2, %v6304_v51  ;;  %v6312_v50 = vand.u32 4294901760, %v6311_v40  ;;  %v10960_v19 = vand.u32 4294901760, %v6987_v39 }
 0x6cf   : > { %6219 = vmatpush1.msra.mxu0 %v10858_v32  ;;  %v7134_v41 = vsub.f32 %v6990_v13, %v7022_v14 }
 0x6d0   : > { %6221 = vmatprep.subr.mxu0 %v10860_v38  ;;  %v6299_v56 = vsub.f32 %v10901_v52, %v6298_v62  ;;  %v6306_v26 = vand.u32 4294901760, %v6305_v9  ;;  %v7140_v63 = vsub.f32 %v6987_v39, %v10960_v19  ;;  %v11655_v9 = vld [vmem:[#allocation44_spill] sm:$0xff] }
 0x6d1   : > { %6223 = vmatpush1.msra.mxu0 %v10864_v23 }
 0x6d2   : > { %6225 = vmatprep.subr.mxu0 %v10868_v11  ;;  %v6300_v54 = vand.u32 4294901760, %v6299_v56 }
 0x6d3   : > { %6227 = vmatpush1.msra.mxu0 %v10875_v18 }
 0x6d4   : > { %6266 = vmatmul.mubr.f32.vlgmr.msra.gmra.mxu0 %v9929_v22  ;;  %6301 = vmatprep.subr.mxu1 %v6300_v54 }
 0x6d5   : > { %6410 = vmatprep.subr.mxu0 %v10901_v52  ;;  %6307 = vmatpush1.msra.mxu1 %v6306_v26  ;;  %v11651_v52 = vld [vmem:[#allocation15_spill] sm:$0xff] }
 0x6d6   : > { %6413 = vmatpush1.msra.mxu0 %v10884_v2  ;;  %6313 = vmatprep.subr.mxu1 %v6312_v50 }
 0x6d7   : > { %6416 = vmatprep.subr.mxu0 %v10871_v20  ;;  %6319 = vmatpush1.msra.mxu1 %v6318_v1  ;;  %v7135_v20 = vand.u32 4294901760, %v7134_v41 }
 0x6d8   : > { %6419 = vmatpush1.msra.mxu0 %v10878_v47  ;;  %6325 = vmatprep.subr.mxu1 %v6324_v57  ;;  %v7141_v47 = vand.u32 4294901760, %v7140_v63 }
 0x6d9   : > { %6422 = vmatprep.subr.mxu0 %v10881_v8  ;;  %6331 = vmatpush1.msra.mxu1 %v6330_v3  ;;  %v7136_v8 = vsub.f32 %v7134_v41, %v7135_v20 }
 0x6da   : > { %6425 = vmatpush1.msra.mxu0 %v10891_v30  ;;  %6337 = vmatprep.subr.mxu1 %v6336_v0  ;;  %v7142_v2 = vsub.f32 %v7140_v63, %v7141_v47  ;;  %v11646_v30 = vld [vmem:[#allocation8_spill] sm:$0xff] }
 0x6db   : > { %6428 = vmatprep.subr.mxu0 %v10897_v4  ;;  %6343 = vmatpush1.msra.mxu1 %v6342_v10  ;;  %v11649_v4 = vld [vmem:[#allocation11_spill] sm:$0xff] }
 0x6dc   : > { %6431 = vmatpush1.msra.mxu0 %v10906_v28  ;;  %6378 = vmatmul.mubr.f32.vlgmr.msra.gmra.mxu1 %v9790_v44  ;;  %v11653_v28 = vld [vmem:[#allocation14_spill] sm:$0xff] }
 0x6dd   : > { %6464 = vmatprep.mubr.f32.mxu0 %v11530_v48  ;;  %6498 = vmatprep.subr.mxu1 %v10886_v36 }
 0x6de   : > { %6582 = vmatprep.subr.mxu0 %v6298_v62  ;;  %6467 = vmatmul.mubr.f32.vlgmr.msra.gmra.mxu0 %v9807_v15 }
 0x6df   : > { %6500 = vmatpush1.msra.mxu1 %v10873_v61  ;;  %6586 = vmatpush1.msra.mxu0 %v6304_v51  ;;  %v11650_v51 = vld [vmem:[#allocation9_spill] sm:$0xff] }
 0x6e0   : > { %6502 = vmatprep.subr.mxu1 %v10862_v29  ;;  %6590 = vmatprep.subr.mxu0 %v6310_v55  ;;  %v11652_v55 = vld [vmem:[#allocation13_spill] sm:$0xff] }
 0x6e1   : > { %6504 = vmatpush1.msra.mxu1 %v10858_v32  ;;  %6594 = vmatpush1.msra.mxu0 %v6316_v49  ;;  %v11654_v49 = vld [vmem:[#allocation17_spill] sm:$0xff] }
 0x6e2   : > { %6506 = vmatprep.subr.mxu1 %v10860_v38  ;;  %6598 = vmatprep.subr.mxu0 %v6322_v25 }
 0x6e3   : > { %6508 = vmatpush1.msra.mxu1 %v10864_v23  ;;  %6602 = vmatpush1.msra.mxu0 %v6328_v33 }
 0x6e4   : > { %6510 = vmatprep.subr.mxu1 %v10868_v11  ;;  %6606 = vmatprep.subr.mxu0 %v6334_v17 }
 0x6e5   : > { %6512 = vmatpush1.msra.mxu1 %v10875_v18  ;;  %6545 = vmatprep.mubr.f32.mxu1 %v11530_v48 }
 0x6e6   : > { %6610 = vmatpush1.msra.mxu0 %v6340_v12  ;;  %6643 = vmatprep.mubr.f32.mxu0 %v11530_v48 }
 0x6e7   : > { %6549 = vmatmul.mubr.f32.vlgmr.msra.gmra.mxu1 %v9871_v35  ;;  %6645 = vmatmul.mubr.f32.vlgmr.msra.gmra.mxu0 %v9790_v44 }
 0x6e8   : > { %6676 = vmatprep.subr.mxu1 %v10886_v36  ;;  %7023 = vmatprep.subr.mxu0 %v7022_v14  ;;  %v7137_v36 = vand.u32 4294901760, %v7136_v8 }
 0x6e9   : > { %6678 = vmatpush1.msra.mxu1 %v10873_v61  ;;  %7025 = vmatpush1.msra.mxu0 %v10960_v19  ;;  %v7143_v61 = vand.u32 4294901760, %v7142_v2 }
 0x6ea   : > { %6680 = vmatprep.subr.mxu1 %v10862_v29  ;;  %7058 = vmatprep.mubr.f32.mxu0 %v11530_v48  ;;  %v11640_v29 = vld [vmem:[#allocation18_spill] sm:$0xff] }
 0x6eb   : > { %6682 = vmatpush1.msra.mxu1 %v10858_v32  ;;  %7064 = vmatmul.mubr.f32.vlgmr.msra.gmra.mxu0 %v11639_v45  ;;  %v11641_v32 = vld [vmem:[#allocation19_spill] sm:$0xff] }
 0x6ec   : > { %6684 = vmatprep.subr.mxu1 %v10860_v38  ;;  %6723 = vmatprep.mubr.f32.mxu1 %v11530_v48  ;;  %v11642_v38 = vld [vmem:[#allocation5_spill] sm:$0xff] }
 0x6ed   : > { %6686 = vmatpush1.msra.mxu1 %v10864_v23  ;;  %7069 = vmatprep.mubr.f32.mxu0 %v11530_v48  ;;  %v11643_v23 = vld [vmem:[#allocation20_spill] sm:$0xff] }
 0x6ee   : > { %6688 = vmatprep.subr.mxu1 %v10868_v11  ;;  %7238 = vmatprep.subr.mxu0 %v7134_v41  ;;  %v11644_v11 = vld [vmem:[#allocation7_spill] sm:$0xff] }
 0x6ef   : > { %6690 = vmatpush1.msra.mxu1 %v10875_v18  ;;  %7075 = vmatmul.mubr.f32.gmra.mxu0 %v11640_v29  ;;  %v11645_v18 = vld [vmem:[#allocation6_spill] sm:$0xff] }
 0x6f0   : > { %6725 = vmatmul.mubr.f32.vlgmr.msra.gmra.mxu1 %v9790_v44  ;;  %7138 = vmatprep.subr.mxu1 %v7137_v36 }
 0x6f1   : > { %7080 = vmatprep.mubr.f32.mxu0 %v11530_v48  ;;  %7144 = vmatpush1.msra.mxu1 %v7143_v61 }
 0x6f2   : > { %7177 = vmatprep.mubr.f32.mxu1 %v11530_v48  ;;  %7241 = vmatpush1.msra.mxu0 %v7140_v63 }
 0x6f3   : > { %7086 = vmatmul.mubr.f32.gmra.mxu0 %v11641_v32  ;;  %7338 = vmatprep.subr.mxu1 %v7022_v14 }
 0x6f4   : > { %7179 = vmatmul.mubr.f32.vlgmr.msra.gmra.mxu1 %v11642_v38  ;;  %7091 = vmatprep.mubr.f32.mxu0 %v11530_v48 }
 0x6f5   : > { %7184 = vmatprep.mubr.f32.mxu1 %v11530_v48  ;;  %7340 = vmatpush1.msra.mxu1 %v10960_v19 }
 0x6f6   : > { %7443 = vmatprep.subr.mxu0 %v7135_v20  ;;  %7540 = vmatprep.subr.mxu1 %v7022_v14 }
 0x6f7   : > { %7097 = vmatmul.mubr.f32.gmra.mxu0 %v11643_v23 }
 0x6f8   : > { %7186 = vmatmul.mubr.f32.gmra.mxu1 %v11644_v11  ;;  %7274 = vmatprep.mubr.f32.mxu0 %v11530_v48 }
 0x6f9   : > { %7191 = vmatprep.mubr.f32.mxu1 %v11530_v48 }
 0x6fb   : > { %7277 = vmatmul.mubr.f32.vlgmr.msra.gmra.mxu0 %v11645_v18 }
 0x6fc   : > { %7193 = vmatmul.mubr.f32.gmra.mxu1 %v11646_v30  ;;  %7282 = vmatprep.mubr.f32.mxu0 %v11530_v48 }
 0x6fd   : > { %7198 = vmatprep.mubr.f32.mxu1 %v11530_v48  ;;  %7447 = vmatpush1.msra.mxu0 %v7141_v47 }
 0x6ff   : > { %7285 = vmatmul.mubr.f32.gmra.mxu0 %v11647_v43 }
 0x700   : > { %7200 = vmatmul.mubr.f32.gmra.mxu1 %v11648_v59  ;;  %7290 = vmatprep.mubr.f32.mxu0 %v11530_v48 }
 0x701   : > { %7373 = vmatprep.mubr.f32.mxu1 %v11530_v48 }
 0x703   : > { %7293 = vmatmul.mubr.f32.gmra.mxu0 %v11649_v4 }
 0x704   : > { %7377 = vmatmul.mubr.f32.vlgmr.msra.gmra.mxu1 %v11650_v51  ;;  %7298 = vmatprep.mubr.f32.mxu0 %v11530_v48 }
 0x705   : > { %7382 = vmatprep.mubr.f32.mxu1 %v11530_v48  ;;  %7542 = vmatpush1.msra.mxu1 %v10960_v19 }
 0x707   : > { %7301 = vmatmul.mubr.f32.gmra.mxu0 %v11651_v52 }
 0x708   : > { %7386 = vmatmul.mubr.f32.gmra.mxu1 %v11652_v55  ;;  %7480 = vmatprep.mubr.f32.mxu0 %v11530_v48 }
 0x709   : > { %7391 = vmatprep.mubr.f32.mxu1 %v11530_v48 }
 0x70b   : > { %7482 = vmatmul.mubr.f32.vlgmr.msra.gmra.mxu0 %v11642_v38 }
 0x70c   : > { %7395 = vmatmul.mubr.f32.gmra.mxu1 %v11653_v28  ;;  %7487 = vmatprep.mubr.f32.mxu0 %v11530_v48 }
 0x70d   : > { %7400 = vmatprep.mubr.f32.mxu1 %v11530_v48 }
 0x70f   : > { %7489 = vmatmul.mubr.f32.gmra.mxu0 %v11644_v11 }
 0x710   : > { %7404 = vmatmul.mubr.f32.gmra.mxu1 %v11654_v49  ;;  %7494 = vmatprep.mubr.f32.mxu0 %v11530_v48 }
 0x711   : > { %7575 = vmatprep.mubr.f32.mxu1 %v11530_v48 }
 0x713   : > { %7496 = vmatmul.mubr.f32.gmra.mxu0 %v11646_v30 }
 0x714   : > { %7577 = vmatmul.mubr.f32.vlgmr.msra.gmra.mxu1 %v11642_v38  ;;  %7501 = vmatprep.mubr.f32.mxu0 %v11530_v48 }
 0x715   : > { %7582 = vmatprep.mubr.f32.mxu1 %v11530_v48 }
 0x717   : > { %7503 = vmatmul.mubr.f32.gmra.mxu0 %v11648_v59 }
 0x718   : > { %7584 = vmatmul.mubr.f32.gmra.mxu1 %v11644_v11  ;;  %7684 = vmatprep.mubr.f32.mxu0 %v11530_v48 }
 0x719   : > { %7589 = vmatprep.mubr.f32.mxu1 %v11530_v48 }
 0x71c   : > { %7591 = vmatmul.mubr.f32.gmra.mxu1 %v11646_v30 }
 0x71d   : > { %7596 = vmatprep.mubr.f32.mxu1 %v11530_v48 }
 0x720   : > { %7598 = vmatmul.mubr.f32.gmra.mxu1 %v11648_v59 }
 0x721   : > { %7833 = vmatprep.mubr.f32.mxu1 %v11530_v48 }
 0x794   : > { %v6267_v62 = vpop.f32.mrf.mxu0 }
 0x795   : > { %v6268_v27 = vadd.f32 %v6267_v62, %v11655_v9 }
 0x796   : > { %v6269_v25 = vpop.f32.mrf.mxu0 }
 0x797   : > { %v6270_v56 = vadd.f32 %v6269_v25, %v11655_v9 }
 0x79c   : > { %v6379_v34 = vpop.f32.mrf.mxu1 }
 0x79d   : > { %v6380_v40 = vadd.f32 %v6379_v34, %v6268_v27 }
 0x79e   : > { %v6468_v33 = vpop.f32.mrf.mxu0  ;;  %v6381_v7 = vpop.f32.mrf.mxu1 }
 0x79f   : > { %v6382_v12 = vadd.f32 %v6381_v7, %v6270_v56  ;;  %v6469_v60 = vadd.f32 %v6468_v33, %v6380_v40  ;;  %v11656_v56 = vld [vmem:[#allocation22_spill] sm:$0xff] }
 0x7a0   : > { %v6470_v17 = vpop.f32.mrf.mxu0 }
 0x7a1   : > { %v6471_v42 = vadd.f32 %v6470_v17, %v6382_v12 }
 0x7a7   : > { %v6550_v37 = vpop.f32.mrf.mxu1  ;;  %v6646_v54 = vpop.f32.mrf.mxu0 }
 0x7a8   : > { %v6551_v21 = vadd.f32 %v6550_v37, %v6469_v60  ;;  %v11657_v60 = vld [vmem:[#allocation23_spill] sm:$0xff] }
 0x7a9   : > { %v6648_v6 = vpop.f32.mrf.mxu0  ;;  %v6552_v26 = vpop.f32.mrf.mxu1 }
 0x7aa   : > { %v6553_v16 = vadd.f32 %v6552_v26, %v6471_v42  ;;  %v6647_v24 = vadd.f32 %v6646_v54, %v6551_v21 }
 0x7ab   : > { %v7065_v50 = vpop.f32.mrf.mxu0 }
 0x7ac   : > { %v6649_v5 = vadd.f32 %v6648_v6, %v6553_v16 }
 0x7ad   : > { %v7067_v58 = vpop.f32.mrf.mxu0 }
 0x7ae   : > { %v7068_v54 = vadd.f32 %v7067_v58, %v11558_v53 }
 0x7af   : > { %v7076_v1 = vpop.f32.mrf.mxu0 }
 0x7b0   : > { %v6726_v57 = vpop.f32.mrf.mxu1  ;;  %v7077_v12 = vadd.f32 %v7076_v1, %v11656_v56 }
 0x7b1   : > { %v6727_v3 = vadd.f32 %v6726_v57, %v6647_v24  ;;  %v7078_v46 = vpop.f32.mrf.mxu0  ;;  %v7066_v24 = vadd.f32 %v7065_v50, %v11558_v53 }
 0x7b2   : > { %v6728_v0 = vpop.f32.mrf.mxu1  ;;  %v7079_v40 = vadd.f32 %v7078_v46, %v11656_v56 }
 0x7b3   : > { %v6729_v10 = vadd.f32 %v6728_v0, %v6649_v5  ;;  %v7087_v13 = vpop.f32.mrf.mxu0  ;;  %9076 = vtanh.f32 %v6727_v3 }
 0x7b4   : > { %v7180_v39 = vpop.f32.mrf.mxu1  ;;  %v7088_v6 = vadd.f32 %v7087_v13, %v11657_v60 }
 0x7b5   : > { %9078 = vtanh.f32 %v6729_v10  ;;  %v7089_v14 = vpop.f32.mrf.mxu0  ;;  %v11658_v10 = vld [vmem:[#allocation21_spill] sm:$0xff] }
 0x7b6   : > { %v7182_v19 = vpop.f32.mrf.mxu1  ;;  %v7090_v21 = vadd.f32 %v7089_v14, %v11657_v60 }
 0x7b7   : > { %v7098_v41 = vpop.f32.mrf.mxu0  ;;  %v7183_v57 = vadd.f32 %v7182_v19, %v7068_v54 }
 0x7b8   : > { %v7187_v63 = vpop.f32.mrf.mxu1 }
 0x7b9   : > { %v7100_v20 = vpop.f32.mrf.mxu0  ;;  %v7188_v16 = vadd.f32 %v7187_v63, %v7077_v12 }
 0x7ba   : > { %v7189_v47 = vpop.f32.mrf.mxu1 }
 0x7bb   : > { %v7278_v8 = vpop.f32.mrf.mxu0  ;;  %v7190_v26 = vadd.f32 %v7189_v47, %v7079_v40  ;;  %v7101_v40 = vadd.f32 %v7100_v20, %v11658_v10 }
 0x7bc   : > { %v7194_v2 = vpop.f32.mrf.mxu1 }
 0x7bd   : > { %v7280_v45 = vpop.f32.mrf.mxu0  ;;  %v7195_v5 = vadd.f32 %v7194_v2, %v7088_v6 }
 0x7be   : > { %v7196_v36 = vpop.f32.mrf.mxu1  ;;  %v7281_v58 = vadd.f32 %v7280_v45, %v7183_v57 }
 0x7bf   : > { %v7286_v61 = vpop.f32.mrf.mxu0  ;;  %v7197_v1 = vadd.f32 %v7196_v36, %v7090_v21 }
 0x7c0   : > { %v7201_v29 = vpop.f32.mrf.mxu1  ;;  %v9077_v32 = vpop.eup %9076 }
 0x7c1   : > { %v7288_v38 = vpop.f32.mrf.mxu0 }
 0x7c2   : > { %v9079_v23 = vpop.eup %9078  ;;  %v7203_v11 = vpop.f32.mrf.mxu1  ;;  %v7289_v3 = vadd.f32 %v7288_v38, %v7190_v26 }
 0x7c3   : > { %v7294_v18 = vpop.f32.mrf.mxu0  ;;  %v6735_v30 = vcombine.low %v9077_v32, %v9079_v23  ;;  %v7099_v32 = vadd.f32 %v7098_v41, %v11658_v10  ;;  %v7287_v23 = vadd.f32 %v7286_v61, %v7188_v16  ;;  %v7204_v60 = vadd.f32 %v7203_v11, %v7101_v40 }
 0x7c4   : > { %v7378_v43 = vpop.f32.mrf.mxu1  ;;  %v7295_v56 = vadd.f32 %v7294_v18, %v7195_v5 }
 0x7c5   : > { %v7296_v59 = vpop.f32.mrf.mxu0  ;;  %8969 = vst [vmem:[%s10068_s16 + $0x10] sm:$0x77] %v6735_v30  ;;  %v7181_v30 = vadd.f32 %v7180_v39, %v7066_v24  ;;  %v7202_v14 = vadd.f32 %v7201_v29, %v7099_v32 }
 0x7c6   : > { %v7380_v4 = vpop.f32.mrf.mxu1  ;;  %v7297_v63 = vadd.f32 %v7296_v59, %v7197_v1 }
 0x7c7   : > { %v7302_v51 = vpop.f32.mrf.mxu0  ;;  %v7279_v53 = vadd.f32 %v7278_v8, %v7181_v30  ;;  %v7381_v50 = vadd.f32 %v7380_v4, %v7281_v58 }
 0x7c8   : > { %v7387_v52 = vpop.f32.mrf.mxu1  ;;  %v7303_v41 = vadd.f32 %v7302_v51, %v7202_v14 }
 0x7c9   : > { %v7304_v55 = vpop.f32.mrf.mxu0  ;;  %v7388_v12 = vadd.f32 %v7387_v52, %v7287_v23  ;;  %v7379_v39 = vadd.f32 %v7378_v43, %v7279_v53 }
 0x7ca   : > { %v7389_v28 = vpop.f32.mrf.mxu1  ;;  %v7305_v26 = vadd.f32 %v7304_v55, %v7204_v60 }
 0x7cb   : > { %v7483_v49 = vpop.f32.mrf.mxu0  ;;  %v7390_v13 = vadd.f32 %v7389_v28, %v7289_v3 }
 0x7cc   : > { %v7396_v62 = vpop.f32.mrf.mxu1  ;;  %v7484_v52 = vadd.f32 %v7483_v49, %v7379_v39 }
 0x7cd   : > { %v7485_v25 = vpop.f32.mrf.mxu0  ;;  %v7397_v19 = vadd.f32 %v7396_v62, %v7295_v56 }
 0x7ce   : > { %v7398_v34 = vpop.f32.mrf.mxu1  ;;  %v7486_v45 = vadd.f32 %v7485_v25, %v7381_v50 }
 0x7cf   : > { %v7490_v33 = vpop.f32.mrf.mxu0  ;;  %v7399_v36 = vadd.f32 %v7398_v34, %v7297_v63 }
 0x7d0   : > { %v7405_v27 = vpop.f32.mrf.mxu1  ;;  %v7491_v61 = vadd.f32 %v7490_v33, %v7388_v12 }
 0x7d1   : > { %v7492_v7 = vpop.f32.mrf.mxu0  ;;  %v7406_v20 = vadd.f32 %v7405_v27, %v7303_v41 }
 0x7d2   : > { %v7407_v17 = vpop.f32.mrf.mxu1  ;;  %v7493_v2 = vadd.f32 %v7492_v7, %v7390_v13 }
 0x7d3   : > { %v7497_v37 = vpop.f32.mrf.mxu0  ;;  %v7408_v21 = vadd.f32 %v7407_v17, %v7305_v26 }
 0x7d4   : > { %v7578_v42 = vpop.f32.mrf.mxu1  ;;  %v7498_v18 = vadd.f32 %v7497_v37, %v7397_v19 }
 0x7d5   : > { %v7499_v0 = vpop.f32.mrf.mxu0  ;;  %v7579_v51 = vadd.f32 %v7578_v42, %v7484_v52 }
 0x7d6   : > { %v7580_v46 = vpop.f32.mrf.mxu1  ;;  %v7500_v29 = vadd.f32 %v7499_v0, %v7399_v36 }
 0x7d7   : > { %v7504_v38 = vpop.f32.mrf.mxu0  ;;  %v7581_v8 = vadd.f32 %v7580_v46, %v7486_v45  ;;  %v7604_v46 = vmax.f32 %v7579_v51, 0.0  ;;  %v11662_v51 = vld [vmem:[#allocation25_spill] sm:$0xff] }
 0x7d8   : > { %v7585_v47 = vpop.f32.mrf.mxu1  ;;  %v7505_v16 = vadd.f32 %v7504_v38, %v7406_v20  ;;  %v11659_v20 = vld [vmem:[#allocation34_spill] sm:$0xff] }
 0x7d9   : > { %v7586_v59 = vadd.f32 %v7585_v47, %v7491_v61  ;;  %v7506_v4 = vpop.f32.mrf.mxu0  ;;  %v7605_v55 = vmax.f32 %v7581_v8, 0.0  ;;  %v11084_v13 = vand.u32 4294901760, %v7604_v46 }
 0x7da   : > { %v7587_v54 = vpop.f32.mrf.mxu1  ;;  %v7507_v37 = vadd.f32 %v7506_v4, %v7408_v21 }
 0x7db   : > { %v7588_v28 = vadd.f32 %v7587_v54, %v7493_v2  ;;  %v7606_v25 = vmax.f32 %v7586_v59, 0.0  ;;  %v11074_v23 = vand.u32 4294901760, %v7605_v55  ;;  %v11103_v2 = vsub.f32 %v7604_v46, %v11084_v13 }
 0x7dc   : > { %v7592_v6 = vpop.f32.mrf.mxu1 }
 0x7dd   : > { %v7593_v62 = vadd.f32 %v7592_v6, %v7498_v18  ;;  %v7607_v34 = vmax.f32 %v7588_v28, 0.0  ;;  %v11067_v10 = vand.u32 4294901760, %v7606_v25  ;;  %v11097_v53 = vsub.f32 %v7605_v55, %v11074_v23  ;;  %v11670_v55 = vld [vmem:[#allocation28_spill] sm:$0xff] }
 0x7de   : > { %v7594_v7 = vpop.f32.mrf.mxu1  ;;  %v7797_v18 = vand.u32 4294901760, %v11103_v2 }
 0x7df   : > { %v7595_v11 = vadd.f32 %v7594_v7, %v7500_v29  ;;  %v7608_v33 = vmax.f32 %v7593_v62, 0.0  ;;  %v11065_v17 = vand.u32 4294901760, %v7607_v34  ;;  %v11090_v40 = vsub.f32 %v7606_v25, %v11067_v10  ;;  %v11660_v7 = vld [vmem:[#allocation37_spill] sm:$0xff]  ;;  %v11666_v25 = vld [vmem:[#allocation30_spill] sm:$0xff] }
 0x7e0   : > { %v7599_v43 = vpop.f32.mrf.mxu1  ;;  %v7791_v61 = vand.u32 4294901760, %v11097_v53  ;;  %v7798_v8 = vsub.f32 %v11103_v2, %v7797_v18 }
 0x7e1   : > { %v7609_v24 = vmax.f32 %v7595_v11, 0.0  ;;  %v7600_v57 = vadd.f32 %v7599_v43, %v7505_v16  ;;  %v11061_v5 = vand.u32 4294901760, %v7608_v33  ;;  %v11087_v47 = vsub.f32 %v7607_v34, %v11065_v17  ;;  %v11661_v11 = vld [vmem:[#allocation39_spill] sm:$0xff]  ;;  %v11663_v34 = vld [vmem:[#allocation40_spill] sm:$0xff]  ;;  %v11665_v43 = vld [vmem:[#allocation26_spill] sm:$0xff] }
 0x7e2   : > { %v7601_v27 = vpop.f32.mrf.mxu1  ;;  %v7785_v60 = vand.u32 4294901760, %v11090_v40  ;;  %v7792_v59 = vsub.f32 %v11097_v53, %v7791_v61  ;;  %v7799_v16 = vand.u32 4294901760, %v7798_v8 }
 0x7e3   : > { %v11063_v49 = vand.u32 4294901760, %v7609_v24  ;;  %v7610_v3 = vmax.f32 %v7600_v57, 0.0  ;;  %v7602_v0 = vadd.f32 %v7601_v27, %v7507_v37  ;;  %v11077_v30 = vsub.f32 %v7608_v33, %v11061_v5  ;;  %v11664_v33 = vld [vmem:[#allocation27_spill] sm:$0xff]  ;;  %v11667_v37 = vld [vmem:[#allocation33_spill] sm:$0xff]  ;;  %v11669_v57 = vld [vmem:[#allocation32_spill] sm:$0xff] }
 0x7e4   : > { %v7779_v54 = vand.u32 4294901760, %v11087_v47  ;;  %v7786_v26 = vsub.f32 %v11090_v40, %v7785_v60  ;;  %v7793_v21 = vand.u32 4294901760, %v7792_v59  ;;  %v11671_v27 = vld [vmem:[#allocation36_spill] sm:$0xff] }
 0x7e5   : > { %v11070_v42 = vsub.f32 %v7609_v24, %v11063_v49  ;;  %v11072_v32 = vand.u32 4294901760, %v7610_v3  ;;  %v7611_v1 = vmax.f32 %v7602_v0, 0.0  ;;  %v7773_v50 = vand.u32 4294901760, %v11077_v30  ;;  %v11668_v24 = vld [vmem:[#allocation29_spill] sm:$0xff] }
 0x7e6   : > { %v7780_v6 = vsub.f32 %v11087_v47, %v7779_v54  ;;  %v7787_v62 = vand.u32 4294901760, %v7786_v26 }
 0x7e7   : > { %v11080_v58 = vsub.f32 %v7610_v3, %v11072_v32  ;;  %v11082_v56 = vand.u32 4294901760, %v7611_v1  ;;  %v7767_v12 = vand.u32 4294901760, %v11070_v42  ;;  %v7774_v39 = vsub.f32 %v11077_v30, %v7773_v50  ;;  %v11672_v3 = vld [vmem:[#allocation31_spill] sm:$0xff] }
 0x7e8   : > { %v7781_v4 = vand.u32 4294901760, %v7780_v6 }
 0x7e9   : > { %v7761_v14 = vand.u32 4294901760, %v11080_v58  ;;  %v7754_v63 = vsub.f32 %v7611_v1, %v11082_v56  ;;  %7637 = vmatprep.subr.mxu0 %v11082_v56  ;;  %v7768_v36 = vsub.f32 %v11070_v42, %v7767_v12  ;;  %v7775_v52 = vand.u32 4294901760, %v7774_v39 }
 0x7ea   : > { %7639 = vmatpush1.msra.mxu0 %v11072_v32 }
 0x7eb   : > { %7641 = vmatprep.subr.mxu0 %v11063_v49  ;;  %v7755_v19 = vand.u32 4294901760, %v7754_v63  ;;  %v7762_v38 = vsub.f32 %v11080_v58, %v7761_v14  ;;  %v7769_v29 = vand.u32 4294901760, %v7768_v36 }
 0x7ec   : > { %7643 = vmatpush1.msra.mxu0 %v11061_v5 }
 0x7ed   : > { %7645 = vmatprep.subr.mxu0 %v11065_v17  ;;  %v7756_v41 = vsub.f32 %v7754_v63, %v7755_v19  ;;  %v7763_v28 = vand.u32 4294901760, %v7762_v38 }
 0x7ee   : > { %7647 = vmatpush1.msra.mxu0 %v11067_v10 }
 0x7ef   : > { %7649 = vmatprep.subr.mxu0 %v11074_v23  ;;  %v7757_v45 = vand.u32 4294901760, %v7756_v41 }
 0x7f0   : > { %7651 = vmatpush1.msra.mxu0 %v11084_v13 }
 0x7f1   : > { %7690 = vmatmul.mubr.f32.vlgmr.msra.gmra.mxu0 %v11659_v20  ;;  %7758 = vmatprep.subr.mxu1 %v7757_v45 }
 0x7f2   : > { %7888 = vmatprep.subr.mxu0 %v7754_v63  ;;  %7764 = vmatpush1.msra.mxu1 %v7763_v28 }
 0x7f3   : > { %7891 = vmatpush1.msra.mxu0 %v11080_v58  ;;  %7770 = vmatprep.subr.mxu1 %v7769_v29  ;;  %v11675_v29 = vld [vmem:[#allocation42_spill] sm:$0xff] }
 0x7f4   : > { %7894 = vmatprep.subr.mxu0 %v11070_v42  ;;  %7695 = vmatprep.mubr.f32.mxu0 %v11530_v48 }
 0x7f5   : > { %7776 = vmatpush1.msra.mxu1 %v7775_v52  ;;  %7897 = vmatpush1.msra.mxu0 %v11077_v30 }
 0x7f6   : > { %7701 = vmatmul.mubr.f32.gmra.mxu0 %v11660_v7  ;;  %7782 = vmatprep.subr.mxu1 %v7781_v4 }
 0x7f7   : > { %7900 = vmatprep.subr.mxu0 %v11087_v47  ;;  %7788 = vmatpush1.msra.mxu1 %v7787_v62  ;;  %v11676_v62 = vld [vmem:[#allocation43_spill] sm:$0xff] }
 0x7f8   : > { %7903 = vmatpush1.msra.mxu0 %v11090_v40  ;;  %7794 = vmatprep.subr.mxu1 %v7793_v21 }
 0x7f9   : > { %7906 = vmatprep.subr.mxu0 %v11097_v53  ;;  %7706 = vmatprep.mubr.f32.mxu0 %v11530_v48 }
 0x7fa   : > { %7800 = vmatpush1.msra.mxu1 %v7799_v16  ;;  %7909 = vmatpush1.msra.mxu0 %v11103_v2 }
 0x7fb   : > { %7712 = vmatmul.mubr.f32.gmra.mxu0 %v11661_v11  ;;  %7835 = vmatmul.mubr.f32.vlgmr.msra.gmra.mxu1 %v11662_v51 }
 0x7fc   : > { %8000 = vmatprep.subr.mxu1 %v11082_v56  ;;  %8111 = vmatprep.subr.mxu0 %v7755_v19 }
 0x7fd   : > { %8002 = vmatpush1.msra.mxu1 %v11072_v32  ;;  %7717 = vmatprep.mubr.f32.mxu0 %v11530_v48 }
 0x7fe   : > { %8004 = vmatprep.subr.mxu1 %v11063_v49  ;;  %7840 = vmatprep.mubr.f32.mxu1 %v11530_v48 }
 0x7ff   : > { %8006 = vmatpush1.msra.mxu1 %v11061_v5  ;;  %7723 = vmatmul.mubr.f32.gmra.mxu0 %v11663_v34 }
 0x800   : > { %7842 = vmatmul.mubr.f32.gmra.mxu1 %v11664_v33  ;;  %8008 = vmatprep.subr.mxu1 %v11065_v17 }
 0x801   : > { %8010 = vmatpush1.msra.mxu1 %v11067_v10  ;;  %7847 = vmatprep.mubr.f32.mxu1 %v11530_v48 }
 0x802   : > { %8012 = vmatprep.subr.mxu1 %v11074_v23  ;;  %7942 = vmatprep.mubr.f32.mxu0 %v11530_v48 }
 0x803   : > { %8014 = vmatpush1.msra.mxu1 %v11084_v13  ;;  %7945 = vmatmul.mubr.f32.vlgmr.msra.gmra.mxu0 %v11665_v43 }
 0x804   : > { %7849 = vmatmul.mubr.f32.gmra.mxu1 %v11666_v25  ;;  %8115 = vmatpush1.msra.mxu0 %v7761_v14 }
 0x805   : > { %8226 = vmatprep.subr.mxu1 %v11082_v56  ;;  %8119 = vmatprep.subr.mxu0 %v7767_v12 }
 0x806   : > { %8123 = vmatpush1.msra.mxu0 %v7773_v50  ;;  %7854 = vmatprep.mubr.f32.mxu1 %v11530_v48 }
 0x807   : > { %7950 = vmatprep.mubr.f32.mxu0 %v11530_v48  ;;  %8127 = vmatprep.subr.mxu0 %v7779_v54 }
 0x808   : > { %7856 = vmatmul.mubr.f32.gmra.mxu1 %v11667_v37  ;;  %7953 = vmatmul.mubr.f32.gmra.mxu0 %v11668_v24 }
 0x809   : > { %8131 = vmatpush1.msra.mxu0 %v7785_v60  ;;  %7958 = vmatprep.mubr.f32.mxu0 %v11530_v48 }
 0x80a   : > { %8135 = vmatprep.subr.mxu0 %v7791_v61  ;;  %8047 = vmatprep.mubr.f32.mxu1 %v11530_v48 }
 0x80b   : > { %8139 = vmatpush1.msra.mxu0 %v7797_v18 }
 0x80c   : > { %7961 = vmatmul.mubr.f32.gmra.mxu0 %v11669_v57  ;;  %8051 = vmatmul.mubr.f32.vlgmr.msra.gmra.mxu1 %v11670_v55 }
 0x80d   : > { %8228 = vmatpush1.msra.mxu1 %v11072_v32  ;;  %7966 = vmatprep.mubr.f32.mxu0 %v11530_v48 }
 0x80e   : > { %8230 = vmatprep.subr.mxu1 %v11063_v49  ;;  %8056 = vmatprep.mubr.f32.mxu1 %v11530_v48  ;;  %v11673_v49 = vld [vmem:[#allocation35_spill] sm:$0xff] }
 0x80f   : > { %8232 = vmatpush1.msra.mxu1 %v11061_v5  ;;  %v11674_v5 = vld [vmem:[#allocation38_spill] sm:$0xff] }
 0x810   : > { %8234 = vmatprep.subr.mxu1 %v11065_v17  ;;  %7969 = vmatmul.mubr.f32.gmra.mxu0 %v11671_v27 }
 0x811   : > { %8060 = vmatmul.mubr.f32.gmra.mxu1 %v11672_v3  ;;  %8172 = vmatprep.mubr.f32.mxu0 %v11530_v48 }
 0x812   : > { %8236 = vmatpush1.msra.mxu1 %v11067_v10  ;;  %8065 = vmatprep.mubr.f32.mxu1 %v11530_v48 }
 0x813   : > { %8238 = vmatprep.subr.mxu1 %v11074_v23 }
 0x814   : > { %8240 = vmatpush1.msra.mxu1 %v11084_v13  ;;  %8174 = vmatmul.mubr.f32.vlgmr.msra.gmra.mxu0 %v11662_v51 }
 0x815   : > { %8069 = vmatmul.mubr.f32.gmra.mxu1 %v11673_v49  ;;  %8179 = vmatprep.mubr.f32.mxu0 %v11530_v48 }
 0x816   : > { %8074 = vmatprep.mubr.f32.mxu1 %v11530_v48 }
 0x818   : > { %8181 = vmatmul.mubr.f32.gmra.mxu0 %v11664_v33 }
 0x819   : > { %8078 = vmatmul.mubr.f32.gmra.mxu1 %v11674_v5  ;;  %8186 = vmatprep.mubr.f32.mxu0 %v11530_v48 }
 0x81a   : > { %8273 = vmatprep.mubr.f32.mxu1 %v11530_v48 }
 0x81c   : > { %8188 = vmatmul.mubr.f32.gmra.mxu0 %v11666_v25 }
 0x81d   : > { %8275 = vmatmul.mubr.f32.vlgmr.msra.gmra.mxu1 %v11662_v51  ;;  %8193 = vmatprep.mubr.f32.mxu0 %v11530_v48  ;;  %v11677_v51 = vld [vmem:[#allocation41_spill] sm:$0xff] }
 0x81e   : > { %8280 = vmatprep.mubr.f32.mxu1 %v11530_v48 }
 0x820   : > { %8195 = vmatmul.mubr.f32.gmra.mxu0 %v11667_v37 }
 0x821   : > { %8282 = vmatmul.mubr.f32.gmra.mxu1 %v11664_v33  ;;  %8382 = vmatprep.mubr.f32.mxu0 %v11530_v48 }
 0x822   : > { %8287 = vmatprep.mubr.f32.mxu1 %v11530_v48 }
 0x825   : > { %8289 = vmatmul.mubr.f32.gmra.mxu1 %v11666_v25 }
 0x826   : > { %8294 = vmatprep.mubr.f32.mxu1 %v11530_v48 }
 0x829   : > { %8296 = vmatmul.mubr.f32.gmra.mxu1 %v11667_v37 }
 0x82a   : > { %8498 = vmatprep.mubr.f32.mxu1 %v11530_v48 }
 0x8b1   : > { %v7691_v0 = vpop.f32.mrf.mxu0 }
 0x8b2   : > { %v7692_v11 = vadd.f32 %v7691_v0, %v11676_v62 }
 0x8b3   : > { %v7693_v46 = vpop.f32.mrf.mxu0 }
 0x8b4   : > { %v7694_v7 = vadd.f32 %v7693_v46, %v11676_v62 }
 0x8b6   : > { %v7702_v17 = vpop.f32.mrf.mxu0 }
 0x8b7   : > { %v7703_v8 = vadd.f32 %v7702_v17, %v11675_v29 }
 0x8b8   : > { %v7704_v10 = vpop.f32.mrf.mxu0 }
 0x8b9   : > { %v7705_v59 = vadd.f32 %v7704_v10, %v11675_v29 }
 0x8bb   : > { %v7713_v42 = vpop.f32.mrf.mxu0  ;;  %v7836_v32 = vpop.f32.mrf.mxu1 }
 0x8bc   : > { %v7714_v34 = vadd.f32 %v7713_v42, %v11677_v51  ;;  %v7837_v57 = vadd.f32 %v7836_v32, %v7692_v11 }
 0x8bd   : > { %v7715_v1 = vpop.f32.mrf.mxu0  ;;  %v7838_v23 = vpop.f32.mrf.mxu1 }
 0x8be   : > { %v7716_v25 = vadd.f32 %v7715_v1, %v11677_v51  ;;  %v7839_v37 = vadd.f32 %v7838_v23, %v7694_v7 }
 0x8bf   : > { %v7724_v30 = vpop.f32.mrf.mxu0 }
 0x8c0   : > { %v7843_v58 = vpop.f32.mrf.mxu1  ;;  %v7725_v5 = vadd.f32 %v7724_v30, %v9779_v31 }
 0x8c1   : > { %v7726_v56 = vpop.f32.mrf.mxu0  ;;  %v7844_v33 = vadd.f32 %v7843_v58, %v7703_v8 }
 0x8c2   : > { %v7845_v13 = vpop.f32.mrf.mxu1  ;;  %v7727_v0 = vadd.f32 %v7726_v56, %v9779_v31 }
 0x8c3   : > { %v7946_v47 = vpop.f32.mrf.mxu0  ;;  %v7846_v21 = vadd.f32 %v7845_v13, %v7705_v59 }
 0x8c4   : > { %v7850_v40 = vpop.f32.mrf.mxu1  ;;  %v7947_v13 = vadd.f32 %v7946_v47, %v7837_v57 }
 0x8c5   : > { %v7948_v14 = vpop.f32.mrf.mxu0  ;;  %v7851_v55 = vadd.f32 %v7850_v40, %v7714_v34 }
 0x8c6   : > { %v7852_v63 = vpop.f32.mrf.mxu1  ;;  %v7949_v17 = vadd.f32 %v7948_v14, %v7839_v37 }
 0x8c7   : > { %v7853_v46 = vadd.f32 %v7852_v63, %v7716_v25 }
 0x8c8   : > { %v7857_v12 = vpop.f32.mrf.mxu1  ;;  %v7954_v53 = vpop.f32.mrf.mxu0 }
 0x8c9   : > { %v7955_v27 = vadd.f32 %v7954_v53, %v7844_v33  ;;  %v7858_v59 = vadd.f32 %v7857_v12, %v7725_v5 }
 0x8ca   : > { %v7859_v50 = vpop.f32.mrf.mxu1  ;;  %v7956_v19 = vpop.f32.mrf.mxu0 }
 0x8cb   : > { %v7957_v24 = vadd.f32 %v7956_v19, %v7846_v21  ;;  %v7860_v32 = vadd.f32 %v7859_v50, %v7727_v0 }
 0x8cc   : > { %v7962_v2 = vpop.f32.mrf.mxu0  ;;  %v8052_v38 = vpop.f32.mrf.mxu1 }
 0x8cd   : > { %v7963_v42 = vadd.f32 %v7962_v2, %v7851_v55  ;;  %v8053_v40 = vadd.f32 %v8052_v38, %v7947_v13 }
 0x8ce   : > { %v7964_v54 = vpop.f32.mrf.mxu0  ;;  %v8054_v60 = vpop.f32.mrf.mxu1 }
 0x8cf   : > { %v7965_v1 = vadd.f32 %v7964_v54, %v7853_v46  ;;  %v8055_v23 = vadd.f32 %v8054_v60, %v7949_v17 }
 0x8d0   : > { %v7970_v41 = vpop.f32.mrf.mxu0 }
 0x8d1   : > { %v8061_v36 = vpop.f32.mrf.mxu1  ;;  %v7971_v30 = vadd.f32 %v7970_v41, %v7858_v59 }
 0x8d2   : > { %v7972_v61 = vpop.f32.mrf.mxu0  ;;  %v8062_v58 = vadd.f32 %v8061_v36, %v7955_v27 }
 0x8d3   : > { %v8063_v39 = vpop.f32.mrf.mxu1  ;;  %v7973_v2 = vadd.f32 %v7972_v61, %v7860_v32 }
 0x8d4   : > { %v8175_v45 = vpop.f32.mrf.mxu0  ;;  %v8064_v10 = vadd.f32 %v8063_v39, %v7957_v24 }
 0x8d5   : > { %v8070_v18 = vpop.f32.mrf.mxu1  ;;  %v8176_v21 = vadd.f32 %v8175_v45, %v8053_v40 }
 0x8d6   : > { %v8177_v28 = vpop.f32.mrf.mxu0  ;;  %v8071_v53 = vadd.f32 %v8070_v18, %v7963_v42 }
 0x8d7   : > { %v8072_v6 = vpop.f32.mrf.mxu1  ;;  %v8178_v14 = vadd.f32 %v8177_v28, %v8055_v23 }
 0x8d8   : > { %v8182_v26 = vpop.f32.mrf.mxu0  ;;  %v8073_v63 = vadd.f32 %v8072_v6, %v7965_v1 }
 0x8d9   : > { %v8079_v20 = vpop.f32.mrf.mxu1  ;;  %v8183_v8 = vadd.f32 %v8182_v26, %v8062_v58 }
 0x8da   : > { %v8184_v52 = vpop.f32.mrf.mxu0  ;;  %v8080_v36 = vadd.f32 %v8079_v20, %v7971_v30 }
 0x8db   : > { %v8081_v4 = vpop.f32.mrf.mxu1  ;;  %v8185_v19 = vadd.f32 %v8184_v52, %v8064_v10 }
 0x8dc   : > { %v8189_v16 = vpop.f32.mrf.mxu0  ;;  %v8082_v18 = vadd.f32 %v8081_v4, %v7973_v2 }
 0x8dd   : > { %v8276_v43 = vpop.f32.mrf.mxu1  ;;  %v8190_v31 = vadd.f32 %v8189_v16, %v8071_v53 }
 0x8de   : > { %v8191_v3 = vpop.f32.mrf.mxu0  ;;  %v8277_v60 = vadd.f32 %v8276_v43, %v8176_v21 }
 0x8df   : > { %v8278_v49 = vpop.f32.mrf.mxu1  ;;  %v8192_v12 = vadd.f32 %v8191_v3, %v8073_v63 }
 0x8e0   : > { %v8196_v62 = vpop.f32.mrf.mxu0  ;;  %v8279_v54 = vadd.f32 %v8278_v49, %v8178_v14  ;;  %v8302_v25 = vmax.f32 %v8277_v60, 0.0 }
 0x8e1   : > { %v8283_v29 = vpop.f32.mrf.mxu1  ;;  %v8197_v26 = vadd.f32 %v8196_v62, %v8080_v36 }
 0x8e2   : > { %v8284_v56 = vadd.f32 %v8283_v29, %v8183_v8  ;;  %v8198_v52 = vpop.f32.mrf.mxu0  ;;  %v8303_v34 = vmax.f32 %v8279_v54, 0.0  ;;  %v11243_v5 = vand.u32 4294901760, %v8302_v25 }
 0x8e3   : > { %v8285_v7 = vpop.f32.mrf.mxu1  ;;  %v8199_v45 = vadd.f32 %v8198_v52, %v8082_v18 }
 0x8e4   : > { %v8286_v39 = vadd.f32 %v8285_v7, %v8185_v19  ;;  %v8304_v41 = vmax.f32 %v8284_v56, 0.0  ;;  %v11236_v55 = vand.u32 4294901760, %v8303_v34  ;;  %v11264_v1 = vsub.f32 %v8302_v25, %v11243_v5 }
 0x8e5   : > { %v8290_v47 = vpop.f32.mrf.mxu1 }
 0x8e6   : > { %v8291_v50 = vadd.f32 %v8290_v47, %v8190_v31  ;;  %v8305_v11 = vmax.f32 %v8286_v39, 0.0  ;;  %v11234_v57 = vand.u32 4294901760, %v8304_v41  ;;  %v11258_v42 = vsub.f32 %v8303_v34, %v11236_v55 }
 0x8e7   : > { %v8292_v38 = vpop.f32.mrf.mxu1  ;;  %v8462_v30 = vand.u32 4294901760, %v11264_v1 }
 0x8e8   : > { %v8293_v51 = vadd.f32 %v8292_v38, %v8192_v12  ;;  %v8306_v6 = vmax.f32 %v8291_v50, 0.0  ;;  %v11230_v37 = vand.u32 4294901760, %v8305_v11  ;;  %v11255_v13 = vsub.f32 %v8304_v41, %v11234_v57 }
 0x8e9   : > { %v8297_v28 = vpop.f32.mrf.mxu1  ;;  %v8456_v7 = vand.u32 4294901760, %v11258_v42  ;;  %v8463_v2 = vsub.f32 %v11264_v1, %v8462_v30 }
 0x8ea   : > { %v8307_v16 = vmax.f32 %v8293_v51, 0.0  ;;  %v8298_v33 = vadd.f32 %v8297_v28, %v8197_v26  ;;  %v11228_v61 = vand.u32 4294901760, %v8306_v6  ;;  %v11249_v17 = vsub.f32 %v8305_v11, %v11230_v37 }
 0x8eb   : > { %v8299_v20 = vpop.f32.mrf.mxu1  ;;  %v8450_v40 = vand.u32 4294901760, %v11255_v13  ;;  %v8457_v47 = vsub.f32 %v11258_v42, %v8456_v7  ;;  %v8464_v60 = vand.u32 4294901760, %v8463_v2 }
 0x8ec   : > { %v11232_v43 = vand.u32 4294901760, %v8307_v16  ;;  %v8308_v24 = vmax.f32 %v8298_v33, 0.0  ;;  %v8300_v4 = vadd.f32 %v8299_v20, %v8199_v45  ;;  %v11246_v46 = vsub.f32 %v8306_v6, %v11228_v61 }
 0x8ed   : > { %v8444_v32 = vand.u32 4294901760, %v11249_v17  ;;  %v8451_v21 = vsub.f32 %v11255_v13, %v8450_v40 }
 0x8ee   : > { %v11239_v27 = vsub.f32 %v8307_v16, %v11232_v43  ;;  %v11241_v3 = vand.u32 4294901760, %v8308_v24  ;;  %v8309_v49 = vmax.f32 %v8300_v4, 0.0  ;;  %v8438_v23 = vand.u32 4294901760, %v11246_v46 }
 0x8ef   : > { %v8445_v39 = vsub.f32 %v11249_v17, %v8444_v32  ;;  %v8452_v54 = vand.u32 4294901760, %v8451_v21 }
 0x8f0   : > { %v8425_v10 = vsub.f32 %v8308_v24, %v11241_v3  ;;  %v11252_v0 = vand.u32 4294901760, %v8309_v49  ;;  %v8432_v59 = vand.u32 4294901760, %v11239_v27  ;;  %v8439_v63 = vsub.f32 %v11246_v46, %v8438_v23 }
 0x8f1   : > { %v8446_v12 = vand.u32 4294901760, %v8445_v39 }
 0x8f2   : > { %v8426_v58 = vand.u32 4294901760, %v8425_v10  ;;  %v8419_v29 = vsub.f32 %v8309_v49, %v11252_v0  ;;  %8335 = vmatprep.subr.mxu0 %v11252_v0  ;;  %v8433_v62 = vsub.f32 %v11239_v27, %v8432_v59  ;;  %v8440_v36 = vand.u32 4294901760, %v8439_v63 }
 0x8f3   : > { %8337 = vmatpush1.msra.mxu0 %v11241_v3 }
 0x8f4   : > { %8339 = vmatprep.subr.mxu0 %v11232_v43  ;;  %v8420_v19 = vand.u32 4294901760, %v8419_v29  ;;  %v8427_v53 = vsub.f32 %v8425_v10, %v8426_v58  ;;  %v8434_v56 = vand.u32 4294901760, %v8433_v62 }
 0x8f5   : > { %8341 = vmatpush1.msra.mxu0 %v11228_v61 }
 0x8f6   : > { %8343 = vmatprep.subr.mxu0 %v11230_v37  ;;  %v8421_v8 = vsub.f32 %v8419_v29, %v8420_v19  ;;  %v8428_v31 = vand.u32 4294901760, %v8427_v53 }
 0x8f7   : > { %8345 = vmatpush1.msra.mxu0 %v11234_v57 }
 0x8f8   : > { %8347 = vmatprep.subr.mxu0 %v11236_v55  ;;  %v8422_v14 = vand.u32 4294901760, %v8421_v8 }
 0x8f9   : > { %8349 = vmatpush1.msra.mxu0 %v11243_v5 }
 0x8fa   : > { %8388 = vmatmul.mubr.f32.vlgmr.msra.gmra.mxu0 %v9929_v22  ;;  %8423 = vmatprep.subr.mxu1 %v8422_v14  ;;  %v8458_v22 = vand.u32 4294901760, %v8457_v47 }
 0x8fb   : > { %8532 = vmatprep.subr.mxu0 %v8419_v29  ;;  %8429 = vmatpush1.msra.mxu1 %v8428_v31 }
 0x8fc   : > { %8535 = vmatpush1.msra.mxu0 %v8425_v10  ;;  %8435 = vmatprep.subr.mxu1 %v8434_v56 }
 0x8fd   : > { %8538 = vmatprep.subr.mxu0 %v11239_v27  ;;  %8441 = vmatpush1.msra.mxu1 %v8440_v36 }
 0x8fe   : > { %8541 = vmatpush1.msra.mxu0 %v11246_v46  ;;  %8447 = vmatprep.subr.mxu1 %v8446_v12 }
 0x8ff   : > { %8544 = vmatprep.subr.mxu0 %v11249_v17  ;;  %8453 = vmatpush1.msra.mxu1 %v8452_v54 }
 0x900   : > { %8547 = vmatpush1.msra.mxu0 %v11255_v13  ;;  %8459 = vmatprep.subr.mxu1 %v8458_v22 }
 0x901   : > { %8550 = vmatprep.subr.mxu0 %v11258_v42  ;;  %8465 = vmatpush1.msra.mxu1 %v8464_v60 }
 0x902   : > { %8553 = vmatpush1.msra.mxu0 %v11264_v1  ;;  %8500 = vmatmul.mubr.f32.vlgmr.msra.gmra.mxu1 %v9790_v44 }
 0x903   : > { %8586 = vmatprep.mubr.f32.mxu0 %v11530_v48  ;;  %8620 = vmatprep.subr.mxu1 %v11252_v0 }
 0x904   : > { %8704 = vmatprep.subr.mxu0 %v8420_v19  ;;  %8589 = vmatmul.mubr.f32.vlgmr.msra.gmra.mxu0 %v9807_v15 }
 0x905   : > { %8622 = vmatpush1.msra.mxu1 %v11241_v3  ;;  %8708 = vmatpush1.msra.mxu0 %v8426_v58 }
 0x906   : > { %8624 = vmatprep.subr.mxu1 %v11232_v43  ;;  %8712 = vmatprep.subr.mxu0 %v8432_v59 }
 0x907   : > { %8626 = vmatpush1.msra.mxu1 %v11228_v61  ;;  %8716 = vmatpush1.msra.mxu0 %v8438_v23 }
 0x908   : > { %8628 = vmatprep.subr.mxu1 %v11230_v37  ;;  %8720 = vmatprep.subr.mxu0 %v8444_v32 }
 0x909   : > { %8630 = vmatpush1.msra.mxu1 %v11234_v57  ;;  %8724 = vmatpush1.msra.mxu0 %v8450_v40 }
 0x90a   : > { %8632 = vmatprep.subr.mxu1 %v11236_v55  ;;  %8728 = vmatprep.subr.mxu0 %v8456_v7 }
 0x90b   : > { %8634 = vmatpush1.msra.mxu1 %v11243_v5  ;;  %8667 = vmatprep.mubr.f32.mxu1 %v11530_v48 }
 0x90c   : > { %8732 = vmatpush1.msra.mxu0 %v8462_v30  ;;  %8671 = vmatmul.mubr.f32.vlgmr.msra.gmra.mxu1 %v9871_v35 }
 0x90d   : > { %8798 = vmatprep.subr.mxu1 %v11252_v0  ;;  %8765 = vmatprep.mubr.f32.mxu0 %v11530_v48 }
 0x90e   : > { %8800 = vmatpush1.msra.mxu1 %v11241_v3  ;;  %8767 = vmatmul.mubr.f32.vlgmr.msra.gmra.mxu0 %v9790_v44 }
 0x90f   : > { %8802 = vmatprep.subr.mxu1 %v11232_v43  ;;  %8845 = vmatprep.mubr.f32.mxu1 %v11530_v48 }
 0x910   : > { %8804 = vmatpush1.msra.mxu1 %v11228_v61 }
 0x911   : > { %8806 = vmatprep.subr.mxu1 %v11230_v37 }
 0x912   : > { %8808 = vmatpush1.msra.mxu1 %v11234_v57 }
 0x913   : > { %8810 = vmatprep.subr.mxu1 %v11236_v55 }
 0x914   : > { %8812 = vmatpush1.msra.mxu1 %v11243_v5 }
 0x915   : > { %8847 = vmatmul.mubr.f32.vlgmr.msra.gmra.mxu1 %v9790_v44 }
 0x9ba   : > { %v8389_v15 = vpop.f32.mrf.mxu0 }
 0x9bb   : > { %v8390_v50 = vadd.f32 %v8389_v15, %v11655_v9 }
 0x9bc   : > { %v8391_v52 = vpop.f32.mrf.mxu0 }
 0x9bd   : > { %v8392_v48 = vadd.f32 %v8391_v52, %v11655_v9 }
 0x9c2   : > { %v8501_v35 = vpop.f32.mrf.mxu1 }
 0x9c3   : > { %v8502_v26 = vadd.f32 %v8501_v35, %v8390_v50 }
 0x9c4   : > { %v8503_v38 = vpop.f32.mrf.mxu1  ;;  %v8590_v18 = vpop.f32.mrf.mxu0 }
 0x9c5   : > { %v8504_v11 = vadd.f32 %v8503_v38, %v8392_v48  ;;  %v8591_v6 = vadd.f32 %v8590_v18, %v8502_v26 }
 0x9c6   : > { %v8592_v41 = vpop.f32.mrf.mxu0 }
 0x9c7   : > { %v8593_v45 = vadd.f32 %v8592_v41, %v8504_v11 }
 0x9cc   : > { %v8672_v51 = vpop.f32.mrf.mxu1 }
 0x9cd   : > { %v8673_v44 = vadd.f32 %v8672_v51, %v8591_v6 }
 0x9ce   : > { %v8674_v28 = vpop.f32.mrf.mxu1  ;;  %v8768_v34 = vpop.f32.mrf.mxu0 }
 0x9cf   : > { %v8675_v16 = vadd.f32 %v8674_v28, %v8593_v45  ;;  %v8769_v25 = vadd.f32 %v8768_v34, %v8673_v44 }
 0x9d0   : > { %v8770_v33 = vpop.f32.mrf.mxu0 }
 0x9d1   : > { %v8771_v20 = vadd.f32 %v8770_v33, %v8675_v16 }
 0x9d5   : > { %v8848_v61 = vpop.f32.mrf.mxu1 }
 0x9d6   : > { %v8849_v37 = vadd.f32 %v8848_v61, %v8769_v25 }
 0x9d7   : > { %v8850_v9 = vpop.f32.mrf.mxu1 }
 0x9d8   : > { %v8851_v43 = vadd.f32 %v8850_v9, %v8771_v20  ;;  %9080 = vtanh.f32 %v8849_v37 }
 0x9da   : > { %9082 = vtanh.f32 %v8851_v43 }
 0x9e5   : > { %v9081_v24 = vpop.eup %9080 }
 0x9e7   : > { %v9083_v4 = vpop.eup %9082 }
 0x9e8   : > { %v8857_v57 = vcombine.low %v9081_v24, %v9083_v4 }
 0x9ea   : > { %8979 = vst [vmem:[%s10068_s16 + $0x18] sm:$0x77] %v8857_v57 }
 0x9eb   : > { %9097 = shalt.err (!%p9094_p3)
}
 0x9ec   : > { %s9098_s9 = scalar_lea.hbm %s8874_s21, 512  ;;  %s9102_s15 = scalar_lea.hbm %s11362_s7, 1024 }
 0x9ed   : > { %p9099_p4 = scmp.ne.s32.totalorder %s8874_s21, %s9098_s9  ;;  %p9103_p9 = scmp.lt.s32.totalorder %s8874_s21, %s11362_s7 }
 0x9ee   : > { %p9104_p10 = scmp.lt.s32.totalorder %s9102_s15, %s9098_s9 }
 0x9ef   : > { %p9100_p7 = pnand %p9099_p4, %p9234_p5 }
 0x9f0   : > { %p9105_p11 = por %p9104_p10, %p9103_p9 }
 0x9f1   : > { %p9101_p8 = pneg %p9100_p7 }
 0x9f3   : > { %p9106_p12 = pnand %p9105_p11, %p9101_p8 }
 0x9f5   : > { %9109 = shalt.err (!%p9106_p12)
}
 0x9f6   : > { %9002 = dma.vmem_to_hbm [thread:$0]  (%p9234_p5), %s8877_s18, 512, %s8874_s21, %s8862_s22  }
 0x9f7 PF: > { %p9008_p13 = scmp.ge.s32.totalorder %s9144_s27, 2  ;;  %s8888_s19 = sand.u32 1, %s9132_s24  }
 0x9f8   : > { %s8889_s20 = scalar_lea.sflag [#allocation3], %s8888_s19 }
 0x9f9   : > { %p9005_p0 = pnand %p9008_p13, %p9238_p6 }
 0x9fb   : > { %p9006_p1 = pneg %p9005_p0 }
 0x9fd   : > { %9127 = dma.done.wait (%p9006_p1), %s8889_s20, 512  }
 0x9fe   : > { %9129 = vsyncadd (%p9006_p1), %s8889_s20, 4294966784  ;;  %p17_p2 = scmp.ge.s32.totalorder %s9221_s30, 4   ;;  %s11678_s24 = smov %s9136_s25 }
 0x9ff   : > { %s11679_s25 = smov %s9140_s26  ;;  %s11680_s26 = smov %s9232_s10 }
 0xa00   : > { %s11681_s27 = smov %s9221_s30  ;;  %19 = sbr.rel (!%p17_p2) target bundleno = 3 (0x3), region = 89 }
 0xa05   :  { %8894 = vsyncpa [#allocation3], 1 }
 0xa06   :  { %8896 = vsyncpa [#allocation3 + $0x1], 1 }

</bundles_post_ra>
